<compile_context>
chip_gen: v7x
topology: tpu7x:2x2x1
jax: 0.10.0
libtpu: 0.0.40
codegen_flags: <defaults>
</compile_context>

<pallas_src>
import functools

import jax
import jax.numpy as jnp
from jax import lax
from jax.experimental import pallas as pl
from jax.experimental.pallas import tpu as pltpu


# ----------------------------------------------------------------------------
# Pallas kernel: one batch tile per grid step, fully fused block.
# ----------------------------------------------------------------------------
def disblock_kernel(p1_ref, w1_ref, b1_ref, w2_ref, bo_ref, out_ref, h1p_ref):
    """One batch tile per grid step.

    p1_ref : (BT, 4*H2*W2, 9*Cin) bf16  conv1 im2col patches, rows ordered
             (n, a, b, r, c) with pixel (y, x) = (2r + 1 - a, 2c + 1 - b)
    w1_ref : (9*Cin, 2*Cout)      bf16  [conv1 weight | 0.25 * 1x1-shortcut weight]
    b1_ref : (1, Cout)            f32   conv1 bias
    w2_ref : (16, Cout, Cout)     bf16  pool-folded 4x4 stride-2 conv2 taps, idx = u*4+v
    bo_ref : (1, Cout)            f32   b2 + bsc (biases commute with avgpool)
    out_ref: (BT, H2, W2, Cout)
    h1p_ref: (4, BT, H2+1, W2+1, Cout) bf16 scratch: 4 phase tensors of padded h1
    """
    BT, MP, K1 = p1_ref.shape
    Cout = out_ref.shape[-1]
    H2, W2 = out_ref.shape[1], out_ref.shape[2]
    M = BT * MP                 # conv1 rows  (= BT * 4 * H2 * W2 = BT * H * W)
    M2 = BT * H2 * W2           # pooled output rows

    # ---- conv1 + fused 1x1 shortcut: ONE (M, 9Cin) x (9Cin, 2*Cout) MXU matmul ----
    p1 = p1_ref[...].reshape(M, K1)
    hsc = jnp.dot(p1, w1_ref[...], preferred_element_type=jnp.float32)   # (M, 2*Cout)
    h1 = jnp.maximum(hsc[:, :Cout] + b1_ref[...], 0.0)   # bias + ReLU, f32 on VPU
    sc = hsc[:, Cout:]                                    # 0.25 * conv1x1_sc(x), full-res

    # ---- shortcut avg-pool == sum of the 4 phase blocks at the same (n, i, j) ----
    sc4 = sc.reshape(BT, 4, H2 * W2, Cout)
    acc = (sc4[:, 0] + sc4[:, 1] + sc4[:, 2] + sc4[:, 3]).reshape(M2, Cout)
    acc = acc + bo_ref[...]                               # + (b2 + bsc)

    # ---- stash h1 (bf16) into the 4 zero-padded phase tensors ----
    # Phase (a, b): P[a][b][n, r, c] = h1pad[n, 2r+a, 2c+b].  Interior starts at
    # (1-a, 1-b); the zero border is row a*H2 and col b*W2.  Borders are re-zeroed
    # every step (safe under "parallel"/core-sharded grid semantics); interiors are
    # fully overwritten every step.
    zrow = jnp.zeros((BT, 1, W2 + 1, Cout), jnp.bfloat16)
    zcol = jnp.zeros((BT, H2 + 1, 1, Cout), jnp.bfloat16)
    h1r = h1.astype(jnp.bfloat16).reshape(BT, 2, 2, H2, W2, Cout)
    for a in range(2):
        for b in range(2):
            k = a * 2 + b
            h1p_ref[k, :, a * H2:a * H2 + 1, :, :] = zrow
            h1p_ref[k, :, :, b * W2:b * W2 + 1, :] = zcol
            h1p_ref[k, :, 1 - a:1 - a + H2, 1 - b:1 - b + W2, :] = h1r[:, a, b]

    # ---- conv2 fused with AvgPool2d(2): 4x4 stride-2 conv, decomposed into
    #      4 phases x 2x2 taps = 16 accumulating (M2, C) x (C, C) MXU matmuls over
    #      UNIT-STRIDE slices of the phase scratch (no stride-2 access anywhere) ----
    for ua in range(2):
        for va in range(2):
            k = ua * 2 + va
            for ur in range(2):
                for vr in range(2):
                    tap = (2 * ur + ua) * 4 + (2 * vr + va)
                    lhs = h1p_ref[k, :, ur:ur + H2, vr:vr + W2, :].reshape(M2, Cout)
                    acc = acc + jnp.dot(lhs, w2_ref[tap],
                                        preferred_element_type=jnp.float32)

    out_ref[...] = acc.reshape(BT, H2, W2, Cout).astype(out_ref.dtype)


# ----------------------------------------------------------------------------
# Tiling / VMEM heuristics.
# ----------------------------------------------------------------------------
def _round_up(x, m):
    return (x + m - 1) // m * m


def _tile_vmem_bytes(bt, H, W, Cin, Cout):
    """Rough per-grid-step VMEM footprint: double-buffered in/out blocks, resident
    weights, the bf16 phase scratch and the live f32/bf16 temporaries (2x slack)."""
    H2, W2 = H // 2, W // 2
    K1 = 9 * Cin
    m1, m2 = bt * H * W, bt * H2 * W2
    p1_blk = 2 * m1 * _round_up(K1, 128) * 2                    # bf16 input, 2 buffers
    out_blk = 2 * m2 * Cout * 4                                 # f32 output, 2 buffers
    weights = 2 * ((_round_up(K1, 8) * 2 * Cout + 16 * Cout * Cout) * 2
                   + 2 * _round_up(1, 8) * Cout * 4)
    scratch = 4 * bt * (H2 + 1) * _round_up(W2 + 1, 16) * Cout * 2
    temps = (m1 * 2 * Cout * 4      # conv1 f32 output
             + m1 * Cout * 2        # h1 bf16
             + m2 * Cout * 4        # accumulator
             + m2 * Cout * 2)       # one tap-slice copy
    return p1_blk + out_blk + weights + scratch + 2 * temps


def _pick_batch_tile(B, H, W, Cin, Cout, budget):
    """Largest batch tile that (a) leaves >=4 grid steps when B allows (>=2 steps per
    v7x TensorCore so the BlockSpec pipeline overlaps DMA with compute) and (b) fits
    the per-step VMEM budget.  Fails loudly instead of silently spilling."""
    min_steps = 4 if B >= 4 else B
    best = 0
    for t in range(1, B + 1):
        if B % t or B // t < min_steps:
            continue
        if _tile_vmem_bytes(t, H, W, Cin, Cout) <= budget:
            best = t
    assert best > 0, ("OptimizedDisBlock kernel: no batch tile fits the VMEM budget "
                      "-- image too large for this tiling")
    return best


def _vmem_limit_bytes():
    # 3/4 of physical VMEM (128 MiB on v5e/v6e, 64 MiB on v7x), capped at 96 MiB.
    cap = 64 * 1024 * 1024
    try:
        cap = int(pltpu.get_tpu_info().vmem_capacity_bytes)
    except Exception:
        pass
    return min(cap * 3 // 4, 96 * 1024 * 1024)


# ----------------------------------------------------------------------------
# Wrapper: NCHW <-> NHWC plumbing, host-side im2col, weight folding, pallas_call.
# ----------------------------------------------------------------------------
@functools.partial(jax.jit, static_argnames=("out_dtype",))
def optimized_dis_block(x_nchw, params, out_dtype=jnp.float32):
    w1, b1, w2, b2, wsc, bsc = params             # f32, already spectral-normalized
    x = jnp.transpose(x_nchw, (0, 2, 3, 1))       # NHWC
    B, H, W, Cin = x.shape
    Cout = w1.shape[-1]
    assert H % 2 == 0 and W % 2 == 0, "AvgPool2d(2) path assumes even H, W"
    H2, W2 = H // 2, W // 2
    K1 = 9 * Cin

    # ---- host-side conv1 im2col (tiny), rows in PHASE order (n, a, b, r, c) with
    # pixel (y, x) = (2r + 1 - a, 2c + 1 - b): conv1's matmul output then lands
    # directly in the de-interleaved layout the pool-fused conv2 consumes, so no
    # stride-2 slicing ever happens in-kernel.
    xpad = jnp.pad(x, ((0, 0), (1, 1), (1, 1), (0, 0)))
    patches = jnp.concatenate(
        [xpad[:, dy:dy + H, dx:dx + W, :] for dy in range(3) for dx in range(3)],
        axis=-1)                                            # (B, H, W, 9*Cin), (tap, ci)
    t = patches.reshape(B, H2, 2, W2, 2, K1)                # (n, r, py, c, px, k)
    t = jnp.transpose(t, (0, 2, 4, 1, 3, 5))                # (n, py, px, r, c, k)
    t = jnp.flip(t, axis=(1, 2))                            # a = 1 - py, b = 1 - px
    p1 = t.reshape(B, 4 * H2 * W2, K1).astype(jnp.bfloat16)
    # TODO(synk): if exact-f32 conv1/shortcut parity is needed, keep p1/w1k in f32
    # (that matmul is tiny); only conv2's operands need bf16 for throughput.

    # ---- conv1 weight with the 1x1 shortcut fused in as extra N columns ----
    # avgpool commutes with a 1x1 conv: the shortcut is produced at full resolution
    # by the center tap (dy=dx=1) of conv1's im2col; the 1/4 pool factor is folded
    # into the weight; pooling becomes a 4-phase-block sum in the kernel.
    w1m = w1.reshape(K1, Cout)
    wsc_cols = jnp.zeros((K1, Cout), jnp.float32).at[4 * Cin:5 * Cin, :].set(
        0.25 * wsc.reshape(Cin, Cout))
    w1k = jnp.concatenate([w1m, wsc_cols], axis=1).astype(jnp.bfloat16)   # (K1, 2*Cout)

    # ---- conv2 with AvgPool2d(2) folded in: 4x4 stride-2 kernel, tap-major ----
    # K4[u, v] = 0.25 * sum_{a+dy=u, b+dx=v; a,b in {0,1}} w2[dy, dx]
    K4 = jnp.zeros((4, 4, Cout, Cout), jnp.float32)
    for a in range(2):
        for b in range(2):
            K4 = K4.at[a:a + 3, b:b + 3].add(w2)
    w2k = (0.25 * K4).reshape(16, Cout, Cout).astype(jnp.bfloat16)

    b1k = b1.reshape(1, Cout).astype(jnp.float32)
    bok = (b2 + bsc).reshape(1, Cout).astype(jnp.float32)   # biases commute with avgpool

    vmem_limit = _vmem_limit_bytes()
    BT = _pick_batch_tile(B, H, W, Cin, Cout, budget=vmem_limit * 2 // 3)
    grid = (B // BT,)

    out_nhwc = pl.pallas_call(
        disblock_kernel,
        out_shape=jax.ShapeDtypeStruct((B, H2, W2, Cout), out_dtype),
        grid_spec=pltpu.PrefetchScalarGridSpec(
            num_scalar_prefetch=0,
            grid=grid,
            in_specs=[
                pl.BlockSpec((BT, 4 * H2 * W2, K1), lambda i: (i, 0, 0)),
                # Weights/biases: constant index_map -> fetched once, resident.
                pl.BlockSpec((K1, 2 * Cout), lambda i: (0, 0)),
                pl.BlockSpec((1, Cout), lambda i: (0, 0)),
                pl.BlockSpec((16, Cout, Cout), lambda i: (0, 0, 0)),
                pl.BlockSpec((1, Cout), lambda i: (0, 0)),
            ],
            out_specs=pl.BlockSpec((BT, H2, W2, Cout), lambda i: (i, 0, 0, 0)),
            scratch_shapes=[
                pltpu.VMEM((4, BT, H2 + 1, W2 + 1, Cout), jnp.bfloat16)],
        ),
        compiler_params=pltpu.CompilerParams(
            dimension_semantics=("parallel",),
            vmem_limit_bytes=vmem_limit,
        ),
    )(p1, w1k, b1k, w2k, bok)

    return jnp.transpose(out_nhwc, (0, 3, 1, 2))            # back to NCHW


# ----------------------------------------------------------------------------
# Parameter setup (synthetic, deterministic) + spectral normalization.
# ----------------------------------------------------------------------------
def spectral_sigma(mat, iters=50):
    # Converged power iteration for the largest singular value (deterministic).
    u = jnp.ones((mat.shape[0],), mat.dtype)
    v = jnp.ones((mat.shape[1],), mat.dtype)
    for _ in range(iters):
        v = mat.T @ u
        v = v / (jnp.linalg.norm(v) + 1e-12)
        u = mat @ v
        u = u / (jnp.linalg.norm(u) + 1e-12)
    return u @ (mat @ v)


def make_params(key, Cin, Cout):
    ks = jax.random.split(key, 6)
    w1 = jax.random.normal(ks[0], (3, 3, Cin, Cout), jnp.float32) * 0.2
    b1 = jax.random.normal(ks[1], (1, Cout), jnp.float32) * 0.1
    w2 = jax.random.normal(ks[2], (3, 3, Cout, Cout), jnp.float32) * 0.2
    b2 = jax.random.normal(ks[3], (1, Cout), jnp.float32) * 0.1
    wsc = jax.random.normal(ks[4], (1, 1, Cin, Cout), jnp.float32) * 0.2
    bsc = jax.random.normal(ks[5], (1, Cout), jnp.float32) * 0.1

    # spectral_norm(conv): divide weight by its spectral norm (bias untouched).
    # TODO(synk): PyTorch updates u with a single stateful power-iteration step per
    # call; here we use the converged sigma deterministically.
    w1 = w1 / spectral_sigma(w1.reshape(-1, Cout))
    w2 = w2 / spectral_sigma(w2.reshape(-1, Cout))
    wsc = wsc / spectral_sigma(wsc.reshape(-1, Cout))
    return w1, b1, w2, b2, wsc, bsc


# ----------------------------------------------------------------------------
# Pure-JAX reference (correctness check only).
# ----------------------------------------------------------------------------
def _avgpool2(x):
    B, H, W, C = x.shape
    return x.reshape(B, H // 2, 2, W // 2, 2, C).mean(axis=(2, 4))


def ref_forward(x_nchw, params):
    w1, b1, w2, b2, wsc, bsc = params
    x = jnp.transpose(x_nchw, (0, 2, 3, 1)).astype(jnp.float32)
    dn = ("NHWC", "HWIO", "NHWC")
    h = lax.conv_general_dilated(x, w1, (1, 1), "SAME",
                                 dimension_numbers=dn) + b1[0]
    h = jnp.maximum(h, 0.0)
    h = lax.conv_general_dilated(h, w2, (1, 1), "SAME",
                                 dimension_numbers=dn) + b2[0]
    h = _avgpool2(h)
    s = _avgpool2(x)
    s = lax.conv_general_dilated(s, wsc, (1, 1), "VALID",
                                 dimension_numbers=dn) + bsc[0]
    return jnp.transpose(h + s, (0, 3, 1, 2))


if __name__ == "__main__":
    # Small but realistic-regime shapes: Cout=128 keeps the matmul N and the output
    # lane dimension MXU/lane-friendly; B=4 gives 4 grid steps (>=2 per v7x core).
    B, Cin, Cout, H, W = 4, 4, 128, 16, 16
    key = jax.random.PRNGKey(0)
    kx, kp = jax.random.split(key)
    x = jax.random.normal(kx, (B, Cin, H, W), jnp.float32)
    params = make_params(kp, Cin, Cout)

    out = optimized_dis_block(x, params)
    jax.block_until_ready(out)

    ref = ref_forward(x, params)
    err = float(jnp.max(jnp.abs(out - ref)))
    assert out.shape == (B, Cout, H // 2, W // 2), out.shape
    # bf16 MXU operands vs f32 reference -> loosened tolerance.
    assert jnp.allclose(out, ref, atol=2e-2, rtol=2e-2), err

    print("KERNEL_OK")
</pallas_src>

<mosaic_0001>
module attributes {stable_mosaic.version = 11 : i64} {
  func.func @disblock_kernel(%arg0: i32, %arg1: memref<1x256x36xbf16, #tpu.memory_space<vmem>>, %arg2: memref<36x256xbf16, #tpu.memory_space<vmem>>, %arg3: memref<1x128xf32, #tpu.memory_space<vmem>>, %arg4: memref<16x128x128xbf16, #tpu.memory_space<vmem>>, %arg5: memref<1x128xf32, #tpu.memory_space<vmem>>, %arg6: memref<1x8x8x128xf32, #tpu.memory_space<vmem>>, %arg7: memref<4x1x9x9x128xbf16, #tpu.memory_space<vmem>>) attributes {dimension_semantics = [#tpu.dimension_semantics<parallel>], iteration_bounds = array<i64: 4>, scalar_prefetch = 0 : i64, scratch_operands = 1 : i64, tpu.core_type = #tpu.core_type<tc>, window_params = [{transform_indices = @transform_0, window_bounds = array<i64: 1, 256, 36>}, {pipeline_mode = #tpu.pipeline_mode<synchronous>, transform_indices = @transform_1, window_bounds = array<i64: 36, 256>}, {pipeline_mode = #tpu.pipeline_mode<synchronous>, transform_indices = @transform_2, window_bounds = array<i64: 1, 128>}, {pipeline_mode = #tpu.pipeline_mode<synchronous>, transform_indices = @transform_3, window_bounds = array<i64: 16, 128, 128>}, {pipeline_mode = #tpu.pipeline_mode<synchronous>, transform_indices = @transform_4, window_bounds = array<i64: 1, 128>}, {transform_indices = @transform_5, window_bounds = array<i64: 1, 8, 8, 128>}]} {
    %c0 = arith.constant 0 : index
    %c0_0 = arith.constant 0 : index
    %c0_1 = arith.constant 0 : index
    %0 = vector.load %arg1[%c0, %c0_0, %c0_1] : memref<1x256x36xbf16, #tpu.memory_space<vmem>>, vector<1x256x36xbf16>
    %1 = vector.shape_cast %0 : vector<1x256x36xbf16> to vector<256x36xbf16>
    %c0_2 = arith.constant 0 : index
    %c0_3 = arith.constant 0 : index
    %2 = vector.load %arg2[%c0_2, %c0_3] : memref<36x256xbf16, #tpu.memory_space<vmem>>, vector<36x256xbf16>
    %cst = arith.constant dense<0.000000e+00> : vector<256x256xf32>
    %3 = tpu.matmul %1, %2, %cst {dimension_numbers = #tpu.dot_dimension_numbers<[1], [0], [0], [1], [0, 0, 1, 1], [], []>} : vector<256x36xbf16>, vector<36x256xbf16>, vector<256x256xf32> -> vector<256x256xf32>
    %4 = vector.extract_strided_slice %3 {offsets = [0, 0], sizes = [256, 128], strides = [1, 1]} : vector<256x256xf32> to vector<256x128xf32>
    %c0_4 = arith.constant 0 : index
    %c0_5 = arith.constant 0 : index
    %5 = vector.load %arg3[%c0_4, %c0_5] : memref<1x128xf32, #tpu.memory_space<vmem>>, vector<1x128xf32>
    %6 = vector.broadcast %5 : vector<1x128xf32> to vector<256x128xf32>
    %7 = arith.addf %4, %6 : vector<256x128xf32>
    %cst_6 = arith.constant 0.000000e+00 : f32
    %8 = vector.broadcast %cst_6 : f32 to vector<256x128xf32>
    %9 = arith.maximumf %7, %8 : vector<256x128xf32>
    %10 = vector.extract_strided_slice %3 {offsets = [0, 128], sizes = [256, 128], strides = [1, 1]} : vector<256x256xf32> to vector<256x128xf32>
    %11 = vector.shape_cast %10 : vector<256x128xf32> to vector<1x4x64x128xf32>
    %12 = vector.extract_strided_slice %11 {offsets = [0, 0, 0, 0], sizes = [1, 1, 64, 128], strides = [1, 1, 1, 1]} : vector<1x4x64x128xf32> to vector<1x1x64x128xf32>
    %13 = vector.shape_cast %12 : vector<1x1x64x128xf32> to vector<1x64x128xf32>
    %14 = vector.extract_strided_slice %11 {offsets = [0, 1, 0, 0], sizes = [1, 1, 64, 128], strides = [1, 1, 1, 1]} : vector<1x4x64x128xf32> to vector<1x1x64x128xf32>
    %15 = vector.shape_cast %14 : vector<1x1x64x128xf32> to vector<1x64x128xf32>
    %16 = arith.addf %13, %15 : vector<1x64x128xf32>
    %17 = vector.extract_strided_slice %11 {offsets = [0, 2, 0, 0], sizes = [1, 1, 64, 128], strides = [1, 1, 1, 1]} : vector<1x4x64x128xf32> to vector<1x1x64x128xf32>
    %18 = vector.shape_cast %17 : vector<1x1x64x128xf32> to vector<1x64x128xf32>
    %19 = arith.addf %16, %18 : vector<1x64x128xf32>
    %20 = vector.extract_strided_slice %11 {offsets = [0, 3, 0, 0], sizes = [1, 1, 64, 128], strides = [1, 1, 1, 1]} : vector<1x4x64x128xf32> to vector<1x1x64x128xf32>
    %21 = vector.shape_cast %20 : vector<1x1x64x128xf32> to vector<1x64x128xf32>
    %22 = arith.addf %19, %21 : vector<1x64x128xf32>
    %23 = vector.shape_cast %22 : vector<1x64x128xf32> to vector<64x128xf32>
    %c0_7 = arith.constant 0 : index
    %c0_8 = arith.constant 0 : index
    %24 = vector.load %arg5[%c0_7, %c0_8] : memref<1x128xf32, #tpu.memory_space<vmem>>, vector<1x128xf32>
    %25 = vector.broadcast %24 : vector<1x128xf32> to vector<64x128xf32>
    %26 = arith.addf %23, %25 : vector<64x128xf32>
    %cst_9 = arith.constant 0.000000e+00 : bf16
    %27 = vector.broadcast %cst_9 : bf16 to vector<1x1x9x128xbf16>
    %cst_10 = arith.constant 0.000000e+00 : bf16
    %28 = vector.broadcast %cst_10 : bf16 to vector<1x9x1x128xbf16>
    %29 = arith.truncf %9 : vector<256x128xf32> to vector<256x128xbf16>
    %30 = vector.shape_cast %29 : vector<256x128xbf16> to vector<1x2x2x8x8x128xbf16>
    %c0_11 = arith.constant 0 : index
    %c0_12 = arith.constant 0 : index
    %c0_13 = arith.constant 0 : index
    %c0_14 = arith.constant 0 : index
    %c0_15 = arith.constant 0 : index
    %31 = vector.load %arg7[%c0_11, %c0_12, %c0_13, %c0_14, %c0_15] : memref<4x1x9x9x128xbf16, #tpu.memory_space<vmem>>, vector<1x1x1x9x128xbf16>
    %32 = vector.shape_cast %31 : vector<1x1x1x9x128xbf16> to vector<1x1x9x128xbf16>
    %33 = vector.shape_cast %27 : vector<1x1x9x128xbf16> to vector<1x1x1x9x128xbf16>
    tpu.vector_store %arg7[%c0_11, %c0_12, %c0_13, %c0_14, %c0_15], %33 {strides = array<i32>} : memref<4x1x9x9x128xbf16, #tpu.memory_space<vmem>>, vector<1x1x1x9x128xbf16>,
    %c0_16 = arith.constant 0 : index
    %c0_17 = arith.constant 0 : index
    %c0_18 = arith.constant 0 : index
    %c0_19 = arith.constant 0 : index
    %c0_20 = arith.constant 0 : index
    %34 = vector.load %arg7[%c0_16, %c0_17, %c0_18, %c0_19, %c0_20] : memref<4x1x9x9x128xbf16, #tpu.memory_space<vmem>>, vector<1x1x9x1x128xbf16>
    %35 = vector.shape_cast %34 : vector<1x1x9x1x128xbf16> to vector<1x9x1x128xbf16>
    %36 = vector.shape_cast %28 : vector<1x9x1x128xbf16> to vector<1x1x9x1x128xbf16>
    tpu.vector_store %arg7[%c0_16, %c0_17, %c0_18, %c0_19, %c0_20], %36 {strides = array<i32>} : memref<4x1x9x9x128xbf16, #tpu.memory_space<vmem>>, vector<1x1x9x1x128xbf16>,
    %37 = vector.extract_strided_slice %30 {offsets = [0, 0, 0, 0, 0, 0], sizes = [1, 1, 1, 8, 8, 128], strides = [1, 1, 1, 1, 1, 1]} : vector<1x2x2x8x8x128xbf16> to vector<1x1x1x8x8x128xbf16>
    %38 = vector.shape_cast %37 : vector<1x1x1x8x8x128xbf16> to vector<1x8x8x128xbf16>
    %c0_21 = arith.constant 0 : index
    %c0_22 = arith.constant 0 : index
    %c1 = arith.constant 1 : index
    %c1_23 = arith.constant 1 : index
    %c0_24 = arith.constant 0 : index
    %39 = vector.load %arg7[%c0_21, %c0_22, %c1, %c1_23, %c0_24] : memref<4x1x9x9x128xbf16, #tpu.memory_space<vmem>>, vector<1x1x8x8x128xbf16>
    %40 = vector.shape_cast %39 : vector<1x1x8x8x128xbf16> to vector<1x8x8x128xbf16>
    %41 = vector.shape_cast %38 : vector<1x8x8x128xbf16> to vector<1x1x8x8x128xbf16>
    tpu.vector_store %arg7[%c0_21, %c0_22, %c1, %c1_23, %c0_24], %41 {strides = array<i32>} : memref<4x1x9x9x128xbf16, #tpu.memory_space<vmem>>, vector<1x1x8x8x128xbf16>,
    %c1_25 = arith.constant 1 : index
    %c0_26 = arith.constant 0 : index
    %c0_27 = arith.constant 0 : index
    %c0_28 = arith.constant 0 : index
    %c0_29 = arith.constant 0 : index
    %42 = vector.load %arg7[%c1_25, %c0_26, %c0_27, %c0_28, %c0_29] : memref<4x1x9x9x128xbf16, #tpu.memory_space<vmem>>, vector<1x1x1x9x128xbf16>
    %43 = vector.shape_cast %42 : vector<1x1x1x9x128xbf16> to vector<1x1x9x128xbf16>
    %44 = vector.shape_cast %27 : vector<1x1x9x128xbf16> to vector<1x1x1x9x128xbf16>
    tpu.vector_store %arg7[%c1_25, %c0_26, %c0_27, %c0_28, %c0_29], %44 {strides = array<i32>} : memref<4x1x9x9x128xbf16, #tpu.memory_space<vmem>>, vector<1x1x1x9x128xbf16>,
    %c1_30 = arith.constant 1 : index
    %c0_31 = arith.constant 0 : index
    %c0_32 = arith.constant 0 : index
    %c8 = arith.constant 8 : index
    %c0_33 = arith.constant 0 : index
    %45 = vector.load %arg7[%c1_30, %c0_31, %c0_32, %c8, %c0_33] : memref<4x1x9x9x128xbf16, #tpu.memory_space<vmem>>, vector<1x1x9x1x128xbf16>
    %46 = vector.shape_cast %45 : vector<1x1x9x1x128xbf16> to vector<1x9x1x128xbf16>
    %47 = vector.shape_cast %28 : vector<1x9x1x128xbf16> to vector<1x1x9x1x128xbf16>
    tpu.vector_store %arg7[%c1_30, %c0_31, %c0_32, %c8, %c0_33], %47 {strides = array<i32>} : memref<4x1x9x9x128xbf16, #tpu.memory_space<vmem>>, vector<1x1x9x1x128xbf16>,
    %48 = vector.extract_strided_slice %30 {offsets = [0, 0, 1, 0, 0, 0], sizes = [1, 1, 1, 8, 8, 128], strides = [1, 1, 1, 1, 1, 1]} : vector<1x2x2x8x8x128xbf16> to vector<1x1x1x8x8x128xbf16>
    %49 = vector.shape_cast %48 : vector<1x1x1x8x8x128xbf16> to vector<1x8x8x128xbf16>
    %c1_34 = arith.constant 1 : index
    %c0_35 = arith.constant 0 : index
    %c1_36 = arith.constant 1 : index
    %c0_37 = arith.constant 0 : index
    %c0_38 = arith.constant 0 : index
    %50 = vector.load %arg7[%c1_34, %c0_35, %c1_36, %c0_37, %c0_38] : memref<4x1x9x9x128xbf16, #tpu.memory_space<vmem>>, vector<1x1x8x8x128xbf16>
    %51 = vector.shape_cast %50 : vector<1x1x8x8x128xbf16> to vector<1x8x8x128xbf16>
    %52 = vector.shape_cast %49 : vector<1x8x8x128xbf16> to vector<1x1x8x8x128xbf16>
    tpu.vector_store %arg7[%c1_34, %c0_35, %c1_36, %c0_37, %c0_38], %52 {strides = array<i32>} : memref<4x1x9x9x128xbf16, #tpu.memory_space<vmem>>, vector<1x1x8x8x128xbf16>,
    %c2 = arith.constant 2 : index
    %c0_39 = arith.constant 0 : index
    %c8_40 = arith.constant 8 : index
    %c0_41 = arith.constant 0 : index
    %c0_42 = arith.constant 0 : index
    %53 = vector.load %arg7[%c2, %c0_39, %c8_40, %c0_41, %c0_42] : memref<4x1x9x9x128xbf16, #tpu.memory_space<vmem>>, vector<1x1x1x9x128xbf16>
    %54 = vector.shape_cast %53 : vector<1x1x1x9x128xbf16> to vector<1x1x9x128xbf16>
    %55 = vector.shape_cast %27 : vector<1x1x9x128xbf16> to vector<1x1x1x9x128xbf16>
    tpu.vector_store %arg7[%c2, %c0_39, %c8_40, %c0_41, %c0_42], %55 {strides = array<i32>} : memref<4x1x9x9x128xbf16, #tpu.memory_space<vmem>>, vector<1x1x1x9x128xbf16>,
    %c2_43 = arith.constant 2 : index
    %c0_44 = arith.constant 0 : index
    %c0_45 = arith.constant 0 : index
    %c0_46 = arith.constant 0 : index
    %c0_47 = arith.constant 0 : index
    %56 = vector.load %arg7[%c2_43, %c0_44, %c0_45, %c0_46, %c0_47] : memref<4x1x9x9x128xbf16, #tpu.memory_space<vmem>>, vector<1x1x9x1x128xbf16>
    %57 = vector.shape_cast %56 : vector<1x1x9x1x128xbf16> to vector<1x9x1x128xbf16>
    %58 = vector.shape_cast %28 : vector<1x9x1x128xbf16> to vector<1x1x9x1x128xbf16>
    tpu.vector_store %arg7[%c2_43, %c0_44, %c0_45, %c0_46, %c0_47], %58 {strides = array<i32>} : memref<4x1x9x9x128xbf16, #tpu.memory_space<vmem>>, vector<1x1x9x1x128xbf16>,
    %59 = vector.extract_strided_slice %30 {offsets = [0, 1, 0, 0, 0, 0], sizes = [1, 1, 1, 8, 8, 128], strides = [1, 1, 1, 1, 1, 1]} : vector<1x2x2x8x8x128xbf16> to vector<1x1x1x8x8x128xbf16>
    %60 = vector.shape_cast %59 : vector<1x1x1x8x8x128xbf16> to vector<1x8x8x128xbf16>
    %c2_48 = arith.constant 2 : index
    %c0_49 = arith.constant 0 : index
    %c0_50 = arith.constant 0 : index
    %c1_51 = arith.constant 1 : index
    %c0_52 = arith.constant 0 : index
    %61 = vector.load %arg7[%c2_48, %c0_49, %c0_50, %c1_51, %c0_52] : memref<4x1x9x9x128xbf16, #tpu.memory_space<vmem>>, vector<1x1x8x8x128xbf16>
    %62 = vector.shape_cast %61 : vector<1x1x8x8x128xbf16> to vector<1x8x8x128xbf16>
    %63 = vector.shape_cast %60 : vector<1x8x8x128xbf16> to vector<1x1x8x8x128xbf16>
    tpu.vector_store %arg7[%c2_48, %c0_49, %c0_50, %c1_51, %c0_52], %63 {strides = array<i32>} : memref<4x1x9x9x128xbf16, #tpu.memory_space<vmem>>, vector<1x1x8x8x128xbf16>,
    %c3 = arith.constant 3 : index
    %c0_53 = arith.constant 0 : index
    %c8_54 = arith.constant 8 : index
    %c0_55 = arith.constant 0 : index
    %c0_56 = arith.constant 0 : index
    %64 = vector.load %arg7[%c3, %c0_53, %c8_54, %c0_55, %c0_56] : memref<4x1x9x9x128xbf16, #tpu.memory_space<vmem>>, vector<1x1x1x9x128xbf16>
    %65 = vector.shape_cast %64 : vector<1x1x1x9x128xbf16> to vector<1x1x9x128xbf16>
    %66 = vector.shape_cast %27 : vector<1x1x9x128xbf16> to vector<1x1x1x9x128xbf16>
    tpu.vector_store %arg7[%c3, %c0_53, %c8_54, %c0_55, %c0_56], %66 {strides = array<i32>} : memref<4x1x9x9x128xbf16, #tpu.memory_space<vmem>>, vector<1x1x1x9x128xbf16>,
    %c3_57 = arith.constant 3 : index
    %c0_58 = arith.constant 0 : index
    %c0_59 = arith.constant 0 : index
    %c8_60 = arith.constant 8 : index
    %c0_61 = arith.constant 0 : index
    %67 = vector.load %arg7[%c3_57, %c0_58, %c0_59, %c8_60, %c0_61] : memref<4x1x9x9x128xbf16, #tpu.memory_space<vmem>>, vector<1x1x9x1x128xbf16>
    %68 = vector.shape_cast %67 : vector<1x1x9x1x128xbf16> to vector<1x9x1x128xbf16>
    %69 = vector.shape_cast %28 : vector<1x9x1x128xbf16> to vector<1x1x9x1x128xbf16>
    tpu.vector_store %arg7[%c3_57, %c0_58, %c0_59, %c8_60, %c0_61], %69 {strides = array<i32>} : memref<4x1x9x9x128xbf16, #tpu.memory_space<vmem>>, vector<1x1x9x1x128xbf16>,
    %70 = vector.extract_strided_slice %30 {offsets = [0, 1, 1, 0, 0, 0], sizes = [1, 1, 1, 8, 8, 128], strides = [1, 1, 1, 1, 1, 1]} : vector<1x2x2x8x8x128xbf16> to vector<1x1x1x8x8x128xbf16>
    %71 = vector.shape_cast %70 : vector<1x1x1x8x8x128xbf16> to vector<1x8x8x128xbf16>
    %c3_62 = arith.constant 3 : index
    %c0_63 = arith.constant 0 : index
    %c0_64 = arith.constant 0 : index
    %c0_65 = arith.constant 0 : index
    %c0_66 = arith.constant 0 : index
    %72 = vector.load %arg7[%c3_62, %c0_63, %c0_64, %c0_65, %c0_66] : memref<4x1x9x9x128xbf16, #tpu.memory_space<vmem>>, vector<1x1x8x8x128xbf16>
    %73 = vector.shape_cast %72 : vector<1x1x8x8x128xbf16> to vector<1x8x8x128xbf16>
    %74 = vector.shape_cast %71 : vector<1x8x8x128xbf16> to vector<1x1x8x8x128xbf16>
    tpu.vector_store %arg7[%c3_62, %c0_63, %c0_64, %c0_65, %c0_66], %74 {strides = array<i32>} : memref<4x1x9x9x128xbf16, #tpu.memory_space<vmem>>, vector<1x1x8x8x128xbf16>,
    %c0_67 = arith.constant 0 : index
    %c0_68 = arith.constant 0 : index
    %c0_69 = arith.constant 0 : index
    %c0_70 = arith.constant 0 : index
    %c0_71 = arith.constant 0 : index
    %75 = vector.load %arg7[%c0_67, %c0_68, %c0_69, %c0_70, %c0_71] : memref<4x1x9x9x128xbf16, #tpu.memory_space<vmem>>, vector<1x1x8x8x128xbf16>
    %76 = vector.shape_cast %75 : vector<1x1x8x8x128xbf16> to vector<1x8x8x128xbf16>
    %77 = vector.shape_cast %76 : vector<1x8x8x128xbf16> to vector<64x128xbf16>
    %c0_72 = arith.constant 0 : index
    %c0_73 = arith.constant 0 : index
    %c0_74 = arith.constant 0 : index
    %78 = vector.load %arg4[%c0_72, %c0_73, %c0_74] : memref<16x128x128xbf16, #tpu.memory_space<vmem>>, vector<1x128x128xbf16>
    %79 = vector.shape_cast %78 : vector<1x128x128xbf16> to vector<128x128xbf16>
    %cst_75 = arith.constant dense<0.000000e+00> : vector<64x128xf32>
    %80 = tpu.matmul %77, %79, %cst_75 {dimension_numbers = #tpu.dot_dimension_numbers<[1], [0], [0], [1], [0, 0, 1, 1], [], []>} : vector<64x128xbf16>, vector<128x128xbf16>, vector<64x128xf32> -> vector<64x128xf32>
    %81 = arith.addf %26, %80 : vector<64x128xf32>
    %c0_76 = arith.constant 0 : index
    %c0_77 = arith.constant 0 : index
    %c0_78 = arith.constant 0 : index
    %c1_79 = arith.constant 1 : index
    %c0_80 = arith.constant 0 : index
    %82 = vector.load %arg7[%c0_76, %c0_77, %c0_78, %c1_79, %c0_80] : memref<4x1x9x9x128xbf16, #tpu.memory_space<vmem>>, vector<1x1x8x8x128xbf16>
    %83 = vector.shape_cast %82 : vector<1x1x8x8x128xbf16> to vector<1x8x8x128xbf16>
    %84 = vector.shape_cast %83 : vector<1x8x8x128xbf16> to vector<64x128xbf16>
    %c2_81 = arith.constant 2 : index
    %c0_82 = arith.constant 0 : index
    %c0_83 = arith.constant 0 : index
    %85 = vector.load %arg4[%c2_81, %c0_82, %c0_83] : memref<16x128x128xbf16, #tpu.memory_space<vmem>>, vector<1x128x128xbf16>
    %86 = vector.shape_cast %85 : vector<1x128x128xbf16> to vector<128x128xbf16>
    %cst_84 = arith.constant dense<0.000000e+00> : vector<64x128xf32>
    %87 = tpu.matmul %84, %86, %cst_84 {dimension_numbers = #tpu.dot_dimension_numbers<[1], [0], [0], [1], [0, 0, 1, 1], [], []>} : vector<64x128xbf16>, vector<128x128xbf16>, vector<64x128xf32> -> vector<64x128xf32>
    %88 = arith.addf %81, %87 : vector<64x128xf32>
    %c0_85 = arith.constant 0 : index
    %c0_86 = arith.constant 0 : index
    %c1_87 = arith.constant 1 : index
    %c0_88 = arith.constant 0 : index
    %c0_89 = arith.constant 0 : index
    %89 = vector.load %arg7[%c0_85, %c0_86, %c1_87, %c0_88, %c0_89] : memref<4x1x9x9x128xbf16, #tpu.memory_space<vmem>>, vector<1x1x8x8x128xbf16>
    %90 = vector.shape_cast %89 : vector<1x1x8x8x128xbf16> to vector<1x8x8x128xbf16>
    %91 = vector.shape_cast %90 : vector<1x8x8x128xbf16> to vector<64x128xbf16>
    %c8_90 = arith.constant 8 : index
    %c0_91 = arith.constant 0 : index
    %c0_92 = arith.constant 0 : index
    %92 = vector.load %arg4[%c8_90, %c0_91, %c0_92] : memref<16x128x128xbf16, #tpu.memory_space<vmem>>, vector<1x128x128xbf16>
    %93 = vector.shape_cast %92 : vector<1x128x128xbf16> to vector<128x128xbf16>
    %cst_93 = arith.constant dense<0.000000e+00> : vector<64x128xf32>
    %94 = tpu.matmul %91, %93, %cst_93 {dimension_numbers = #tpu.dot_dimension_numbers<[1], [0], [0], [1], [0, 0, 1, 1], [], []>} : vector<64x128xbf16>, vector<128x128xbf16>, vector<64x128xf32> -> vector<64x128xf32>
    %95 = arith.addf %88, %94 : vector<64x128xf32>
    %c0_94 = arith.constant 0 : index
    %c0_95 = arith.constant 0 : index
    %c1_96 = arith.constant 1 : index
    %c1_97 = arith.constant 1 : index
    %c0_98 = arith.constant 0 : index
    %96 = vector.load %arg7[%c0_94, %c0_95, %c1_96, %c1_97, %c0_98] : memref<4x1x9x9x128xbf16, #tpu.memory_space<vmem>>, vector<1x1x8x8x128xbf16>
    %97 = vector.shape_cast %96 : vector<1x1x8x8x128xbf16> to vector<1x8x8x128xbf16>
    %98 = vector.shape_cast %97 : vector<1x8x8x128xbf16> to vector<64x128xbf16>
    %c10 = arith.constant 10 : index
    %c0_99 = arith.constant 0 : index
    %c0_100 = arith.constant 0 : index
    %99 = vector.load %arg4[%c10, %c0_99, %c0_100] : memref<16x128x128xbf16, #tpu.memory_space<vmem>>, vector<1x128x128xbf16>
    %100 = vector.shape_cast %99 : vector<1x128x128xbf16> to vector<128x128xbf16>
    %cst_101 = arith.constant dense<0.000000e+00> : vector<64x128xf32>
    %101 = tpu.matmul %98, %100, %cst_101 {dimension_numbers = #tpu.dot_dimension_numbers<[1], [0], [0], [1], [0, 0, 1, 1], [], []>} : vector<64x128xbf16>, vector<128x128xbf16>, vector<64x128xf32> -> vector<64x128xf32>
    %102 = arith.addf %95, %101 : vector<64x128xf32>
    %c1_102 = arith.constant 1 : index
    %c0_103 = arith.constant 0 : index
    %c0_104 = arith.constant 0 : index
    %c0_105 = arith.constant 0 : index
    %c0_106 = arith.constant 0 : index
    %103 = vector.load %arg7[%c1_102, %c0_103, %c0_104, %c0_105, %c0_106] : memref<4x1x9x9x128xbf16, #tpu.memory_space<vmem>>, vector<1x1x8x8x128xbf16>
    %104 = vector.shape_cast %103 : vector<1x1x8x8x128xbf16> to vector<1x8x8x128xbf16>
    %105 = vector.shape_cast %104 : vector<1x8x8x128xbf16> to vector<64x128xbf16>
    %c1_107 = arith.constant 1 : index
    %c0_108 = arith.constant 0 : index
    %c0_109 = arith.constant 0 : index
    %106 = vector.load %arg4[%c1_107, %c0_108, %c0_109] : memref<16x128x128xbf16, #tpu.memory_space<vmem>>, vector<1x128x128xbf16>
    %107 = vector.shape_cast %106 : vector<1x128x128xbf16> to vector<128x128xbf16>
    %cst_110 = arith.constant dense<0.000000e+00> : vector<64x128xf32>
    %108 = tpu.matmul %105, %107, %cst_110 {dimension_numbers = #tpu.dot_dimension_numbers<[1], [0], [0], [1], [0, 0, 1, 1], [], []>} : vector<64x128xbf16>, vector<128x128xbf16>, vector<64x128xf32> -> vector<64x128xf32>
    %109 = arith.addf %102, %108 : vector<64x128xf32>
    %c1_111 = arith.constant 1 : index
    %c0_112 = arith.constant 0 : index
    %c0_113 = arith.constant 0 : index
    %c1_114 = arith.constant 1 : index
    %c0_115 = arith.constant 0 : index
    %110 = vector.load %arg7[%c1_111, %c0_112, %c0_113, %c1_114, %c0_115] : memref<4x1x9x9x128xbf16, #tpu.memory_space<vmem>>, vector<1x1x8x8x128xbf16>
    %111 = vector.shape_cast %110 : vector<1x1x8x8x128xbf16> to vector<1x8x8x128xbf16>
    %112 = vector.shape_cast %111 : vector<1x8x8x128xbf16> to vector<64x128xbf16>
    %c3_116 = arith.constant 3 : index
    %c0_117 = arith.constant 0 : index
    %c0_118 = arith.constant 0 : index
    %113 = vector.load %arg4[%c3_116, %c0_117, %c0_118] : memref<16x128x128xbf16, #tpu.memory_space<vmem>>, vector<1x128x128xbf16>
    %114 = vector.shape_cast %113 : vector<1x128x128xbf16> to vector<128x128xbf16>
    %cst_119 = arith.constant dense<0.000000e+00> : vector<64x128xf32>
    %115 = tpu.matmul %112, %114, %cst_119 {dimension_numbers = #tpu.dot_dimension_numbers<[1], [0], [0], [1], [0, 0, 1, 1], [], []>} : vector<64x128xbf16>, vector<128x128xbf16>, vector<64x128xf32> -> vector<64x128xf32>
    %116 = arith.addf %109, %115 : vector<64x128xf32>
    %c1_120 = arith.constant 1 : index
    %c0_121 = arith.constant 0 : index
    %c1_122 = arith.constant 1 : index
    %c0_123 = arith.constant 0 : index
    %c0_124 = arith.constant 0 : index
    %117 = vector.load %arg7[%c1_120, %c0_121, %c1_122, %c0_123, %c0_124] : memref<4x1x9x9x128xbf16, #tpu.memory_space<vmem>>, vector<1x1x8x8x128xbf16>
    %118 = vector.shape_cast %117 : vector<1x1x8x8x128xbf16> to vector<1x8x8x128xbf16>
    %119 = vector.shape_cast %118 : vector<1x8x8x128xbf16> to vector<64x128xbf16>
    %c9 = arith.constant 9 : index
    %c0_125 = arith.constant 0 : index
    %c0_126 = arith.constant 0 : index
    %120 = vector.load %arg4[%c9, %c0_125, %c0_126] : memref<16x128x128xbf16, #tpu.memory_space<vmem>>, vector<1x128x128xbf16>
    %121 = vector.shape_cast %120 : vector<1x128x128xbf16> to vector<128x128xbf16>
    %cst_127 = arith.constant dense<0.000000e+00> : vector<64x128xf32>
    %122 = tpu.matmul %119, %121, %cst_127 {dimension_numbers = #tpu.dot_dimension_numbers<[1], [0], [0], [1], [0, 0, 1, 1], [], []>} : vector<64x128xbf16>, vector<128x128xbf16>, vector<64x128xf32> -> vector<64x128xf32>
    %123 = arith.addf %116, %122 : vector<64x128xf32>
    %c1_128 = arith.constant 1 : index
    %c0_129 = arith.constant 0 : index
    %c1_130 = arith.constant 1 : index
    %c1_131 = arith.constant 1 : index
    %c0_132 = arith.constant 0 : index
    %124 = vector.load %arg7[%c1_128, %c0_129, %c1_130, %c1_131, %c0_132] : memref<4x1x9x9x128xbf16, #tpu.memory_space<vmem>>, vector<1x1x8x8x128xbf16>
    %125 = vector.shape_cast %124 : vector<1x1x8x8x128xbf16> to vector<1x8x8x128xbf16>
    %126 = vector.shape_cast %125 : vector<1x8x8x128xbf16> to vector<64x128xbf16>
    %c11 = arith.constant 11 : index
    %c0_133 = arith.constant 0 : index
    %c0_134 = arith.constant 0 : index
    %127 = vector.load %arg4[%c11, %c0_133, %c0_134] : memref<16x128x128xbf16, #tpu.memory_space<vmem>>, vector<1x128x128xbf16>
    %128 = vector.shape_cast %127 : vector<1x128x128xbf16> to vector<128x128xbf16>
    %cst_135 = arith.constant dense<0.000000e+00> : vector<64x128xf32>
    %129 = tpu.matmul %126, %128, %cst_135 {dimension_numbers = #tpu.dot_dimension_numbers<[1], [0], [0], [1], [0, 0, 1, 1], [], []>} : vector<64x128xbf16>, vector<128x128xbf16>, vector<64x128xf32> -> vector<64x128xf32>
    %130 = arith.addf %123, %129 : vector<64x128xf32>
    %c2_136 = arith.constant 2 : index
    %c0_137 = arith.constant 0 : index
    %c0_138 = arith.constant 0 : index
    %c0_139 = arith.constant 0 : index
    %c0_140 = arith.constant 0 : index
    %131 = vector.load %arg7[%c2_136, %c0_137, %c0_138, %c0_139, %c0_140] : memref<4x1x9x9x128xbf16, #tpu.memory_space<vmem>>, vector<1x1x8x8x128xbf16>
    %132 = vector.shape_cast %131 : vector<1x1x8x8x128xbf16> to vector<1x8x8x128xbf16>
    %133 = vector.shape_cast %132 : vector<1x8x8x128xbf16> to vector<64x128xbf16>
    %c4 = arith.constant 4 : index
    %c0_141 = arith.constant 0 : index
    %c0_142 = arith.constant 0 : index
    %134 = vector.load %arg4[%c4, %c0_141, %c0_142] : memref<16x128x128xbf16, #tpu.memory_space<vmem>>, vector<1x128x128xbf16>
    %135 = vector.shape_cast %134 : vector<1x128x128xbf16> to vector<128x128xbf16>
    %cst_143 = arith.constant dense<0.000000e+00> : vector<64x128xf32>
    %136 = tpu.matmul %133, %135, %cst_143 {dimension_numbers = #tpu.dot_dimension_numbers<[1], [0], [0], [1], [0, 0, 1, 1], [], []>} : vector<64x128xbf16>, vector<128x128xbf16>, vector<64x128xf32> -> vector<64x128xf32>
    %137 = arith.addf %130, %136 : vector<64x128xf32>
    %c2_144 = arith.constant 2 : index
    %c0_145 = arith.constant 0 : index
    %c0_146 = arith.constant 0 : index
    %c1_147 = arith.constant 1 : index
    %c0_148 = arith.constant 0 : index
    %138 = vector.load %arg7[%c2_144, %c0_145, %c0_146, %c1_147, %c0_148] : memref<4x1x9x9x128xbf16, #tpu.memory_space<vmem>>, vector<1x1x8x8x128xbf16>
    %139 = vector.shape_cast %138 : vector<1x1x8x8x128xbf16> to vector<1x8x8x128xbf16>
    %140 = vector.shape_cast %139 : vector<1x8x8x128xbf16> to vector<64x128xbf16>
    %c6 = arith.constant 6 : index
    %c0_149 = arith.constant 0 : index
    %c0_150 = arith.constant 0 : index
    %141 = vector.load %arg4[%c6, %c0_149, %c0_150] : memref<16x128x128xbf16, #tpu.memory_space<vmem>>, vector<1x128x128xbf16>
    %142 = vector.shape_cast %141 : vector<1x128x128xbf16> to vector<128x128xbf16>
    %cst_151 = arith.constant dense<0.000000e+00> : vector<64x128xf32>
    %143 = tpu.matmul %140, %142, %cst_151 {dimension_numbers = #tpu.dot_dimension_numbers<[1], [0], [0], [1], [0, 0, 1, 1], [], []>} : vector<64x128xbf16>, vector<128x128xbf16>, vector<64x128xf32> -> vector<64x128xf32>
    %144 = arith.addf %137, %143 : vector<64x128xf32>
    %c2_152 = arith.constant 2 : index
    %c0_153 = arith.constant 0 : index
    %c1_154 = arith.constant 1 : index
    %c0_155 = arith.constant 0 : index
    %c0_156 = arith.constant 0 : index
    %145 = vector.load %arg7[%c2_152, %c0_153, %c1_154, %c0_155, %c0_156] : memref<4x1x9x9x128xbf16, #tpu.memory_space<vmem>>, vector<1x1x8x8x128xbf16>
    %146 = vector.shape_cast %145 : vector<1x1x8x8x128xbf16> to vector<1x8x8x128xbf16>
    %147 = vector.shape_cast %146 : vector<1x8x8x128xbf16> to vector<64x128xbf16>
    %c12 = arith.constant 12 : index
    %c0_157 = arith.constant 0 : index
    %c0_158 = arith.constant 0 : index
    %148 = vector.load %arg4[%c12, %c0_157, %c0_158] : memref<16x128x128xbf16, #tpu.memory_space<vmem>>, vector<1x128x128xbf16>
    %149 = vector.shape_cast %148 : vector<1x128x128xbf16> to vector<128x128xbf16>
    %cst_159 = arith.constant dense<0.000000e+00> : vector<64x128xf32>
    %150 = tpu.matmul %147, %149, %cst_159 {dimension_numbers = #tpu.dot_dimension_numbers<[1], [0], [0], [1], [0, 0, 1, 1], [], []>} : vector<64x128xbf16>, vector<128x128xbf16>, vector<64x128xf32> -> vector<64x128xf32>
    %151 = arith.addf %144, %150 : vector<64x128xf32>
    %c2_160 = arith.constant 2 : index
    %c0_161 = arith.constant 0 : index
    %c1_162 = arith.constant 1 : index
    %c1_163 = arith.constant 1 : index
    %c0_164 = arith.constant 0 : index
    %152 = vector.load %arg7[%c2_160, %c0_161, %c1_162, %c1_163, %c0_164] : memref<4x1x9x9x128xbf16, #tpu.memory_space<vmem>>, vector<1x1x8x8x128xbf16>
    %153 = vector.shape_cast %152 : vector<1x1x8x8x128xbf16> to vector<1x8x8x128xbf16>
    %154 = vector.shape_cast %153 : vector<1x8x8x128xbf16> to vector<64x128xbf16>
    %c14 = arith.constant 14 : index
    %c0_165 = arith.constant 0 : index
    %c0_166 = arith.constant 0 : index
    %155 = vector.load %arg4[%c14, %c0_165, %c0_166] : memref<16x128x128xbf16, #tpu.memory_space<vmem>>, vector<1x128x128xbf16>
    %156 = vector.shape_cast %155 : vector<1x128x128xbf16> to vector<128x128xbf16>
    %cst_167 = arith.constant dense<0.000000e+00> : vector<64x128xf32>
    %157 = tpu.matmul %154, %156, %cst_167 {dimension_numbers = #tpu.dot_dimension_numbers<[1], [0], [0], [1], [0, 0, 1, 1], [], []>} : vector<64x128xbf16>, vector<128x128xbf16>, vector<64x128xf32> -> vector<64x128xf32>
    %158 = arith.addf %151, %157 : vector<64x128xf32>
    %c3_168 = arith.constant 3 : index
    %c0_169 = arith.constant 0 : index
    %c0_170 = arith.constant 0 : index
    %c0_171 = arith.constant 0 : index
    %c0_172 = arith.constant 0 : index
    %159 = vector.load %arg7[%c3_168, %c0_169, %c0_170, %c0_171, %c0_172] : memref<4x1x9x9x128xbf16, #tpu.memory_space<vmem>>, vector<1x1x8x8x128xbf16>
    %160 = vector.shape_cast %159 : vector<1x1x8x8x128xbf16> to vector<1x8x8x128xbf16>
    %161 = vector.shape_cast %160 : vector<1x8x8x128xbf16> to vector<64x128xbf16>
    %c5 = arith.constant 5 : index
    %c0_173 = arith.constant 0 : index
    %c0_174 = arith.constant 0 : index
    %162 = vector.load %arg4[%c5, %c0_173, %c0_174] : memref<16x128x128xbf16, #tpu.memory_space<vmem>>, vector<1x128x128xbf16>
    %163 = vector.shape_cast %162 : vector<1x128x128xbf16> to vector<128x128xbf16>
    %cst_175 = arith.constant dense<0.000000e+00> : vector<64x128xf32>
    %164 = tpu.matmul %161, %163, %cst_175 {dimension_numbers = #tpu.dot_dimension_numbers<[1], [0], [0], [1], [0, 0, 1, 1], [], []>} : vector<64x128xbf16>, vector<128x128xbf16>, vector<64x128xf32> -> vector<64x128xf32>
    %165 = arith.addf %158, %164 : vector<64x128xf32>
    %c3_176 = arith.constant 3 : index
    %c0_177 = arith.constant 0 : index
    %c0_178 = arith.constant 0 : index
    %c1_179 = arith.constant 1 : index
    %c0_180 = arith.constant 0 : index
    %166 = vector.load %arg7[%c3_176, %c0_177, %c0_178, %c1_179, %c0_180] : memref<4x1x9x9x128xbf16, #tpu.memory_space<vmem>>, vector<1x1x8x8x128xbf16>
    %167 = vector.shape_cast %166 : vector<1x1x8x8x128xbf16> to vector<1x8x8x128xbf16>
    %168 = vector.shape_cast %167 : vector<1x8x8x128xbf16> to vector<64x128xbf16>
    %c7 = arith.constant 7 : index
    %c0_181 = arith.constant 0 : index
    %c0_182 = arith.constant 0 : index
    %169 = vector.load %arg4[%c7, %c0_181, %c0_182] : memref<16x128x128xbf16, #tpu.memory_space<vmem>>, vector<1x128x128xbf16>
    %170 = vector.shape_cast %169 : vector<1x128x128xbf16> to vector<128x128xbf16>
    %cst_183 = arith.constant dense<0.000000e+00> : vector<64x128xf32>
    %171 = tpu.matmul %168, %170, %cst_183 {dimension_numbers = #tpu.dot_dimension_numbers<[1], [0], [0], [1], [0, 0, 1, 1], [], []>} : vector<64x128xbf16>, vector<128x128xbf16>, vector<64x128xf32> -> vector<64x128xf32>
    %172 = arith.addf %165, %171 : vector<64x128xf32>
    %c3_184 = arith.constant 3 : index
    %c0_185 = arith.constant 0 : index
    %c1_186 = arith.constant 1 : index
    %c0_187 = arith.constant 0 : index
    %c0_188 = arith.constant 0 : index
    %173 = vector.load %arg7[%c3_184, %c0_185, %c1_186, %c0_187, %c0_188] : memref<4x1x9x9x128xbf16, #tpu.memory_space<vmem>>, vector<1x1x8x8x128xbf16>
    %174 = vector.shape_cast %173 : vector<1x1x8x8x128xbf16> to vector<1x8x8x128xbf16>
    %175 = vector.shape_cast %174 : vector<1x8x8x128xbf16> to vector<64x128xbf16>
    %c13 = arith.constant 13 : index
    %c0_189 = arith.constant 0 : index
    %c0_190 = arith.constant 0 : index
    %176 = vector.load %arg4[%c13, %c0_189, %c0_190] : memref<16x128x128xbf16, #tpu.memory_space<vmem>>, vector<1x128x128xbf16>
    %177 = vector.shape_cast %176 : vector<1x128x128xbf16> to vector<128x128xbf16>
    %cst_191 = arith.constant dense<0.000000e+00> : vector<64x128xf32>
    %178 = tpu.matmul %175, %177, %cst_191 {dimension_numbers = #tpu.dot_dimension_numbers<[1], [0], [0], [1], [0, 0, 1, 1], [], []>} : vector<64x128xbf16>, vector<128x128xbf16>, vector<64x128xf32> -> vector<64x128xf32>
    %179 = arith.addf %172, %178 : vector<64x128xf32>
    %c3_192 = arith.constant 3 : index
    %c0_193 = arith.constant 0 : index
    %c1_194 = arith.constant 1 : index
    %c1_195 = arith.constant 1 : index
    %c0_196 = arith.constant 0 : index
    %180 = vector.load %arg7[%c3_192, %c0_193, %c1_194, %c1_195, %c0_196] : memref<4x1x9x9x128xbf16, #tpu.memory_space<vmem>>, vector<1x1x8x8x128xbf16>
    %181 = vector.shape_cast %180 : vector<1x1x8x8x128xbf16> to vector<1x8x8x128xbf16>
    %182 = vector.shape_cast %181 : vector<1x8x8x128xbf16> to vector<64x128xbf16>
    %c15 = arith.constant 15 : index
    %c0_197 = arith.constant 0 : index
    %c0_198 = arith.constant 0 : index
    %183 = vector.load %arg4[%c15, %c0_197, %c0_198] : memref<16x128x128xbf16, #tpu.memory_space<vmem>>, vector<1x128x128xbf16>
    %184 = vector.shape_cast %183 : vector<1x128x128xbf16> to vector<128x128xbf16>
    %cst_199 = arith.constant dense<0.000000e+00> : vector<64x128xf32>
    %185 = tpu.matmul %182, %184, %cst_199 {dimension_numbers = #tpu.dot_dimension_numbers<[1], [0], [0], [1], [0, 0, 1, 1], [], []>} : vector<64x128xbf16>, vector<128x128xbf16>, vector<64x128xf32> -> vector<64x128xf32>
    %186 = arith.addf %179, %185 : vector<64x128xf32>
    %187 = vector.shape_cast %186 : vector<64x128xf32> to vector<1x8x8x128xf32>
    %c0_200 = arith.constant 0 : index
    %c0_201 = arith.constant 0 : index
    %c0_202 = arith.constant 0 : index
    %c0_203 = arith.constant 0 : index
    %188 = vector.load %arg6[%c0_200, %c0_201, %c0_202, %c0_203] : memref<1x8x8x128xf32, #tpu.memory_space<vmem>>, vector<1x8x8x128xf32>
    tpu.vector_store %arg6[%c0_200, %c0_201, %c0_202, %c0_203], %187 {strides = array<i32>} : memref<1x8x8x128xf32, #tpu.memory_space<vmem>>, vector<1x8x8x128xf32>,
    return
  }
  func.func @transform_0(%arg0: i32) -> (i32, i32, i32) {
    %c0_i32 = arith.constant 0 : i32
    %c0_i32_0 = arith.constant 0 : i32
    %c0_i32_1 = arith.constant 0 : i32
    return %arg0, %c0_i32, %c0_i32_0 : i32, i32, i32
  }
  func.func @transform_1(%arg0: i32) -> (i32, i32) {
    %c0_i32 = arith.constant 0 : i32
    %c0_i32_0 = arith.constant 0 : i32
    %c0_i32_1 = arith.constant 0 : i32
    return %c0_i32, %c0_i32_0 : i32, i32
  }
  func.func @transform_2(%arg0: i32) -> (i32, i32) {
    %c0_i32 = arith.constant 0 : i32
    %c0_i32_0 = arith.constant 0 : i32
    %c0_i32_1 = arith.constant 0 : i32
    return %c0_i32, %c0_i32_0 : i32, i32
  }
  func.func @transform_3(%arg0: i32) -> (i32, i32, i32) {
    %c0_i32 = arith.constant 0 : i32
    %c0_i32_0 = arith.constant 0 : i32
    %c0_i32_1 = arith.constant 0 : i32
    %c0_i32_2 = arith.constant 0 : i32
    return %c0_i32, %c0_i32_0, %c0_i32_1 : i32, i32, i32
  }
  func.func @transform_4(%arg0: i32) -> (i32, i32) {
    %c0_i32 = arith.constant 0 : i32
    %c0_i32_0 = arith.constant 0 : i32
    %c0_i32_1 = arith.constant 0 : i32
    return %c0_i32, %c0_i32_0 : i32, i32
  }
  func.func @transform_5(%arg0: i32) -> (i32, i32, i32, i32) {
    %c0_i32 = arith.constant 0 : i32
    %c0_i32_0 = arith.constant 0 : i32
    %c0_i32_1 = arith.constant 0 : i32
    %c0_i32_2 = arith.constant 0 : i32
    return %arg0, %c0_i32, %c0_i32_0, %c0_i32_1 : i32, i32, i32, i32
  }
}

</mosaic_0001>

<bundles_post_ra>
// kernel: optimized_dis_block.1
= control target key start
LH: loop header
LB: loop body
LE: loop exit
PB: predicated region body
PF: predicated region fallthrough
CT: control target
= control target key end

     0   :  { %10 = vsyncpa [#allocation4], 0  ;;  %s7779_s0 = inlined_call_operand.vmem [shape: bf16[4,256,36], index: 0, kind: input, shape index: {}]   ;;  %s7780_s1 = inlined_call_operand.vmem [shape: bf16[36,256], index: 1, kind: input, shape index: {}]   ;;  %s7781_s2 = inlined_call_operand.vmem [shape: f32[1,128], index: 2, kind: input, shape index: {}]   ;;  %s7782_s3 = inlined_call_operand.vmem [shape: bf16[16,128,128], index: 3, kind: input, shape index: {}]   ;;  %s7783_s4 = inlined_call_operand.vmem [shape: f32[1,128], index: 4, kind: input, shape index: {}]   ;;  %s7784_s5 = inlined_call_operand.hbm [shape: f32[4,8,8,128], index: 5, kind: output, shape index: {}]  }
   0x1   :  { %12 = vsyncpa [#allocation4 + $0x1], 0  ;;  %s6402_s18 = smov 0   ;;  %s6404_s19 = smov 0  }
   0x2   :  { %s6406_s20 = smov 0   ;;  %s6408_s21 = smov 0  }
   0x3 LB: > { %s6423_s22 = sadd.s32 4294967295, %s6366_s21   ;;  %s4950_s23 = sadd.s32 4294967294, %s6366_s21   ;;  %s6366_s21 = sphi %s6408_s21, %s7796_s21   ;;  %s6362_s20 = sphi %s6406_s20, %s7795_s20   ;;  %s6358_s19 = sphi %s6404_s19, %s7794_s19   ;;  %s6354_s18 = sphi %s6402_s18, %s7793_s18  }
   0x4   : > { %s6427_s24 = sadd.s32 1, %s6366_s21   ;;  %s135_s25 = sadd.s32 1, %s6362_s20 }
   0x5   : > { %s132_s26 = ssub.s32 %s6366_s21, %s6427_s24  ;;  %p145_p0 = scmp.ne.s32.totalorder %s6362_s20, %s6358_s19 }
   0x6   : > { %p133_p1 = scmp.eq.s32.totalorder %s132_s26, 0  ;;  %p146_p2 = scmp.eq.s32.totalorder %s6423_s22, 3 }
   0x7   : > { %p151_p3 = scmp.ne.s32.totalorder %s6358_s19, %s6354_s18  ;;  %p152_p4 = scmp.eq.s32.totalorder %s4950_s23, 3 }
   0x8   : > { %s6438_s27 = scalar_select %p133_p1, %s6362_s20, %s135_s25  }
   0x9   : > { %p6440_p5 = por %p146_p2, %p145_p0  ;;  %p6444_p6 = por %p152_p4, %p151_p3 }
   0xa   : > { %p4953_p7 = scmp.ge.s32.totalorder %s6366_s21, 1  ;;  %p190_p8 = scmp.lt.s32.totalorder %s6366_s21, 5 }
   0xc   : > { %p191_p9 = pnand %p4953_p7, %p190_p8 }
   0xd   : > { %v6119_v0 = vld [vmem:[%s7780_s1 + $0x4] ss:$8 sps:$4 sm:$0xff] (!%p191_p9)   ;;  %v6121_v1 = vld [vmem:[%s7780_s1] ss:$8 sps:$4 sm:$0xff] (!%p191_p9)   ;;  %v6368_v2 = vmov (!%p191_p9), 0   ;;  %p218_p10 = scmp.lt.s32.totalorder (!%p191_p9), %s6423_s22, 3 }
   0xe   : > { %194 = sbr.rel (%p191_p9) target bundleno = 797 (0x31d), region = 40  ;;  %454 = vmatprep.mubr.bf16.mxu0 (!%p191_p9), %v6368_v2  ;;  %837 = vst [vmem:[#allocation2] sm:$0xf] (!%p191_p9), %v6368_v2  ;;  %1004 = vst [vmem:[#allocation2 + $0x48] sm:$0xf] (!%p191_p9), %v6368_v2  ;;  %422 = vmatprep.subr.bf16.mxu0 (!%p191_p9), %v6119_v0  ;;  %vm415_vm0 = vcmask (!%p191_p9), 1041408  }
   0xf   : > { %1045 = vst [vmem:[#allocation2 + $0xd0] sm:$0xf] (!%p191_p9), %v6368_v2  ;;  %1206 = vst [vmem:[#allocation2 + $0x118] sm:$0xf] (!%p191_p9), %v6368_v2  ;;  %v6122_v3 = vld [vmem:[%s7780_s1 + $0x14] ss:$8 sps:$4 sm:$0xff] (!%p191_p9)   ;;  %423 = vmatpush1.bf16.msra.mxu0 (!%p191_p9), %v6121_v1 }
  0x10   : > { %v6124_v4 = vld [vmem:[%s7780_s1 + $0x10] ss:$8 sps:$4 sm:$0xff] (!%p191_p9)   ;;  %v260_v5 = vld [vmem:[%s7780_s1 + $0x20] sm:$0x33] (!%p191_p9)  ;;  %424 = vmatprep.subr.bf16.mxu0 (!%p191_p9), %v6122_v3  ;;  %vm366_vm1 = vcmask (!%p191_p9), 293888   ;;  %v6144_v22 = vld [vmem:[%s7782_s3 + $0x8] sm:$0xff] (!%p191_p9)  }
  0x11   : > { %v4978_v6 = vcombine.high (!%p191_p9), %v260_v5, %v260_v5  ;;  %v4977_v7 = vcombine.low (!%p191_p9), %v260_v5, %v260_v5  ;;  %v6143_v8 = vld [vmem:[%s7782_s3] sm:$0xff] (!%p191_p9)   ;;  %vm838_vm2 = vcmask (!%p191_p9), 1040384   ;;  %vm839_vm3 = vsmask.f32 (!%p191_p9), 256  ;;  %v847_v24 = vld [vmem:[#allocation2 + $0x8] sm:$0x1] (!%p191_p9) }
  0x12   : > { %5693 = vmatprep.subr.bf16.mxu1 (!%p191_p9), %v6143_v8  ;;  %vm6517_vm4 = vmand (!%p191_p9), %vm838_vm2, %vm839_vm3  ;;  %v6145_v26 = vld [vmem:[%s7782_s3 + $0x10] sm:$0xff] (!%p191_p9)   ;;  %v6146_v30 = vld [vmem:[%s7782_s3 + $0x18] sm:$0xff] (!%p191_p9)   ;;  %vm952_vm5 = vcmask (!%p191_p9), 1043456   ;;  %vm953_vm6 = vsmask.f32 (!%p191_p9), 7938  ;;  %s215_s11 = sand.u32 (!%p191_p9), 1, %s6358_s19  }
  0x13   : > { %425 = vmatpush1.bf16.msra.mxu0 (!%p191_p9), %v6124_v4  ;;  %v417_v9 = vsel (!%p191_p9), %vm415_vm0, %v4977_v7, 0  ;;  %5694 = vmatpush3.bf16.msra.mxu1 (!%p191_p9), %v6143_v8  ;;  %v848_v25 = vsel (!%p191_p9), %vm6517_vm4, 0, %v847_v24  ;;  %v850_v27 = vld [vmem:[#allocation2 + $0x10] sm:$0x1] (!%p191_p9)  ;;  %v853_v31 = vld [vmem:[#allocation2 + $0x18] sm:$0x1] (!%p191_p9)  ;;  %vm6638_vm7 = vmand (!%p191_p9), %vm952_vm5, %vm953_vm6 }
  0x14   : > { %4979 = vmatprep.subr.msk.bf16.mxu0 (!%p191_p9), %vm415_vm0, %v4978_v6  ;;  %5695 = vmatprep.subr.bf16.mxu1 (!%p191_p9), %v6144_v22  ;;  %849 = vst [vmem:[#allocation2 + $0x8] sm:$0x1] (!%p191_p9), %v848_v25  ;;  %v851_v28 = vsel (!%p191_p9), %vm6517_vm4, 0, %v850_v27  ;;  %v6147_v32 = vld [vmem:[%s7782_s3 + $0x20] sm:$0xff] (!%p191_p9)   ;;  %v854_v34 = vsel (!%p191_p9), %vm6517_vm4, 0, %v853_v31  ;;  %v6148_v39 = vld [vmem:[%s7782_s3 + $0x28] sm:$0xff] (!%p191_p9)  }
  0x15   : > { %s219_s15 = scalar_select %p218_p10, %s6423_s22, 3  ;;  %852 = vst [vmem:[#allocation2 + $0x10] sm:$0x1] %v851_v28  ;;  %v844_v33 = vld [vmem:[#allocation2] sm:$0x1]  ;;  %v6149_v44 = vld [vmem:[%s7782_s3 + $0x30] sm:$0xff]  }
  0x16   : > { %v845_v35 = vsel %vm6517_vm4, 0, %v844_v33  ;;  %855 = vst [vmem:[#allocation2 + $0x18] sm:$0x1] %v854_v34  ;;  %v856_v36 = vld [vmem:[#allocation2 + $0x20] sm:$0x1]  ;;  %v6151_v48 = vld [vmem:[%s7782_s3 + $0x38] sm:$0xff]  }
  0x17   : > { %s5467_s16 = sshll.u32 %s219_s15, 7  ;;  %427 = vmatpush1.bf16.msra.mxu0 %v417_v9  ;;  %5696 = vmatpush3.bf16.msra.mxu1 %v6144_v22  ;;  %846 = vst [vmem:[#allocation2] sm:$0x1] %v845_v35  ;;  %v857_v37 = vsel %vm6517_vm4, 0, %v856_v36  ;;  %v841_v40 = vld [vmem:[#allocation2 + $0x4] sm:$0x1] }
  0x18   : > { %s6475_s25 = scalar_lea.vmem %s7779_s0, %s5467_s16  ;;  %5697 = vmatprep.subr.bf16.mxu1 %v6145_v26  ;;  %858 = vst [vmem:[#allocation2 + $0x20] sm:$0x1] %v857_v37  ;;  %v842_v41 = vsel %vm6517_vm4, 0, %v841_v40  ;;  %v859_v42 = vld [vmem:[#allocation2 + $0x28] sm:$0x1]  ;;  %v6570_v51 = vld [vmem:[%s7782_s3 + $0x80] sm:$0xff]  }
  0x19   : > { %v6127_v10 = vld [vmem:[%s6475_s25] sm:$0xff]   ;;  %v6128_v11 = vld [vmem:[%s6475_s25 + $0x8] sm:$0xff]   ;;  %v6129_v12 = vld [vmem:[%s6475_s25 + $0x10] sm:$0xff]   ;;  %843 = vst [vmem:[#allocation2 + $0x4] sm:$0x1] %v842_v41  ;;  %v860_v43 = vsel %vm6517_vm4, 0, %v859_v42 }
  0x1a   : > { %4980 = vmatmul.mubr.msk.bf16.vlgmr.msra.gmra.mrb[0].mxu0 %vm366_vm1, %v6127_v10  ;;  %v6130_v13 = vld [vmem:[%s6475_s25 + $0x18] sm:$0xff]   ;;  %v6131_v14 = vld [vmem:[%s6475_s25 + $0x20] sm:$0xff]   ;;  %v6132_v15 = vld [vmem:[%s6475_s25 + $0x28] sm:$0xff]   ;;  %861 = vst [vmem:[#allocation2 + $0x28] sm:$0x1] %v860_v43  ;;  %s5500_s13 = sshll.u32 %s6423_s22, 10 }
  0x1b   : > { %464 = vmatprep.mubr.bf16.mxu0 %v6368_v2  ;;  %v6133_v16 = vld [vmem:[%s6475_s25 + $0x30] sm:$0xff]   ;;  %v6134_v17 = vld [vmem:[%s6475_s25 + $0x38] sm:$0xff]   ;;  %v6135_v18 = vld [vmem:[%s6475_s25 + $0x40] sm:$0xff]   ;;  %5698 = vmatpush3.bf16.msra.mxu1 %v6145_v26  ;;  %vm1431_vm8 = vsmask.f32 3328  ;;  %s7732_s17 = scalar_lea.hbm %s7784_s5, %s5500_s13  ;;  %s7738_s22 = scalar_lea.sflag [#allocation4], %s215_s11 }
  0x1c   : > { %v6136_v19 = vld [vmem:[%s6475_s25 + $0x48] sm:$0xff]   ;;  %v6137_v20 = vld [vmem:[%s6475_s25 + $0x50] sm:$0xff]   ;;  %v6138_v21 = vld [vmem:[%s6475_s25 + $0x58] sm:$0xff]   ;;  %5699 = vmatprep.subr.bf16.mxu1 %v6146_v30  ;;  %vm1432_vm9 = vsmask.f32 7440  ;;  %s6369_s26 = smov [#allocation3]  }
  0x1d   : > { %v6139_v29 = vld [vmem:[%s6475_s25 + $0x60] sm:$0xff]   ;;  %v6140_v38 = vld [vmem:[%s6475_s25 + $0x68] sm:$0xff]   ;;  %v862_v45 = vld [vmem:[#allocation2 + $0x30] sm:$0x1]  ;;  %s6308_s30 = sshll.u32 %s6369_s26, 4  ;;  %s6309_s30 = int_to_ptr.vmem [resolvable:$false] %s6308_s30 }
  0x1e   : > { %v6141_v46 = vld [vmem:[%s6475_s25 + $0x70] sm:$0xff]   ;;  %v863_v47 = vsel %vm6517_vm4, 0, %v862_v45  ;;  %v865_v49 = vld [vmem:[#allocation2 + $0x38] sm:$0x1]  ;;  %v868_v52 = vld [vmem:[#allocation2 + $0x40] sm:$0x1] }
  0x1f   : > { %5700 = vmatpush3.bf16.msra.mxu1 %v6146_v30  ;;  %864 = vst [vmem:[#allocation2 + $0x30] sm:$0x1] %v863_v47  ;;  %v866_v50 = vsel %vm6517_vm4, 0, %v865_v49  ;;  %v6142_v53 = vld [vmem:[%s6475_s25 + $0x78] sm:$0xff]   ;;  %v869_v54 = vsel %vm6517_vm4, 0, %v868_v52  ;;  %v6152_v55 = vld [vmem:[%s7782_s3 + $0x40] sm:$0xff]   ;;  %vm6712_vm10 = vmor %vm1431_vm8, %vm1432_vm9 }
  0x20   : > { %5701 = vmatprep.subr.bf16.mxu1 %v6147_v32  ;;  %867 = vst [vmem:[#allocation2 + $0x38] sm:$0x1] %v866_v50  ;;  %870 = vst [vmem:[#allocation2 + $0x40] sm:$0x1] %v869_v54  ;;  %5789 = vmatprep.subr.bf16.mxu0 %v6152_v55  ;;  %v6159_v56 = vld [vmem:[%s7782_s3 + $0x48] sm:$0xff]   ;;  %v6165_v57 = vld [vmem:[%s7782_s3 + $0x50] sm:$0xff]  }
  0x21   : > { %5790 = vmatpush3.bf16.msra.mxu0 %v6152_v55  ;;  %v1050_v58 = vld [vmem:[#allocation2 + $0x90] sm:$0x1]  ;;  %v1053_v60 = vld [vmem:[#allocation2 + $0x98] sm:$0x1]  ;;  %v1056_v62 = vld [vmem:[#allocation2 + $0xa0] sm:$0x1] }
  0x22   : > { %4981 = vmatmul.mubr.msk.bf16.gmra.mrb[4].mxu0 %vm366_vm1, %v6128_v11  ;;  %5791 = vmatprep.subr.bf16.mxu0 %v6159_v56  ;;  %v1051_v59 = vsel %vm6517_vm4, 0, %v1050_v58  ;;  %v1054_v61 = vsel %vm6517_vm4, 0, %v1053_v60  ;;  %v1057_v63 = vsel %vm6517_vm4, 0, %v1056_v62  ;;  %v1059_v0 = vld [vmem:[#allocation2 + $0xa8] sm:$0x1]  ;;  %v6176_v9 = vld [vmem:[%s7782_s3 + $0x60] sm:$0xff]  }
  0x23   : > { %474 = vmatprep.mubr.bf16.mxu0 %v6368_v2  ;;  %5702 = vmatpush3.bf16.msra.mxu1 %v6147_v32  ;;  %1052 = vst [vmem:[#allocation2 + $0x90] sm:$0x1] %v1051_v59  ;;  %1055 = vst [vmem:[#allocation2 + $0x98] sm:$0x1] %v1054_v61  ;;  %v1060_v1 = vsel %vm6517_vm4, 0, %v1059_v0  ;;  %v6267_v23 = vld [vmem:[%s7782_s3 + $0x3a0] sm:$0xff]  }
  0x24   : > { %5703 = vmatprep.subr.bf16.mxu1 %v6148_v39  ;;  %1058 = vst [vmem:[#allocation2 + $0xa0] sm:$0x1] %v1057_v63  ;;  %1061 = vst [vmem:[#allocation2 + $0xa8] sm:$0x1] %v1060_v1  ;;  %v1062_v3 = vld [vmem:[#allocation2 + $0xb0] sm:$0x1] }
  0x25   : > { %5792 = vmatpush3.bf16.msra.mxu0 %v6159_v56  ;;  %v1063_v4 = vsel %vm6517_vm4, 0, %v1062_v3  ;;  %v1065_v5 = vld [vmem:[#allocation2 + $0xb8] sm:$0x1]  ;;  %v1068_v7 = vld [vmem:[#allocation2 + $0xc0] sm:$0x1]  ;;  %s4954_s25 = sshll.u32 %s215_s11, 6 }
  0x26   : > { %5793 = vmatprep.subr.bf16.mxu0 %v6165_v57  ;;  %1064 = vst [vmem:[#allocation2 + $0xb0] sm:$0x1] %v1063_v4  ;;  %v1066_v6 = vsel %vm6517_vm4, 0, %v1065_v5  ;;  %v1069_v8 = vsel %vm6517_vm4, 0, %v1068_v7  ;;  %v1071_v10 = vld [vmem:[#allocation2 + $0xc8] sm:$0x1] }
  0x27   : > { %5704 = vmatpush3.bf16.msra.mxu1 %v6148_v39  ;;  %1067 = vst [vmem:[#allocation2 + $0xb8] sm:$0x1] %v1066_v6  ;;  %1070 = vst [vmem:[#allocation2 + $0xc0] sm:$0x1] %v1069_v8  ;;  %v1072_v11 = vsel %vm6517_vm4, 0, %v1071_v10  ;;  %s217_s12 = scalar_lea.vmem [#allocation3], %s4954_s25 }
  0x28   : > { %5705 = vmatprep.subr.bf16.mxu1 %v6149_v44  ;;  %1073 = vst [vmem:[#allocation2 + $0xc8] sm:$0x1] %v1072_v11  ;;  %v1415_v35 = vld [vmem:[#allocation2] sm:$0xf]  ;;  %v955_v37 = vld [vmem:[#allocation2 + $0x8] sm:$0xf] }
  0x29   : > { %5794 = vmatpush3.bf16.msra.mxu0 %v6165_v57  ;;  %v964_v47 = vld [vmem:[#allocation2 + $0x14] sm:$0x1]  ;;  %v1435_v49 = vshrl.u32 %v1415_v35, 16  ;;  %v1438_v50 = vshll.u32 %v1415_v35, 16  ;;  %v970_v63 = vld [vmem:[#allocation2 + $0x1c] sm:$0x1] }
  0x2a   : > { %4982 = vmatmul.mubr.msk.bf16.gmra.mrb[8].mxu0 %vm366_vm1, %v6129_v12  ;;  %v6181_v12 = vld [vmem:[%s7782_s3 + $0x68] sm:$0xff]   ;;  %v967_v6 = vld [vmem:[#allocation2 + $0x18] sm:$0xf]  ;;  %v976_v10 = vld [vmem:[#allocation2 + $0x24] sm:$0x1]  ;;  %s4888_s14 = sshll.u32 %s217_s12, 4  ;;  %s7734_s14 = int_to_ptr.vmem [resolvable:$true] %s4888_s14 }
  0x2b   : > { %484 = vmatprep.mubr.bf16.mxu0 %v6368_v2  ;;  %5706 = vmatpush3.bf16.msra.mxu1 %v6149_v44  ;;  %v1440_v3 = vrot.slane %v1438_v50, 5  ;;  %s6304_s23 = scalar_lea.vmem %s7734_s14, 1024  ;;  %s6310_s6 = scalar_lea.vmem %s6309_s30, 2048 }
  0x2c   : > { %5707 = vmatprep.subr.bf16.mxu1 %v6151_v48  ;;  %p6305_p11 = scmp.ne.s32.totalorder %s7734_s14, %s6304_s23  ;;  %p6311_p0 = scmp.lt.s32.totalorder %s7734_s14, %s6309_s30 }
  0x2d   : > { %p6312_p1 = scmp.lt.s32.totalorder %s6310_s6, %s6304_s23 }
  0x2e   : > { %p6306_p12 = pnand %p6305_p11, %p6440_p5 }
  0x2f   : > { %5708 = vmatpush3.bf16.msra.mxu1 %v6151_v48  ;;  %p6313_p2 = por %p6312_p1, %p6311_p0 }
  0x30   : > { %5717 = vmatprep.subr.bf16.mxu1 %v6570_v51  ;;  %p6307_p13 = pneg %p6306_p12 }
  0x32   : > { %4983 = vmatmul.mubr.msk.bf16.gmra.mrb[12].mxu0 %vm366_vm1, %v6130_v13  ;;  %v6184_v13 = vld [vmem:[%s7782_s3 + $0x70] sm:$0xff]   ;;  %p6314_p3 = pnand %p6313_p2, %p6307_p13 }
  0x33   : > { %494 = vmatprep.mubr.bf16.mxu0 %v6368_v2 }
  0x3a   : > { %4984 = vmatmul.mubr.msk.bf16.gmra.mrb[16].mxu0 %vm366_vm1, %v6131_v14  ;;  %v6186_v14 = vld [vmem:[%s7782_s3 + $0x78] sm:$0xff]  }
  0x3b   : > { %504 = vmatprep.mubr.bf16.mxu0 %v6368_v2 }
  0x42   : > { %4985 = vmatmul.mubr.msk.bf16.gmra.mrb[20].mxu0 %vm366_vm1, %v6132_v15  ;;  %v6621_v15 = vld [vmem:[%s7782_s3 + $0x240] sm:$0xff]  }
  0x43   : > { %514 = vmatprep.mubr.bf16.mxu0 %v6368_v2 }
  0x4a   : > { %4986 = vmatmul.mubr.msk.bf16.gmra.mrb[24].mxu0 %vm366_vm1, %v6133_v16  ;;  %v6627_v16 = vld [vmem:[%s7781_s2] ss:$0 sm:$0xff] }
  0x4b   : > { %524 = vmatprep.mubr.bf16.mxu0 %v6368_v2 }
  0x52   : > { %4987 = vmatmul.mubr.msk.bf16.gmra.mrb[28].mxu0 %vm366_vm1, %v6134_v17 }
  0x53   : > { %534 = vmatprep.mubr.bf16.mxu0 %v6368_v2 }
  0x5a   : > { %4988 = vmatmul.mubr.msk.bf16.gmra.mrb[32].mxu0 %vm366_vm1, %v6135_v18 }
  0x5b   : > { %544 = vmatprep.mubr.bf16.mxu0 %v6368_v2 }
  0x62   : > { %4989 = vmatmul.mubr.msk.bf16.gmra.mrb[36].mxu0 %vm366_vm1, %v6136_v19 }
  0x63   : > { %554 = vmatprep.mubr.bf16.mxu0 %v6368_v2 }
  0x6a   : > { %4990 = vmatmul.mubr.msk.bf16.gmra.mrb[40].mxu0 %vm366_vm1, %v6137_v20 }
  0x6b   : > { %564 = vmatprep.mubr.bf16.mxu0 %v6368_v2 }
  0x72   : > { %4991 = vmatmul.mubr.msk.bf16.gmra.mrb[44].mxu0 %vm366_vm1, %v6138_v21 }
  0x73   : > { %574 = vmatprep.mubr.bf16.mxu0 %v6368_v2 }
  0x7a   : > { %4992 = vmatmul.mubr.msk.bf16.gmra.mrb[48].mxu0 %vm366_vm1, %v6139_v29 }
  0x7b   : > { %584 = vmatprep.mubr.bf16.mxu0 %v6368_v2 }
  0x82   : > { %4993 = vmatmul.mubr.msk.bf16.gmra.mrb[52].mxu0 %vm366_vm1, %v6140_v38  ;;  %v958_v38 = vld [vmem:[#allocation2 + $0xc] sm:$0x1] }
  0x83   : > { %594 = vmatprep.mubr.bf16.mxu0 %v6368_v2 }
  0x8a   : > { %4994 = vmatmul.mubr.msk.bf16.gmra.mrb[56].mxu0 %vm366_vm1, %v6141_v46  ;;  %v961_v46 = vld [vmem:[#allocation2 + $0x10] sm:$0xf] }
  0x8b   : > { %604 = vmatprep.mubr.bf16.mxu0 %v6368_v2  ;;  %v6171_v2 = vld [vmem:[%s7782_s3 + $0x58] sm:$0xff]  }
  0x8c   : > { %5795 = vmatprep.subr.bf16.mxu0 %v6171_v2 }
  0x8d   : > { %5796 = vmatpush3.bf16.msra.mxu0 %v6171_v2  ;;  %v1437_v2 = vrot.slane %v1435_v49, 4  ;;  %v982_v49 = vld [vmem:[#allocation2 + $0x2c] sm:$0x1] }
  0x8e   : > { %5797 = vmatprep.subr.bf16.mxu0 %v6176_v9 }
  0x91   : > { %5798 = vmatpush3.bf16.msra.mxu0 %v6176_v9  ;;  %v973_v9 = vld [vmem:[#allocation2 + $0x20] sm:$0xf] }
  0x92   : > { %4995 = vmatmul.mubr.msk.bf16.gmra.mrb[60].mxu0 %vm366_vm1, %v6142_v53  ;;  %5799 = vmatprep.subr.bf16.mxu0 %v6181_v12 }
  0x95   : > { %5800 = vmatpush3.bf16.msra.mxu0 %v6181_v12 }
  0x96   : > { %5801 = vmatprep.subr.bf16.mxu0 %v6184_v13 }
  0x99   : > { %5802 = vmatpush3.bf16.msra.mxu0 %v6184_v13 }
  0x9a   : > { %5803 = vmatprep.subr.bf16.mxu0 %v6186_v14 }
  0x9d   : > { %5804 = vmatpush3.bf16.msra.mxu0 %v6186_v14 }
  0x9e   : > { %5837 = vmatprep.subr.bf16.mxu0 %v6621_v15 }
  0xed   : > { %v456_v17 = vpop.f32.mrb[0].mxu0 }
  0xee   : > { %v622_v18 = vadd.f32 %v6627_v16, %v456_v17  ;;  %v6630_v19 = vpop.f32.mrb[1].mxu0 }
  0xef   : > { %v460_v20 = vpop.f32.mrb[2].mxu0 }
  0xf0   : > { %v654_v21 = vmax.f32 %v622_v18, 0.0  ;;  %v623_v22 = vadd.f32 %v6627_v16, %v460_v20  ;;  %v6633_v24 = vpop.f32.mrb[3].mxu0 }
  0xf2   : > { %v5468_v25 = vpack.c.bf16 %v654_v21, %v654_v21  ;;  %v655_v26 = vmax.f32 %v623_v22, 0.0  ;;  %v6659_v21 = vld [vmem:[#allocation2 + $0x4] sm:$0x1] }
  0xf4   : > { %v872_v27 = vshrl.u32 %v5468_v25, 16  ;;  %v5469_v28 = vpack.c.bf16 %v655_v26, %v655_v26  ;;  %v875_v31 = vshll.u32 %v5468_v25, 16 }
  0xf5   : > { %v466_v29 = vpop.f32.mrb[4].mxu0 }
  0xf6   : > { %v874_v30 = vrot.slane %v872_v27, 7  ;;  %v880_v32 = vshrl.u32 %v5469_v28, 16  ;;  %v624_v33 = vadd.f32 %v6627_v16, %v466_v29  ;;  %v6636_v34 = vpop.f32.mrb[5].mxu0  ;;  %v883_v39 = vshll.u32 %v5469_v28, 16 }
  0xf7   : > { %v470_v40 = vpop.f32.mrb[6].mxu0  ;;  %v1441_v27 = vor.u32 %v1440_v3, %v1437_v2 }
  0xf8   : > { %v877_v41 = vor.u32 %v875_v31, %v874_v30  ;;  %v878_v42 = vrot.slane %v874_v30, 4  ;;  %v882_v43 = vrot.slane %v880_v32, 7  ;;  %v656_v44 = vmax.f32 %v624_v33, 0.0  ;;  %v6642_v45 = vpop.f32.mrb[7].mxu0 }
  0xf9   : > { %v625_v48 = vadd.f32 %v6627_v16, %v470_v40 }
  0xfa   : > { %v956_v52 = vsel %vm6638_vm7, %v877_v41, %v955_v37  ;;  %v959_v53 = vsel %vm6517_vm4, %v878_v42, %v958_v38  ;;  %v885_v54 = vor.u32 %v883_v39, %v882_v43  ;;  %v886_v55 = vrot.slane %v882_v43, 4  ;;  %v979_v43 = vld [vmem:[#allocation2 + $0x28] sm:$0xf] }
  0xfb   : > { %957 = vst [vmem:[#allocation2 + $0x8] sm:$0xf] %v956_v52  ;;  %960 = vst [vmem:[#allocation2 + $0xc] sm:$0x1] %v959_v53  ;;  %v5470_v56 = vpack.c.bf16 %v656_v44, %v656_v44  ;;  %v657_v57 = vmax.f32 %v625_v48, 0.0  ;;  %v1444_v41 = vshll.u32 %v6659_v21, 16 }
  0xfc   : > { %v962_v58 = vsel %vm6638_vm7, %v885_v54, %v961_v46  ;;  %v965_v59 = vsel %vm6517_vm4, %v886_v55, %v964_v47  ;;  %v6673_v52 = vrot.slane %v1441_v27, 4  ;;  %v991_v21 = vld [vmem:[#allocation2 + $0x38] sm:$0xf]  ;;  %v6156_v27 = vld [vmem:[%s7782_s3 + $0x90] sm:$0xff]  }
  0xfd   : > { %963 = vst [vmem:[#allocation2 + $0x10] sm:$0xf] %v962_v58  ;;  %966 = vst [vmem:[#allocation2 + $0x14] sm:$0x1] %v965_v59  ;;  %v888_v60 = vshrl.u32 %v5470_v56, 16  ;;  %v5471_v61 = vpack.c.bf16 %v657_v57, %v657_v57  ;;  %v476_v62 = vpop.f32.mrb[8].mxu0 }
  0xfe   : > { %v626_v0 = vadd.f32 %v6627_v16, %v476_v62  ;;  %v6654_v1 = vpop.f32.mrb[9].mxu0  ;;  %v891_v5 = vshll.u32 %v5470_v56, 16 }
  0xff   : > { %v890_v4 = vrot.slane %v888_v60, 7  ;;  %v896_v7 = vshrl.u32 %v5471_v61, 16  ;;  %v480_v8 = vpop.f32.mrb[10].mxu0  ;;  %v899_v20 = vshll.u32 %v5471_v61, 16  ;;  %v985_v60 = vld [vmem:[#allocation2 + $0x30] sm:$0xf] }
 0x100   : > { %v658_v11 = vmax.f32 %v626_v0, 0.0  ;;  %v627_v12 = vadd.f32 %v6627_v16, %v480_v8  ;;  %v6657_v13 = vpop.f32.mrb[11].mxu0  ;;  %v988_v61 = vld [vmem:[#allocation2 + $0x34] sm:$0x1] }
 0x101   : > { %v893_v14 = vor.u32 %v891_v5, %v890_v4  ;;  %v894_v17 = vrot.slane %v890_v4, 4  ;;  %v898_v18 = vrot.slane %v896_v7, 7  ;;  %v6155_v7 = vld [vmem:[%s7782_s3 + $0x88] sm:$0xff]  }
 0x102   : > { %v5472_v22 = vpack.c.bf16 %v658_v11, %v658_v11  ;;  %v659_v25 = vmax.f32 %v627_v12, 0.0  ;;  %v6150_v26 = vld [vmem:[#allocation2] ss:$8 sps:$4 sm:$0xff]  }
 0x103   : > { %v968_v28 = vsel %vm6638_vm7, %v893_v14, %v967_v6  ;;  %v971_v29 = vsel %vm6517_vm4, %v894_v17, %v970_v63  ;;  %v901_v30 = vor.u32 %v899_v20, %v898_v18  ;;  %v902_v31 = vrot.slane %v898_v18, 4  ;;  %5709 = vmatprep.mubr.bf16.mxu1 %v6150_v26  ;;  %v1417_v37 = vld [vmem:[#allocation2 + $0x8] sm:$0xf] }
 0x104   : > { %969 = vst [vmem:[#allocation2 + $0x18] sm:$0xf] %v968_v28  ;;  %972 = vst [vmem:[#allocation2 + $0x1c] sm:$0x1] %v971_v29  ;;  %v904_v32 = vshrl.u32 %v5472_v22, 16  ;;  %v907_v33 = vshll.u32 %v5472_v22, 16  ;;  %v5473_v35 = vpack.c.bf16 %v659_v25, %v659_v25 }
 0x105   : > { %v974_v38 = vsel %vm6638_vm7, %v901_v30, %v973_v9  ;;  %v977_v39 = vsel %vm6517_vm4, %v902_v31, %v976_v10  ;;  %v486_v40 = vpop.f32.mrb[12].mxu0  ;;  %v1449_v53 = vshrl.u32 %v1417_v37, 16  ;;  %v1452_v54 = vshll.u32 %v1417_v37, 16  ;;  %v994_v22 = vld [vmem:[#allocation2 + $0x3c] sm:$0x1] }
 0x106   : > { %975 = vst [vmem:[#allocation2 + $0x20] sm:$0xf] %v974_v38  ;;  %978 = vst [vmem:[#allocation2 + $0x24] sm:$0x1] %v977_v39  ;;  %v906_v42 = vrot.slane %v904_v32, 7  ;;  %v912_v44 = vshrl.u32 %v5473_v35, 16  ;;  %v628_v47 = vadd.f32 %v6627_v16, %v486_v40 }
 0x107   : > { %v915_v46 = vshll.u32 %v5473_v35, 16  ;;  %v6671_v48 = vpop.f32.mrb[13].mxu0  ;;  %v1451_v10 = vrot.slane %v1449_v53, 4  ;;  %v1454_v11 = vrot.slane %v1452_v54, 5  ;;  %v6689_v20 = vrot.slane %v1444_v41, 5 }
 0x108   : > { %v490_v50 = vpop.f32.mrb[14].mxu0  ;;  %v909_v55 = vor.u32 %v907_v33, %v906_v42  ;;  %v910_v56 = vrot.slane %v906_v42, 4  ;;  %v914_v57 = vrot.slane %v912_v44, 7  ;;  %v660_v58 = vmax.f32 %v628_v47, 0.0  ;;  %v1418_v28 = vld [vmem:[#allocation2 + $0xc] sm:$0x1] }
 0x109   : > { %v6675_v59 = vpop.f32.mrb[15].mxu0  ;;  %v629_v62 = vadd.f32 %v6627_v16, %v490_v50  ;;  %v997_v35 = vld [vmem:[#allocation2 + $0x40] sm:$0xf]  ;;  %v1458_v50 = vshll.u32 %v1418_v28, 16 }
 0x10a   : > { %v980_v63 = vsel %vm6638_vm7, %v909_v55, %v979_v43  ;;  %v983_v0 = vsel %vm6517_vm4, %v910_v56, %v982_v49  ;;  %v917_v2 = vor.u32 %v915_v46, %v914_v57  ;;  %v918_v3 = vrot.slane %v914_v57, 4  ;;  %v1000_v43 = vld [vmem:[#allocation2 + $0x44] sm:$0x1]  ;;  %v1419_v46 = vld [vmem:[#allocation2 + $0x10] sm:$0xf] }
 0x10b   : > { %981 = vst [vmem:[#allocation2 + $0x28] sm:$0xf] %v980_v63  ;;  %984 = vst [vmem:[#allocation2 + $0x2c] sm:$0x1] %v983_v0  ;;  %v5474_v4 = vpack.c.bf16 %v660_v58, %v660_v58  ;;  %v661_v5 = vmax.f32 %v629_v62, 0.0 }
 0x10c   : > { %v6154_v6 = vld [vmem:[#allocation2 + $0x10] ss:$8 sps:$4 sm:$0xff]   ;;  %v986_v8 = vsel %vm6638_vm7, %v917_v2, %v985_v60  ;;  %v989_v9 = vsel %vm6517_vm4, %v918_v3, %v988_v61  ;;  %v1463_v61 = vshrl.u32 %v1419_v46, 16  ;;  %v1466_v3 = vshll.u32 %v1419_v46, 16 }
 0x10d   : > { %987 = vst [vmem:[#allocation2 + $0x30] sm:$0xf] %v986_v8  ;;  %990 = vst [vmem:[#allocation2 + $0x34] sm:$0x1] %v989_v9  ;;  %v920_v12 = vshrl.u32 %v5474_v4, 16  ;;  %v923_v14 = vshll.u32 %v5474_v4, 16  ;;  %v5475_v17 = vpack.c.bf16 %v661_v5, %v661_v5  ;;  %5710 = vmatmul.mubr.bf16.vlgmr.msra.gmra.mrb[0].mxu1 %v6154_v6 }
 0x10e   : > { %v496_v18 = vpop.f32.mrb[16].mxu0  ;;  %5718 = vmatpush3.bf16.msra.mxu1 %v6570_v51  ;;  %v1455_v51 = vor.u32 %v1454_v11, %v1451_v10  ;;  %v1421_v57 = vld [vmem:[#allocation2 + $0x18] sm:$0xf]  ;;  %v1460_v8 = vrot.slane %v1458_v50, 5  ;;  %v6739_v28 = vrot.slane %v1466_v3, 5 }
 0x10f   : > { %v630_v25 = vadd.f32 %v6627_v16, %v496_v18  ;;  %v498_v26 = vpop.f32.mrb[17].mxu0  ;;  %v922_v29 = vrot.slane %v920_v12, 7  ;;  %v928_v30 = vshrl.u32 %v5475_v17, 16  ;;  %v931_v31 = vshll.u32 %v5475_v17, 16  ;;  %5719 = vmatprep.subr.bf16.mxu1 %v6155_v7  ;;  %v1423_v17 = vld [vmem:[#allocation2 + $0x20] sm:$0xf] }
 0x110   : > { %v6697_v32 = vadd.f32 %v498_v26, %v6630_v19  ;;  %v500_v33 = vpop.f32.mrb[18].mxu0  ;;  %v1456_v2 = vrot.slane %v1455_v51, 4  ;;  %v1477_v9 = vshrl.u32 %v1421_v57, 16  ;;  %v1447_v12 = vsel %vm6712_vm10, %v6673_v52, %v6689_v20  ;;  %v6162_v20 = vld [vmem:[%s7782_s3 + $0xa8] sm:$0xff]   ;;  %v1422_v51 = vld [vmem:[#allocation2 + $0x1c] sm:$0x1] }
 0x111   : > { %v662_v37 = vmax.f32 %v630_v25, 0.0  ;;  %v631_v38 = vadd.f32 %v6627_v16, %v500_v33  ;;  %v502_v39 = vpop.f32.mrb[19].mxu0  ;;  %v925_v40 = vor.u32 %v923_v14, %v922_v29  ;;  %v926_v41 = vrot.slane %v922_v29, 4 }
 0x112   : > { %v930_v42 = vrot.slane %v928_v30, 7  ;;  %v6701_v44 = vadd.f32 %v502_v39, %v6633_v24  ;;  %5720 = vmatpush3.bf16.msra.mxu1 %v6155_v7  ;;  %v6157_v19 = vld [vmem:[#allocation2 + $0x20] ss:$8 sps:$4 sm:$0xff]   ;;  %v6158_v24 = vld [vmem:[%s7782_s3 + $0x98] sm:$0xff]   ;;  %v1480_v14 = vshll.u32 %v1421_v57, 16  ;;  %v6732_v25 = vrot.slane %v1463_v61, 4 }
 0x113   : > { %v5476_v47 = vpack.c.bf16 %v662_v37, %v662_v37  ;;  %v663_v49 = vmax.f32 %v631_v38, 0.0  ;;  %v992_v53 = vsel %vm6638_vm7, %v925_v40, %v991_v21  ;;  %v995_v54 = vsel %vm6517_vm4, %v926_v41, %v994_v22  ;;  %5721 = vmatprep.subr.bf16.mxu1 %v6156_v27  ;;  %5713 = vmatprep.mubr.bf16.mxu1 %v6157_v19  ;;  %v1425_v4 = vld [vmem:[#allocation2 + $0x28] sm:$0xf]  ;;  %v6160_v7 = vld [vmem:[%s7782_s3 + $0xa0] sm:$0xff]   ;;  %v1426_v50 = vld [vmem:[#allocation2 + $0x2c] sm:$0x1] }
 0x114   : > { %v933_v55 = vor.u32 %v931_v31, %v930_v42  ;;  %v934_v56 = vrot.slane %v930_v42, 4  ;;  %993 = vst [vmem:[#allocation2 + $0x38] sm:$0xf] %v992_v53  ;;  %996 = vst [vmem:[#allocation2 + $0x3c] sm:$0x1] %v995_v54  ;;  %v1505_v26 = vshrl.u32 %v1425_v4, 16  ;;  %v1469_v19 = vor.u32 %v6739_v28, %v6732_v25 }
 0x115   : > { %1036 = vst [vmem:[#allocation2 + $0x50] sm:$0xf] %v5476_v47  ;;  %v5477_v58 = vpack.c.bf16 %v663_v49, %v663_v49  ;;  %v506_v0 = vpop.f32.mrb[20].mxu0  ;;  %v1508_v29 = vshll.u32 %v1425_v4, 16  ;;  %v1479_v31 = vrot.slane %v1477_v9, 4  ;;  %v1491_v33 = vshrl.u32 %v1423_v17, 16 }
 0x116   : > { %v998_v62 = vsel %vm6638_vm7, %v933_v55, %v997_v35  ;;  %v1001_v63 = vsel %vm6517_vm4, %v934_v56, %v1000_v43  ;;  %v632_v5 = vadd.f32 %v6627_v16, %v506_v0  ;;  %5722 = vmatpush3.bf16.msra.mxu1 %v6156_v27  ;;  %v508_v6 = vpop.f32.mrb[21].mxu0  ;;  %v1482_v37 = vrot.slane %v1480_v14, 5  ;;  %v1420_v49 = vld [vmem:[#allocation2 + $0x14] sm:$0x1]  ;;  %v1427_v61 = vld [vmem:[#allocation2 + $0x30] sm:$0xf] }
 0x117   : > { %999 = vst [vmem:[#allocation2 + $0x40] sm:$0xf] %v998_v62  ;;  %1002 = vst [vmem:[#allocation2 + $0x44] sm:$0x1] %v1001_v63  ;;  %v6725_v10 = vadd.f32 %v508_v6, %v6636_v34  ;;  %v510_v11 = vpop.f32.mrb[22].mxu0  ;;  %5723 = vmatprep.subr.bf16.mxu1 %v6158_v24  ;;  %v1461_v34 = vsel %vm6712_vm10, %v1456_v2, %v1460_v8  ;;  %v1507_v40 = vrot.slane %v1505_v26, 4 }
 0x118   : > { %1037 = vst [vmem:[#allocation2 + $0x58] sm:$0xf] %v5477_v58  ;;  %v664_v18 = vmax.f32 %v632_v5, 0.0  ;;  %v633_v21 = vadd.f32 %v6627_v16, %v510_v11  ;;  %v512_v22 = vpop.f32.mrb[23].mxu0  ;;  %v5058_v39 = vcombine.low %v1447_v12, %v1461_v34  ;;  %v1510_v42 = vrot.slane %v1508_v29, 5  ;;  %v6163_v55 = vld [vmem:[%s7782_s3 + $0xb0] sm:$0xff]  }
 0x119   : > { %v6735_v27 = vadd.f32 %v512_v22, %v6642_v45  ;;  %v1494_v45 = vshll.u32 %v1423_v17, 16  ;;  %v1483_v56 = vor.u32 %v1482_v37, %v1479_v31  ;;  %v1493_v57 = vrot.slane %v1491_v33, 4  ;;  %v6164_v14 = vld [vmem:[%s7782_s3 + $0xb8] sm:$0xff]   ;;  %v6192_v28 = vld [vmem:[%s7782_s3 + $0x248] sm:$0xff]  }
 0x11a   : > { %v5478_v30 = vpack.c.bf16 %v664_v18, %v664_v18  ;;  %v665_v52 = vmax.f32 %v633_v21, 0.0  ;;  %5724 = vmatpush3.bf16.msra.mxu1 %v6158_v24  ;;  %v1424_v24 = vld [vmem:[#allocation2 + $0x24] sm:$0x1]  ;;  %v1486_v4 = vshll.u32 %v1422_v51, 16  ;;  %v1511_v5 = vor.u32 %v1510_v42, %v1507_v40 }
 0x11b   : > { %5725 = vmatprep.subr.bf16.mxu1 %v6160_v7  ;;  %v6161_v35 = vld [vmem:[#allocation2 + $0x30] ss:$8 sps:$4 sm:$0xff]   ;;  %v1496_v58 = vrot.slane %v1494_v45, 5  ;;  %v1514_v6 = vshll.u32 %v1426_v50, 16  ;;  %v1519_v11 = vshrl.u32 %v1427_v61, 16  ;;  %v1522_v12 = vshll.u32 %v1427_v61, 16 }
 0x11c   : > { %1038 = vst [vmem:[#allocation2 + $0x60] sm:$0xf] %v5478_v30  ;;  %v5479_v38 = vpack.c.bf16 %v665_v52, %v665_v52  ;;  %5714 = vmatmul.mubr.bf16.gmra.mrb[4].mxu1 %v6161_v35  ;;  %v1429_v43 = vld [vmem:[#allocation2 + $0x38] sm:$0xf]  ;;  %v1472_v17 = vshll.u32 %v1420_v49, 16  ;;  %v1484_v18 = vrot.slane %v1483_v56, 4 }
 0x11d   : > { %v516_v41 = vpop.f32.mrb[24].mxu0  ;;  %5733 = vmatprep.mubr.bf16.mxu1 %v5058_v39  ;;  %v1533_v2 = vshrl.u32 %v1429_v43, 16  ;;  %v1536_v3 = vshll.u32 %v1429_v43, 16  ;;  %v1497_v21 = vor.u32 %v1496_v58, %v1493_v57  ;;  %v1500_v22 = vshll.u32 %v1424_v24, 16  ;;  %v1430_v31 = vld [vmem:[#allocation2 + $0x3c] sm:$0x1] }
 0x11e   : > { %1039 = vst [vmem:[#allocation2 + $0x68] sm:$0xf] %v5479_v38  ;;  %v634_v46 = vadd.f32 %v6627_v16, %v516_v41  ;;  %5726 = vmatpush3.bf16.msra.mxu1 %v6160_v7  ;;  %v518_v47 = vpop.f32.mrb[25].mxu0  ;;  %v6188_v7 = vld [vmem:[#allocation2 + $0x48] ss:$8 sps:$4 sm:$0xff]   ;;  %v1488_v30 = vrot.slane %v1486_v4, 5 }
 0x11f   : > { %v6748_v53 = vadd.f32 %v518_v47, %v6654_v1  ;;  %v520_v54 = vpop.f32.mrb[26].mxu0  ;;  %5727 = vmatprep.subr.bf16.mxu1 %v6162_v20  ;;  %5805 = vmatprep.mubr.bf16.mxu0 %v6188_v7  ;;  %v1535_v25 = vrot.slane %v1533_v2, 4  ;;  %v1538_v26 = vrot.slane %v1536_v3, 5  ;;  %v1512_v52 = vrot.slane %v1511_v5, 4  ;;  %v1428_v45 = vld [vmem:[#allocation2 + $0x34] sm:$0x1] }
 0x120   : > { %v666_v62 = vmax.f32 %v634_v46, 0.0  ;;  %v635_v63 = vadd.f32 %v6627_v16, %v520_v54  ;;  %v522_v0 = vpop.f32.mrb[27].mxu0  ;;  %v1470_v37 = vrot.slane %v1469_v19, 4  ;;  %v1521_v38 = vrot.slane %v1519_v11, 4  ;;  %v6166_v43 = vld [vmem:[%s7782_s3 + $0x200] sm:$0xff]   ;;  %v6194_v54 = vld [vmem:[%s7782_s3 + $0x250] sm:$0xff]  }
 0x121   : > { %v6755_v1 = vadd.f32 %v522_v0, %v6657_v13  ;;  %v1524_v39 = vrot.slane %v1522_v12, 5  ;;  %v1474_v41 = vrot.slane %v1472_v17, 5  ;;  %v1489_v42 = vsel %vm6712_vm10, %v1484_v18, %v1488_v30 }
 0x122   : > { %v5480_v8 = vpack.c.bf16 %v666_v62, %v666_v62  ;;  %v667_v9 = vmax.f32 %v635_v63, 0.0  ;;  %5728 = vmatpush3.bf16.msra.mxu1 %v6162_v20  ;;  %v1516_v20 = vrot.slane %v1514_v6, 5  ;;  %v1498_v46 = vrot.slane %v1497_v21, 4  ;;  %v6196_v6 = vld [vmem:[%s7782_s3 + $0x258] sm:$0xff]   ;;  %v6168_v21 = vld [vmem:[%s7782_s3 + $0x210] sm:$0xff]  }
 0x123   : > { %5729 = vmatprep.subr.bf16.mxu1 %v6163_v55  ;;  %v6190_v34 = vld [vmem:[#allocation2 + $0x58] ss:$8 sps:$4 sm:$0xff]   ;;  %v1539_v50 = vor.u32 %v1538_v26, %v1535_v25  ;;  %v1502_v56 = vrot.slane %v1500_v22, 5  ;;  %v1528_v57 = vshll.u32 %v1428_v45, 16  ;;  %v1475_v61 = vsel %vm6712_vm10, %v1470_v37, %v1474_v41  ;;  %v6200_v37 = vld [vmem:[%s7782_s3 + $0x268] sm:$0xff]  }
 0x124   : > { %1040 = vst [vmem:[#allocation2 + $0x70] sm:$0xf] %v5480_v8  ;;  %v5481_v13 = vpack.c.bf16 %v667_v9, %v667_v9  ;;  %5806 = vmatmul.mubr.bf16.vlgmr.msra.gmra.mrb[64].mxu0 %v6190_v34  ;;  %v1517_v24 = vsel %vm6712_vm10, %v1512_v52, %v1516_v20  ;;  %v1525_v62 = vor.u32 %v1524_v39, %v1521_v38  ;;  %v1870_v9 = vld [vmem:[#allocation2 + $0x8] sm:$0xf]  ;;  %v6816_v45 = vld [vmem:[#allocation2 + $0xc] sm:$0x1] }
 0x125   : > { %v526_v29 = vpop.f32.mrb[28].mxu0  ;;  %5838 = vmatpush3.bf16.msra.mxu0 %v6621_v15  ;;  %v5059_v63 = vcombine.low %v1475_v61, %v1489_v42  ;;  %v1503_v0 = vsel %vm6712_vm10, %v1498_v46, %v1502_v56  ;;  %v1540_v4 = vrot.slane %v1539_v50, 4  ;;  %v1530_v8 = vrot.slane %v1528_v57, 5  ;;  %v6818_v38 = vld [vmem:[#allocation2 + $0x10] sm:$0xf] }
 0x126   : > { %1041 = vst [vmem:[#allocation2 + $0x78] sm:$0xf] %v5481_v13  ;;  %v636_v33 = vadd.f32 %v6627_v16, %v526_v29  ;;  %5730 = vmatpush3.bf16.msra.mxu1 %v6163_v55  ;;  %v528_v35 = vpop.f32.mrb[29].mxu0  ;;  %5839 = vmatprep.subr.bf16.mxu0 %v6192_v28  ;;  %v5060_v3 = vcombine.low %v1503_v0, %v1517_v24  ;;  %v6170_v29 = vld [vmem:[%s7782_s3 + $0x218] sm:$0xff]   ;;  %v1887_v30 = vshrl.u32 %v1870_v9, 16  ;;  %v1890_v52 = vshll.u32 %v1870_v9, 16 }
 0x127   : > { %v6765_v51 = vadd.f32 %v528_v35, %v6671_v48  ;;  %v530_v40 = vpop.f32.mrb[30].mxu0  ;;  %5731 = vmatprep.subr.bf16.mxu1 %v6164_v14  ;;  %v1542_v48 = vshll.u32 %v1430_v31, 16  ;;  %v6169_v35 = vld [vmem:[#allocation2 + $0x8] ss:$8 sps:$4 sm:$0xff]   ;;  %v1896_v0 = vshll.u32 %v6816_v45, 16 }
 0x128   : > { %v668_v47 = vmax.f32 %v636_v33, 0.0  ;;  %v637_v49 = vadd.f32 %v6627_v16, %v530_v40  ;;  %v532_v19 = vpop.f32.mrb[31].mxu0  ;;  %v1873_v9 = vld [vmem:[#allocation2 + $0x14] sm:$0x1]  ;;  %v1172_v45 = vld [vmem:[#allocation2 + $0xa4] sm:$0x1] }
 0x129   : > { %v6778_v55 = vadd.f32 %v532_v19, %v6675_v59  ;;  %v6167_v59 = vld [vmem:[%s7782_s3 + $0x208] sm:$0xff]   ;;  %5840 = vmatpush3.bf16.msra.mxu0 %v6192_v28  ;;  %v1544_v5 = vrot.slane %v1542_v48, 5  ;;  %v6208_v19 = vld [vmem:[#allocation2 + $0x50] ss:$8 sps:$4 sm:$0xff]   ;;  %v1160_v48 = vld [vmem:[#allocation2 + $0x94] sm:$0x1] }
 0x12a   : > { %v5482_v15 = vpack.c.bf16 %v668_v47, %v668_v47  ;;  %v669_v58 = vmax.f32 %v637_v49, 0.0  ;;  %5732 = vmatpush3.bf16.msra.mxu1 %v6164_v14  ;;  %5841 = vmatprep.subr.bf16.mxu0 %v6194_v54  ;;  %v1526_v14 = vrot.slane %v1525_v62, 4  ;;  %v6820_v47 = vrot.slane %v1887_v30, 4 }
 0x12b   : > { %5741 = vmatprep.subr.bf16.mxu1 %v6166_v43  ;;  %v6202_v13 = vld [vmem:[#allocation2 + $0x68] ss:$8 sps:$4 sm:$0xff]   ;;  %v1545_v34 = vsel %vm6712_vm10, %v1540_v4, %v1544_v5  ;;  %v6822_v49 = vrot.slane %v1890_v52, 5  ;;  %v1910_v30 = vshll.u32 %v1873_v9, 16 }
 0x12c   : > { %1042 = vst [vmem:[#allocation2 + $0x80] sm:$0xf] %v5482_v15  ;;  %v5483_v2 = vpack.c.bf16 %v669_v58, %v669_v58  ;;  %5809 = vmatprep.mubr.bf16.mxu0 %v6202_v13  ;;  %v1531_v33 = vsel %vm6712_vm10, %v1526_v14, %v1530_v8  ;;  %v1163_v15 = vld [vmem:[#allocation2 + $0x98] sm:$0xf]  ;;  %v1166_v58 = vld [vmem:[#allocation2 + $0x9c] sm:$0x1] }
 0x12d   : > { %5734 = vmatmul.mubr.bf16.vlgmr.msra.gmra.mrb[8].mxu1 %v5059_v63  ;;  %v536_v7 = vpop.f32.mrb[32].mxu0  ;;  %5842 = vmatpush3.bf16.msra.mxu0 %v6194_v54  ;;  %v6172_v63 = vld [vmem:[%s7782_s3 + $0x220] sm:$0xff]   ;;  %v6843_v14 = vld [vmem:[#allocation2 + $0x18] sm:$0xf] }
 0x12e   : > { %1043 = vst [vmem:[#allocation2 + $0x88] sm:$0xf] %v5483_v2  ;;  %v638_v11 = vadd.f32 %v6627_v16, %v536_v7  ;;  %5737 = vmatprep.mubr.bf16.mxu1 %v5060_v3  ;;  %5742 = vmatpush3.bf16.msra.mxu1 %v6166_v43  ;;  %v538_v12 = vpop.f32.mrb[33].mxu0  ;;  %v1157_v43 = vld [vmem:[#allocation2 + $0x90] sm:$0xf]  ;;  %v1915_v52 = vshrl.u32 %v6843_v14, 16 }
 0x12f   : > { %v6794_v17 = vadd.f32 %v6697_v32, %v538_v12  ;;  %v540_v18 = vpop.f32.mrb[34].mxu0  ;;  %5743 = vmatprep.subr.bf16.mxu1 %v6167_v59  ;;  %5843 = vmatprep.subr.bf16.mxu0 %v6196_v6  ;;  %v6198_v32 = vld [vmem:[%s7782_s3 + $0x260] sm:$0xff]   ;;  %v1904_v12 = vshll.u32 %v6818_v38, 16 }
 0x130   : > { %v670_v22 = vmax.f32 %v638_v11, 0.0  ;;  %v639_v25 = vadd.f32 %v6627_v16, %v540_v18  ;;  %v542_v26 = vpop.f32.mrb[35].mxu0  ;;  %v1893_v11 = vor.u32 %v6822_v49, %v6820_v47 }
 0x131   : > { %v6806_v28 = vadd.f32 %v6701_v44, %v542_v26  ;;  %v5061_v44 = vcombine.low %v1531_v33, %v1545_v34  ;;  %5844 = vmatpush3.bf16.msra.mxu0 %v6196_v6  ;;  %v6173_v26 = vld [vmem:[%s7782_s3 + $0x228] sm:$0xff]  }
 0x132   : > { %v5484_v20 = vpack.c.bf16 %v670_v22, %v670_v22  ;;  %v671_v31 = vmax.f32 %v639_v25, 0.0  ;;  %5744 = vmatpush3.bf16.msra.mxu1 %v6167_v59  ;;  %5845 = vmatprep.subr.bf16.mxu0 %v6198_v32  ;;  %v1901_v59 = vshrl.u32 %v6818_v38, 16 }
 0x133   : > { %5745 = vmatprep.subr.bf16.mxu1 %v6168_v21  ;;  %v6204_v42 = vld [vmem:[#allocation2 + $0x78] ss:$8 sps:$4 sm:$0xff]  }
 0x134   : > { %v1078_v39 = vshrl.u32 %v5484_v20, 16  ;;  %v1081_v40 = vshll.u32 %v5484_v20, 16  ;;  %v5485_v41 = vpack.c.bf16 %v671_v31, %v671_v31  ;;  %5810 = vmatmul.mubr.bf16.gmra.mrb[68].mxu0 %v6204_v42  ;;  %v6867_v42 = vrot.slane %v1904_v12, 5  ;;  %v6903_v12 = vld [vmem:[%s7782_s3 + $0x108] sm:$0xff]  }
 0x135   : > { %5738 = vmatmul.mubr.bf16.gmra.mrb[12].mxu1 %v5061_v44  ;;  %v546_v46 = vpop.f32.mrb[36].mxu0  ;;  %5846 = vmatpush3.bf16.msra.mxu0 %v6198_v32  ;;  %v1169_v44 = vld [vmem:[#allocation2 + $0xa0] sm:$0xf] }
 0x136   : > { %v1080_v50 = vrot.slane %v1078_v39, 7  ;;  %v1086_v54 = vshrl.u32 %v5485_v41, 16  ;;  %v1089_v56 = vshll.u32 %v5485_v41, 16  ;;  %v640_v24 = vadd.f32 %v6627_v16, %v546_v46  ;;  %5746 = vmatpush3.bf16.msra.mxu1 %v6168_v21  ;;  %5757 = vmatprep.mubr.bf16.mxu1 %v6169_v35  ;;  %v548_v57 = vpop.f32.mrb[37].mxu0 }
 0x137   : > { %v6826_v61 = vadd.f32 %v6725_v10, %v548_v57  ;;  %v550_v62 = vpop.f32.mrb[38].mxu0  ;;  %5747 = vmatprep.subr.bf16.mxu1 %v6170_v29  ;;  %5847 = vmatprep.subr.bf16.mxu0 %v6200_v37  ;;  %v6203_v10 = vld [vmem:[%s7782_s3 + $0x270] sm:$0xff]   ;;  %v6865_v41 = vrot.slane %v1901_v59, 4 }
 0x138   : > { %v1083_v2 = vor.u32 %v1081_v40, %v1080_v50  ;;  %v1084_v3 = vrot.slane %v1080_v50, 4  ;;  %v1088_v4 = vrot.slane %v1086_v54, 7  ;;  %v672_v5 = vmax.f32 %v640_v24, 0.0  ;;  %v552_v6 = vpop.f32.mrb[39].mxu0  ;;  %5853 = vmatprep.mubr.bf16.mxu0 %v6208_v19  ;;  %v6174_v50 = vld [vmem:[%s7782_s3 + $0x230] sm:$0xff]  }
 0x139   : > { %v641_v7 = vadd.f32 %v6627_v16, %v550_v62  ;;  %v6838_v8 = vadd.f32 %v6735_v27, %v552_v6  ;;  %5848 = vmatpush3.bf16.msra.mxu0 %v6200_v37  ;;  %v6860_v37 = vrot.slane %v1896_v0, 5  ;;  %v6863_v40 = vrot.slane %v1893_v11, 4  ;;  %v1178_v54 = vld [vmem:[#allocation2 + $0xac] sm:$0x1]  ;;  %v6210_v6 = vld [vmem:[#allocation2 + $0x60] ss:$8 sps:$4 sm:$0xff]  }
 0x13a   : > { %v1158_v18 = vsel %vm6638_vm7, %v1083_v2, %v1157_v43  ;;  %v1161_v21 = vsel %vm6517_vm4, %v1084_v3, %v1160_v48  ;;  %v1091_v13 = vor.u32 %v1089_v56, %v1088_v4  ;;  %v1092_v22 = vrot.slane %v1088_v4, 4  ;;  %5748 = vmatpush3.bf16.msra.mxu1 %v6170_v29  ;;  %5849 = vmatprep.subr.bf16.mxu0 %v6203_v10  ;;  %v6206_v29 = vld [vmem:[%s7782_s3 + $0x278] sm:$0xff]   ;;  %v1175_v48 = vld [vmem:[#allocation2 + $0xa8] sm:$0xf]  ;;  %v6898_v11 = vld [vmem:[#allocation2 + $0x20] sm:$0xf] }
 0x13b   : > { %1159 = vst [vmem:[#allocation2 + $0x90] sm:$0xf] %v1158_v18  ;;  %1162 = vst [vmem:[#allocation2 + $0x94] sm:$0x1] %v1161_v21  ;;  %v5486_v27 = vpack.c.bf16 %v672_v5, %v672_v5  ;;  %v673_v25 = vmax.f32 %v641_v7, 0.0  ;;  %5749 = vmatprep.subr.bf16.mxu1 %v6172_v63  ;;  %v1918_v5 = vshll.u32 %v6843_v14, 16 }
 0x13c   : > { %v1164_v34 = vsel %vm6638_vm7, %v1091_v13, %v1163_v15  ;;  %v1167_v32 = vsel %vm6517_vm4, %v1092_v22, %v1166_v58  ;;  %v6876_v15 = vrot.slane %v1910_v30, 5  ;;  %v6878_v58 = vrot.slane %v1915_v52, 4  ;;  %v6891_v2 = vld [vmem:[#allocation2 + $0x1c] sm:$0x1]  ;;  %v1005_v18 = vld [vmem:[#allocation2 + $0x4c] sm:$0x1] }
 0x13d   : > { %1165 = vst [vmem:[#allocation2 + $0x98] sm:$0xf] %v1164_v34  ;;  %1168 = vst [vmem:[#allocation2 + $0x9c] sm:$0x1] %v1167_v32  ;;  %v1094_v20 = vshrl.u32 %v5486_v27, 16  ;;  %v1097_v31 = vshll.u32 %v5486_v27, 16  ;;  %v5487_v33 = vpack.c.bf16 %v673_v25, %v673_v25  ;;  %5850 = vmatpush3.bf16.msra.mxu0 %v6203_v10  ;;  %v1907_v27 = vor.u32 %v6867_v42, %v6865_v41 }
 0x13e   : > { %v556_v35 = vpop.f32.mrb[40].mxu0  ;;  %5750 = vmatpush3.bf16.msra.mxu1 %v6172_v63  ;;  %5851 = vmatprep.subr.bf16.mxu0 %v6206_v29  ;;  %v6221_v25 = vld [vmem:[#allocation2 + $0x70] ss:$8 sps:$4 sm:$0xff]   ;;  %v1184_v30 = vld [vmem:[#allocation2 + $0xb4] sm:$0x1] }
 0x13f   : > { %v642_v38 = vadd.f32 %v6627_v16, %v556_v35  ;;  %v558_v39 = vpop.f32.mrb[41].mxu0  ;;  %v1096_v43 = vrot.slane %v1094_v20, 7  ;;  %v1102_v46 = vshrl.u32 %v5487_v33, 16  ;;  %v1105_v47 = vshll.u32 %v5487_v33, 16  ;;  %5751 = vmatprep.subr.bf16.mxu1 %v6173_v26  ;;  %v1181_v32 = vld [vmem:[#allocation2 + $0xb0] sm:$0xf] }
 0x140   : > { %v6870_v49 = vadd.f32 %v6748_v53, %v558_v39  ;;  %v560_v19 = vpop.f32.mrb[42].mxu0  ;;  %v6209_v53 = vld [vmem:[%s7782_s3 + $0x100] sm:$0xff]   ;;  %v1899_v20 = vsel %vm6712_vm10, %v6863_v40, %v6860_v37  ;;  %v1011_v42 = vld [vmem:[#allocation2 + $0x54] sm:$0x1]  ;;  %v6185_v37 = vld [vmem:[%s7782_s3 + $0x298] sm:$0xff]  }
 0x141   : > { %v674_v56 = vmax.f32 %v642_v38, 0.0  ;;  %v643_v24 = vadd.f32 %v6627_v16, %v560_v19  ;;  %v562_v57 = vpop.f32.mrb[43].mxu0  ;;  %v1099_v62 = vor.u32 %v1097_v31, %v1096_v43  ;;  %v1100_v63 = vrot.slane %v1096_v43, 4  ;;  %v6889_v16 = vld [vmem:[%s7782_s3 + $0x238] sm:$0xff]   ;;  %5852 = vmatpush3.bf16.msra.mxu0 %v6206_v29  ;;  %v6914_v29 = vld [vmem:[%s7782_s3 + $0x280] sm:$0xff]   ;;  %v6932_v43 = vld [vmem:[%s7782_s3 + $0x110] sm:$0xff]  }
 0x142   : > { %v1104_v0 = vrot.slane %v1102_v46, 7  ;;  %v6884_v59 = vadd.f32 %v6755_v1, %v562_v57  ;;  %5752 = vmatpush3.bf16.msra.mxu1 %v6173_v26  ;;  %5885 = vmatprep.subr.bf16.mxu0 %v6209_v53  ;;  %v1924_v31 = vshll.u32 %v6891_v2, 16  ;;  %v6927_v41 = vld [vmem:[#allocation2 + $0x24] sm:$0x1]  ;;  %v1190_v46 = vld [vmem:[#allocation2 + $0xbc] sm:$0x1] }
 0x143   : > { %v5488_v3 = vpack.c.bf16 %v674_v56, %v674_v56  ;;  %v675_v4 = vmax.f32 %v643_v24, 0.0  ;;  %v1170_v10 = vsel %vm6638_vm7, %v1099_v62, %v1169_v44  ;;  %v1173_v1 = vsel %vm6517_vm4, %v1100_v63, %v1172_v45  ;;  %5753 = vmatprep.subr.bf16.mxu1 %v6174_v50  ;;  %v6924_v45 = vld [vmem:[%s7781_s2] ss:$0 sm:$0xff]  ;;  %v1023_v2 = vld [vmem:[#allocation2 + $0x74] sm:$0x1] }
 0x144   : > { %v1107_v7 = vor.u32 %v1105_v47, %v1104_v0  ;;  %v1108_v9 = vrot.slane %v1104_v0, 4  ;;  %1171 = vst [vmem:[#allocation2 + $0xa0] sm:$0xf] %v1170_v10  ;;  %1174 = vst [vmem:[#allocation2 + $0xa4] sm:$0x1] %v1173_v1  ;;  %5854 = vmatmul.mubr.bf16.vlgmr.msra.gmra.mrb[72].mxu0 %v6210_v6  ;;  %v1012_v6 = vsel %vm6517_vm4, 0, %v1011_v42 }
 0x145   : > { %v1110_v21 = vshrl.u32 %v5488_v3, 16  ;;  %v1113_v13 = vshll.u32 %v5488_v3, 16  ;;  %v5489_v22 = vpack.c.bf16 %v675_v4, %v675_v4  ;;  %v566_v52 = vpop.f32.mrb[44].mxu0  ;;  %5886 = vmatpush3.bf16.msra.mxu0 %v6209_v53  ;;  %5857 = vmatprep.mubr.bf16.mxu0 %v6221_v25  ;;  %v6177_v4 = vld [vmem:[#allocation2 + $0x18] ss:$8 sps:$4 sm:$0xff]   ;;  %v6947_v53 = vrot.slane %v1907_v27, 4 }
 0x146   : > { %v1176_v26 = vsel %vm6638_vm7, %v1107_v7, %v1175_v48  ;;  %v1179_v34 = vsel %vm6517_vm4, %v1108_v9, %v1178_v54  ;;  %v644_v38 = vadd.f32 %v6924_v45, %v566_v52  ;;  %5754 = vmatpush3.bf16.msra.mxu1 %v6174_v50  ;;  %v568_v39 = vpop.f32.mrb[45].mxu0  ;;  %v1929_v48 = vshrl.u32 %v6898_v11, 16  ;;  %5887 = vmatprep.subr.bf16.mxu0 %v6903_v12  ;;  %v6975_v25 = vld [vmem:[%s7782_s3 + $0x118] sm:$0xff]  }
 0x147   : > { %1177 = vst [vmem:[#allocation2 + $0xa8] sm:$0xf] %v1176_v26  ;;  %1180 = vst [vmem:[#allocation2 + $0xac] sm:$0x1] %v1179_v34  ;;  %v1112_v33 = vrot.slane %v1110_v21, 7  ;;  %v1118_v35 = vshrl.u32 %v5489_v22, 16  ;;  %v6935_v47 = vadd.f32 %v6765_v51, %v568_v39  ;;  %5755 = vmatprep.subr.bf16.mxu1 %v6889_v16 }
 0x148   : > { %v1121_v44 = vshll.u32 %v5489_v22, 16  ;;  %v570_v19 = vpop.f32.mrb[46].mxu0  ;;  %v1932_v50 = vshll.u32 %v6898_v11, 16  ;;  %v1006_v54 = vsel %vm6517_vm4, 0, %v1005_v18  ;;  %v676_v62 = vmax.f32 %v644_v38, 0.0 }
 0x149   : > { %v1115_v56 = vor.u32 %v1113_v13, %v1112_v33  ;;  %v1116_v24 = vrot.slane %v1112_v33, 4  ;;  %v1120_v57 = vrot.slane %v1118_v35, 7  ;;  %v572_v63 = vpop.f32.mrb[47].mxu0  ;;  %1007 = vst [vmem:[#allocation2 + $0x4c] sm:$0x1] %v1006_v54  ;;  %v645_v0 = vadd.f32 %v6924_v45, %v570_v19  ;;  %5888 = vmatpush3.bf16.msra.mxu0 %v6903_v12  ;;  %v6992_v19 = vld [vmem:[%s7782_s3 + $0x290] sm:$0xff]  }
 0x14a   : > { %v1187_v51 = vld [vmem:[#allocation2 + $0xb8] sm:$0xf]  ;;  %v6945_v3 = vadd.f32 %v6778_v55, %v572_v63  ;;  %5756 = vmatpush3.bf16.msra.mxu1 %v6889_v16  ;;  %v6179_v11 = vld [vmem:[#allocation2 + $0x28] ss:$8 sps:$4 sm:$0xff]   ;;  %1013 = vst [vmem:[#allocation2 + $0x54] sm:$0x1] %v1012_v6  ;;  %v5490_v13 = vpack.c.bf16 %v676_v62, %v676_v62  ;;  %5889 = vmatprep.subr.bf16.mxu0 %v6932_v43 }
 0x14b   : > { %v1182_v10 = vsel %vm6638_vm7, %v1115_v56, %v1181_v32  ;;  %v1185_v1 = vsel %vm6517_vm4, %v1116_v24, %v1184_v30  ;;  %v1123_v7 = vor.u32 %v1121_v44, %v1120_v57  ;;  %v1124_v9 = vrot.slane %v1120_v57, 4  ;;  %v6959_v55 = vld [vmem:[%s7782_s3 + $0x288] sm:$0xff]   ;;  %v6963_v21 = vld [vmem:[#allocation2 + $0x30] sm:$0xf]  ;;  %5765 = vmatprep.subr.bf16.mxu1 %v6914_v29  ;;  %v1193_v38 = vld [vmem:[#allocation2 + $0xc0] sm:$0xf] }
 0x14c   : > { %v6961_v18 = vld [vmem:[#allocation2 + $0x28] sm:$0xf]  ;;  %1183 = vst [vmem:[#allocation2 + $0xb0] sm:$0xf] %v1182_v10  ;;  %1186 = vst [vmem:[#allocation2 + $0xb4] sm:$0x1] %v1185_v1 }
 0x14d   : > { %v677_v22 = vmax.f32 %v645_v0, 0.0  ;;  %v6968_v16 = vrot.slane %v1918_v5, 5  ;;  %v1938_v27 = vshll.u32 %v6927_v41, 16  ;;  %v1188_v26 = vsel %vm6638_vm7, %v1123_v7, %v1187_v51  ;;  %v6224_v5 = vld [vmem:[#allocation2 + $0x80] ss:$8 sps:$4 sm:$0xff]   ;;  %5758 = vmatmul.mubr.bf16.vlgmr.msra.gmra.mrb[16].mxu1 %v6177_v4  ;;  %v576_v35 = vpop.f32.mrb[48].mxu0  ;;  %5890 = vmatpush3.bf16.msra.mxu0 %v6932_v43 }
 0x14e   : > { %v1191_v34 = vsel %vm6517_vm4, %v1124_v9, %v1190_v46  ;;  %v6981_v32 = vrot.slane %v1929_v48, 4  ;;  %v6983_v14 = vrot.slane %v1932_v50, 5  ;;  %v6228_v30 = vld [vmem:[#allocation2 + $0x90] ss:$8 sps:$4 sm:$0xff]   ;;  %1189 = vst [vmem:[#allocation2 + $0xb8] sm:$0xf] %v1188_v26  ;;  %v646_v42 = vadd.f32 %v6924_v45, %v576_v35  ;;  %5761 = vmatprep.mubr.bf16.mxu1 %v6179_v11  ;;  %5766 = vmatpush3.bf16.msra.mxu1 %v6914_v29 }
 0x14f   : > { %1192 = vst [vmem:[#allocation2 + $0xbc] sm:$0x1] %v1191_v34  ;;  %v1126_v12 = vshrl.u32 %v5490_v13, 16  ;;  %v1129_v52 = vshll.u32 %v5490_v13, 16  ;;  %v5491_v33 = vpack.c.bf16 %v677_v22, %v677_v22  ;;  %v1943_v44 = vshrl.u32 %v6961_v18, 16  ;;  %v578_v46 = vpop.f32.mrb[49].mxu0  ;;  %5767 = vmatprep.subr.bf16.mxu1 %v6959_v55  ;;  %5891 = vmatprep.subr.bf16.mxu0 %v6975_v25 }
 0x150   : > { %v1196_v39 = vld [vmem:[#allocation2 + $0xc4] sm:$0x1]  ;;  %v1913_v48 = vsel %vm6712_vm10, %v6947_v53, %v6876_v15  ;;  %v1946_v50 = vshll.u32 %v6961_v18, 16  ;;  %v1957_v54 = vshrl.u32 %v6963_v21, 16  ;;  %v7001_v29 = vadd.f32 %v6794_v17, %v578_v46  ;;  %v580_v62 = vpop.f32.mrb[50].mxu0  ;;  %5858 = vmatmul.mubr.bf16.gmra.mrb[76].mxu0 %v6224_v5  ;;  %v6220_v35 = vld [vmem:[%s7782_s3 + $0x128] sm:$0xff]  }
 0x151   : > { %v1128_v56 = vrot.slane %v1126_v12, 7  ;;  %v1134_v24 = vshrl.u32 %v5491_v33, 16  ;;  %v1137_v57 = vshll.u32 %v5491_v33, 16  ;;  %v1008_v63 = vld [vmem:[#allocation2 + $0x4c] sm:$0x1]  ;;  %v678_v4 = vmax.f32 %v646_v42, 0.0  ;;  %5901 = vmatprep.mubr.bf16.mxu0 %v6228_v30  ;;  %5892 = vmatpush3.bf16.msra.mxu0 %v6975_v25 }
 0x152   : > { %v1199_v51 = vld [vmem:[#allocation2 + $0xc8] sm:$0xf]  ;;  %v1202_v0 = vld [vmem:[#allocation2 + $0xcc] sm:$0x1]  ;;  %v647_v15 = vadd.f32 %v6924_v45, %v580_v62  ;;  %v582_v53 = vpop.f32.mrb[51].mxu0  ;;  %v1960_v6 = vshll.u32 %v6963_v21, 16  ;;  %5768 = vmatpush3.bf16.msra.mxu1 %v6959_v55  ;;  %v5114_v22 = vcombine.low %v1899_v20, %v1913_v48 }
 0x153   : > { %v1009_v10 = vsel %vm6517_vm4, 0, %v1008_v63  ;;  %v6218_v17 = vld [vmem:[%s7782_s3 + $0x120] sm:$0xff]   ;;  %v1131_v1 = vor.u32 %v1129_v52, %v1128_v56  ;;  %v1132_v43 = vrot.slane %v1128_v56, 4  ;;  %v1136_v7 = vrot.slane %v1134_v24, 7  ;;  %v1014_v18 = vld [vmem:[#allocation2 + $0x5c] sm:$0x1]  ;;  %5769 = vmatprep.subr.bf16.mxu1 %v6992_v19 }
 0x154   : > { %v7014_v9 = vadd.f32 %v6806_v28, %v582_v53  ;;  %v6182_v11 = vld [vmem:[#allocation2 + $0x38] ss:$8 sps:$4 sm:$0xff]   ;;  %1010 = vst [vmem:[#allocation2 + $0x4c] sm:$0x1] %v1009_v10  ;;  %v5492_v21 = vpack.c.bf16 %v678_v4, %v678_v4  ;;  %v679_v13 = vmax.f32 %v647_v15, 0.0  ;;  %v7024_v34 = vrot.slane %v1943_v44, 4  ;;  %5893 = vmatprep.subr.bf16.mxu0 %v6218_v17 }
 0x155   : > { %v7022_v26 = vld [vmem:[#allocation2 + $0x2c] sm:$0x1]  ;;  %v1017_v28 = vld [vmem:[#allocation2 + $0x64] sm:$0x1]  ;;  %v1194_v5 = vsel %vm6638_vm7, %v1131_v1, %v1193_v38  ;;  %v1197_v30 = vsel %vm6517_vm4, %v1132_v43, %v1196_v39  ;;  %v1139_v12 = vor.u32 %v1137_v57, %v1136_v7  ;;  %v1140_v52 = vrot.slane %v1136_v7, 4  ;;  %5762 = vmatmul.mubr.bf16.gmra.mrb[20].mxu1 %v6182_v11  ;;  %v586_v38 = vpop.f32.mrb[52].mxu0  ;;  %5894 = vmatpush3.bf16.msra.mxu0 %v6218_v17 }
 0x156   : > { %1195 = vst [vmem:[#allocation2 + $0xc0] sm:$0xf] %v1194_v5  ;;  %1198 = vst [vmem:[#allocation2 + $0xc4] sm:$0x1] %v1197_v30  ;;  %v5493_v40 = vpack.c.bf16 %v679_v13, %v679_v13  ;;  %v1948_v20 = vrot.slane %v1946_v50, 5  ;;  %v7035_v55 = vrot.slane %v1957_v54, 4  ;;  %v648_v46 = vadd.f32 %v6924_v45, %v586_v38  ;;  %5770 = vmatpush3.bf16.msra.mxu1 %v6992_v19 }
 0x157   : > { %1238 = vst [vmem:[#allocation2 + $0xd8] sm:$0xf] %v5492_v21  ;;  %v1015_v33 = vsel %vm6517_vm4, 0, %v1014_v18  ;;  %v1200_v44 = vsel %vm6638_vm7, %v1139_v12, %v1199_v51  ;;  %v1203_v25 = vsel %vm6517_vm4, %v1140_v52, %v1202_v0  ;;  %v1962_v39 = vrot.slane %v1960_v6, 5  ;;  %5781 = vmatprep.mubr.bf16.mxu1 %v5114_v22  ;;  %v588_v36 = vpop.f32.mrb[53].mxu0  ;;  %v6187_v48 = vld [vmem:[%s7782_s3 + $0x2a0] sm:$0xff]   ;;  %5771 = vmatprep.subr.bf16.mxu1 %v6185_v37 }
 0x158   : > { %1016 = vst [vmem:[#allocation2 + $0x5c] sm:$0x1] %v1015_v33  ;;  %v1018_v42 = vsel %vm6517_vm4, 0, %v1017_v28  ;;  %1201 = vst [vmem:[#allocation2 + $0xc8] sm:$0xf] %v1200_v44  ;;  %v1921_v50 = vor.u32 %v6968_v16, %v6878_v58  ;;  %v7058_v24 = vadd.f32 %v6826_v61, %v588_v36  ;;  %v590_v57 = vpop.f32.mrb[54].mxu0  ;;  %v1935_v61 = vor.u32 %v6983_v14, %v6981_v32 }
 0x159   : > { %1204 = vst [vmem:[#allocation2 + $0xcc] sm:$0x1] %v1203_v25  ;;  %1239 = vst [vmem:[#allocation2 + $0xe0] sm:$0xf] %v5493_v40  ;;  %v1881_v54 = vld [vmem:[#allocation2 + $0x34] sm:$0x1]  ;;  %v649_v63 = vadd.f32 %v6924_v45, %v590_v57  ;;  %v1949_v0 = vor.u32 %v1948_v20, %v7024_v34  ;;  %5895 = vmatprep.subr.bf16.mxu0 %v6220_v35  ;;  %v1963_v53 = vor.u32 %v1962_v39, %v7035_v55 }
 0x15a   : > { %v7055_v56 = vld [vmem:[#allocation2 + $0x38] sm:$0xf]  ;;  %1019 = vst [vmem:[#allocation2 + $0x64] sm:$0x1] %v1018_v42  ;;  %v7062_v19 = vrot.slane %v1924_v31, 5  ;;  %v1952_v62 = vshll.u32 %v7022_v26, 16  ;;  %5772 = vmatpush3.bf16.msra.mxu1 %v6185_v37  ;;  %5896 = vmatpush3.bf16.msra.mxu0 %v6220_v35 }
 0x15b   : > { %v6223_v58 = vld [vmem:[%s7782_s3 + $0x130] sm:$0xff]   ;;  %v680_v16 = vmax.f32 %v648_v46, 0.0  ;;  %v592_v51 = vpop.f32.mrb[55].mxu0  ;;  %v1020_v4 = vld [vmem:[#allocation2 + $0x6c] sm:$0x1]  ;;  %v7077_v15 = vrot.slane %v1938_v27, 5  ;;  %5773 = vmatprep.subr.bf16.mxu1 %v6187_v48 }
 0x15c   : > { %v7073_v31 = vadd.f32 %v6838_v8, %v592_v51  ;;  %v1966_v6 = vshll.u32 %v1881_v54, 16  ;;  %v681_v17 = vmax.f32 %v649_v63, 0.0  ;;  %v6191_v32 = vld [vmem:[%s7782_s3 + $0x2a8] sm:$0xff]   ;;  %v7083_v14 = vrot.slane %v1921_v50, 4  ;;  %v1884_v1 = vld [vmem:[#allocation2 + $0x40] sm:$0xf]  ;;  %5897 = vmatprep.subr.bf16.mxu0 %v6223_v58 }
 0x15d   : > { %v5494_v10 = vpack.c.bf16 %v680_v16, %v680_v16  ;;  %v1971_v8 = vshrl.u32 %v7055_v56, 16  ;;  %v2322_v43 = vld [vmem:[#allocation2 + $0x48] sm:$0xf]  ;;  %v1021_v41 = vsel %vm6517_vm4, 0, %v1020_v4  ;;  %v1024_v27 = vsel %vm6517_vm4, 0, %v1023_v2  ;;  %v6226_v22 = vld [vmem:[%s7782_s3 + $0x138] sm:$0xff]  }
 0x15e   : > { %v5495_v7 = vpack.c.bf16 %v681_v17, %v681_v17  ;;  %v7090_v11 = vrot.slane %v1935_v61, 4  ;;  %v7092_v18 = vrot.slane %v1949_v0, 4  ;;  %v7094_v21 = vrot.slane %v1952_v62, 5  ;;  %v2324_v13 = vld [vmem:[#allocation2 + $0x50] sm:$0xf]  ;;  %v596_v26 = vpop.f32.mrb[56].mxu0  ;;  %5774 = vmatpush3.bf16.msra.mxu1 %v6187_v48  ;;  %5898 = vmatpush3.bf16.msra.mxu0 %v6223_v58 }
 0x15f   : > { %1240 = vst [vmem:[#allocation2 + $0xe8] sm:$0xf] %v5494_v10  ;;  %1022 = vst [vmem:[#allocation2 + $0x6c] sm:$0x1] %v1021_v41  ;;  %v7099_v34 = vrot.slane %v1963_v53, 4  ;;  %v7101_v28 = vrot.slane %v1966_v6, 5  ;;  %v650_v12 = vadd.f32 %v6924_v45, %v596_v26  ;;  %5775 = vmatprep.subr.bf16.mxu1 %v6191_v32  ;;  %5899 = vmatprep.subr.bf16.mxu0 %v6226_v22 }
 0x160   : > { %1025 = vst [vmem:[#allocation2 + $0x74] sm:$0x1] %v1024_v27  ;;  %v1974_v5 = vshll.u32 %v7055_v56, 16  ;;  %v1985_v30 = vshrl.u32 %v1884_v1, 16  ;;  %1241 = vst [vmem:[#allocation2 + $0xf0] sm:$0xf] %v5495_v7  ;;  %v1941_v41 = vsel %vm6712_vm10, %v7090_v11, %v7077_v15  ;;  %v1955_v27 = vsel %vm6712_vm10, %v7092_v18, %v7094_v21 }
 0x161   : > { %v598_v52 = vpop.f32.mrb[57].mxu0  ;;  %v7105_v37 = vrot.slane %v1971_v8, 4  ;;  %v2339_v40 = vshrl.u32 %v2322_v43, 16  ;;  %v2342_v20 = vshll.u32 %v2322_v43, 16  ;;  %v1026_v55 = vld [vmem:[#allocation2 + $0x7c] sm:$0x1]  ;;  %v1927_v43 = vsel %vm6712_vm10, %v7083_v14, %v7062_v19 }
 0x162   : > { %v7108_v33 = vadd.f32 %v6870_v49, %v598_v52  ;;  %v600_v35 = vpop.f32.mrb[58].mxu0  ;;  %v6193_v44 = vld [vmem:[%s7782_s3 + $0x2b0] sm:$0xff]   ;;  %v1988_v25 = vshll.u32 %v1884_v1, 16  ;;  %v2353_v38 = vshrl.u32 %v2324_v13, 16  ;;  %v2356_v39 = vshll.u32 %v2324_v13, 16  ;;  %v6229_v42 = vld [vmem:[%s7782_s3 + $0x300] sm:$0xff]   ;;  %5776 = vmatpush3.bf16.msra.mxu1 %v6191_v32  ;;  %5900 = vmatpush3.bf16.msra.mxu0 %v6226_v22 }
 0x163   : > { %v682_v46 = vmax.f32 %v650_v12, 0.0  ;;  %v651_v36 = vadd.f32 %v6924_v45, %v600_v35  ;;  %v602_v48 = vpop.f32.mrb[59].mxu0  ;;  %v1029_v49 = vld [vmem:[#allocation2 + $0x84] sm:$0x1]  ;;  %v6195_v54 = vld [vmem:[%s7782_s3 + $0x2b8] sm:$0xff]   ;;  %v7123_v56 = vrot.slane %v1974_v5, 5  ;;  %5777 = vmatprep.subr.bf16.mxu1 %v6193_v44  ;;  %5933 = vmatprep.subr.bf16.mxu0 %v6229_v42  ;;  %v1969_v7 = vsel %vm6712_vm10, %v7099_v34, %v7101_v28 }
 0x164   : > { %v7118_v50 = vadd.f32 %v6884_v59, %v602_v48  ;;  %v7125_v57 = vrot.slane %v1985_v30, 4  ;;  %v1027_v62 = vsel %vm6517_vm4, 0, %v1026_v55  ;;  %v2341_v63 = vrot.slane %v2339_v40, 4  ;;  %v6230_v61 = vld [vmem:[#allocation2 + $0xa0] ss:$8 sps:$4 sm:$0xff]  }
 0x165   : > { %v5496_v58 = vpack.c.bf16 %v682_v46, %v682_v46  ;;  %v683_v16 = vmax.f32 %v651_v36, 0.0  ;;  %v2344_v51 = vrot.slane %v2342_v20, 5  ;;  %1028 = vst [vmem:[#allocation2 + $0x7c] sm:$0x1] %v1027_v62  ;;  %v6232_v59 = vld [vmem:[%s7782_s3 + $0x308] sm:$0xff]   ;;  %v1990_v4 = vrot.slane %v1988_v25, 5  ;;  %5902 = vmatmul.mubr.bf16.vlgmr.msra.gmra.mrb[80].mxu0 %v6230_v61 }
 0x166   : > { %v1883_v0 = vld [vmem:[#allocation2 + $0x3c] sm:$0x1]  ;;  %v2355_v2 = vrot.slane %v2353_v38, 4  ;;  %v2358_v53 = vrot.slane %v2356_v39, 5  ;;  %v1030_v6 = vsel %vm6517_vm4, 0, %v1029_v49  ;;  %v606_v8 = vpop.f32.mrb[60].mxu0  ;;  %5778 = vmatpush3.bf16.msra.mxu1 %v6193_v44  ;;  %v1977_v14 = vor.u32 %v7123_v56, %v7105_v37  ;;  %5934 = vmatpush3.bf16.msra.mxu0 %v6229_v42 }
 0x167   : > { %1242 = vst [vmem:[#allocation2 + $0xf8] sm:$0xf] %v5496_v58  ;;  %v5497_v10 = vpack.c.bf16 %v683_v16, %v683_v16  ;;  %v2323_v17 = vld [vmem:[#allocation2 + $0x4c] sm:$0x1]  ;;  %v2325_v32 = vld [vmem:[#allocation2 + $0x54] sm:$0x1]  ;;  %v652_v22 = vadd.f32 %v6924_v45, %v606_v8  ;;  %v2345_v11 = vor.u32 %v2344_v51, %v2341_v63  ;;  %5779 = vmatprep.subr.bf16.mxu1 %v6195_v54 }
 0x168   : > { %1031 = vst [vmem:[#allocation2 + $0x84] sm:$0x1] %v1030_v6  ;;  %v6241_v1 = vld [vmem:[#allocation2 + $0xb0] ss:$8 sps:$4 sm:$0xff]   ;;  %v1885_v13 = vld [vmem:[#allocation2 + $0x44] sm:$0x1]  ;;  %v2359_v28 = vor.u32 %v2358_v53, %v2355_v2  ;;  %v1991_v37 = vor.u32 %v1990_v4, %v7125_v57  ;;  %5935 = vmatprep.subr.bf16.mxu0 %v6232_v59  ;;  %v5115_v55 = vcombine.low %v1927_v43, %v1941_v41 }
 0x169   : > { %1243 = vst [vmem:[#allocation2 + $0x100] sm:$0xf] %v5497_v10  ;;  %v608_v19 = vpop.f32.mrb[61].mxu0  ;;  %v1980_v15 = vshll.u32 %v1883_v0, 16  ;;  %v6197_v21 = vld [vmem:[%s7782_s3 + $0xc0] sm:$0xff]   ;;  %v2348_v34 = vshll.u32 %v2323_v17, 16  ;;  %5905 = vmatprep.mubr.bf16.mxu0 %v6241_v1  ;;  %v5116_v25 = vcombine.low %v1955_v27, %v1969_v7 }
 0x16a   : > { %v7154_v26 = vadd.f32 %v6935_v47, %v608_v19  ;;  %v610_v18 = vpop.f32.mrb[62].mxu0  ;;  %v2362_v5 = vshll.u32 %v2325_v32, 16  ;;  %v684_v30 = vmax.f32 %v652_v22, 0.0  ;;  %v1994_v40 = vshll.u32 %v1885_v13, 16  ;;  %v6234_v47 = vld [vmem:[%s7782_s3 + $0x310] sm:$0xff]   ;;  %5780 = vmatpush3.bf16.msra.mxu1 %v6195_v54  ;;  %5936 = vmatpush3.bf16.msra.mxu0 %v6232_v59  ;;  %v6236_v54 = vld [vmem:[%s7782_s3 + $0x318] sm:$0xff]  }
 0x16b   : > { %v653_v12 = vadd.f32 %v6924_v45, %v610_v18  ;;  %v612_v52 = vpop.f32.mrb[63].mxu0  ;;  %v1982_v38 = vrot.slane %v1980_v15, 5  ;;  %5813 = vmatprep.subr.bf16.mxu1 %v6197_v21  ;;  %v6199_v45 = vld [vmem:[%s7782_s3 + $0xc8] sm:$0xff]   ;;  %v2346_v39 = vrot.slane %v2345_v11, 4  ;;  %v2350_v42 = vrot.slane %v2348_v34, 5  ;;  %5937 = vmatprep.subr.bf16.mxu0 %v6234_v47  ;;  %v6201_v58 = vld [vmem:[%s7782_s3 + $0xd0] sm:$0xff]  }
 0x16c   : > { %v7165_v20 = vadd.f32 %v6945_v3, %v612_v52  ;;  %v5498_v35 = vpack.c.bf16 %v684_v30, %v684_v30  ;;  %v2360_v46 = vrot.slane %v2359_v28, 4  ;;  %v2364_v36 = vrot.slane %v2362_v5, 5  ;;  %v6243_v57 = vld [vmem:[#allocation2 + $0xc0] ss:$8 sps:$4 sm:$0xff]   ;;  %v2332_v4 = vld [vmem:[#allocation2 + $0x70] sm:$0xf] }
 0x16d   : > { %v685_v44 = vmax.f32 %v653_v12, 0.0  ;;  %v1978_v3 = vrot.slane %v1977_v14, 4  ;;  %v1992_v49 = vrot.slane %v1991_v37, 4  ;;  %v1996_v56 = vrot.slane %v1994_v40, 5  ;;  %5782 = vmatmul.mubr.bf16.vlgmr.msra.gmra.mrb[24].mxu1 %v5115_v55  ;;  %v6246_v62 = vld [vmem:[#allocation2 + $0x98] ss:$8 sps:$4 sm:$0xff]   ;;  %5906 = vmatmul.mubr.bf16.gmra.mrb[84].mxu0 %v6243_v57 }
 0x16e   : > { %1244 = vst [vmem:[#allocation2 + $0x108] sm:$0xf] %v5498_v35  ;;  %5785 = vmatprep.mubr.bf16.mxu1 %v5116_v25  ;;  %5814 = vmatpush3.bf16.msra.mxu1 %v6197_v21  ;;  %v2351_v16 = vsel %vm6712_vm10, %v2346_v39, %v2350_v42  ;;  %v2365_v63 = vsel %vm6712_vm10, %v2360_v46, %v2364_v36  ;;  %v6238_v59 = vld [vmem:[%s7782_s3 + $0x320] sm:$0xff]   ;;  %v2330_v0 = vld [vmem:[#allocation2 + $0x68] sm:$0xf]  ;;  %v6205_v6 = vld [vmem:[%s7782_s3 + $0xd8] sm:$0xff]  }
 0x16f   : > { %v5499_v48 = vpack.c.bf16 %v685_v44, %v685_v44  ;;  %5815 = vmatprep.subr.bf16.mxu1 %v6199_v45  ;;  %5938 = vmatpush3.bf16.msra.mxu0 %v6234_v47  ;;  %v1983_v51 = vsel %vm6712_vm10, %v1978_v3, %v1982_v38  ;;  %v1997_v61 = vsel %vm6712_vm10, %v1992_v49, %v1996_v56  ;;  %v2326_v10 = vld [vmem:[#allocation2 + $0x58] sm:$0xf]  ;;  %v6240_v17 = vld [vmem:[%s7782_s3 + $0x328] sm:$0xff]   ;;  %v2328_v32 = vld [vmem:[#allocation2 + $0x60] sm:$0xf]  ;;  %v2395_v1 = vshrl.u32 %v2330_v0, 16 }
 0x170   : > { %5939 = vmatprep.subr.bf16.mxu0 %v6236_v54  ;;  %5949 = vmatprep.mubr.bf16.mxu0 %v6246_v62  ;;  %v5170_v2 = vcombine.low %v2351_v16, %v2365_v63  ;;  %v5117_v53 = vcombine.low %v1983_v51, %v1997_v61  ;;  %v2398_v8 = vshll.u32 %v2330_v0, 16  ;;  %v2409_v43 = vshrl.u32 %v2332_v4, 16  ;;  %v1032_v13 = vld [vmem:[#allocation2 + $0x8c] sm:$0x1]  ;;  %v6207_v22 = vld [vmem:[%s7782_s3 + $0xe0] sm:$0xff]   ;;  %v6244_v34 = vld [vmem:[%s7782_s3 + $0x330] sm:$0xff]  }
 0x171   : > { %1245 = vst [vmem:[#allocation2 + $0x110] sm:$0xf] %v5499_v48  ;;  %v2412_v41 = vshll.u32 %v2332_v4, 16  ;;  %v2367_v27 = vshrl.u32 %v2326_v10, 16  ;;  %v2370_v7 = vshll.u32 %v2326_v10, 16  ;;  %v2381_v19 = vshrl.u32 %v2328_v32, 16 }
 0x172   : > { %5816 = vmatpush3.bf16.msra.mxu1 %v6199_v45  ;;  %v2384_v14 = vshll.u32 %v2328_v32, 16  ;;  %v2397_v15 = vrot.slane %v2395_v1, 4  ;;  %v2400_v11 = vrot.slane %v2398_v8, 5  ;;  %v2411_v18 = vrot.slane %v2409_v43, 4  ;;  %v6211_v28 = vld [vmem:[%s7782_s3 + $0xe8] sm:$0xff]   ;;  %v6247_v55 = vld [vmem:[%s7782_s3 + $0x338] sm:$0xff]  }
 0x173   : > { %5817 = vmatprep.subr.bf16.mxu1 %v6201_v58  ;;  %5940 = vmatpush3.bf16.msra.mxu0 %v6236_v54  ;;  %v2414_v21 = vrot.slane %v2412_v41, 5  ;;  %v2331_v5 = vld [vmem:[#allocation2 + $0x6c] sm:$0x1]  ;;  %v2333_v30 = vld [vmem:[#allocation2 + $0x74] sm:$0x1]  ;;  %v1033_v52 = vsel %vm6517_vm4, 0, %v1032_v13 }
 0x174   : > { %5941 = vmatprep.subr.bf16.mxu0 %v6238_v59  ;;  %v2334_v12 = vld [vmem:[#allocation2 + $0x78] sm:$0xf]  ;;  %v2369_v37 = vrot.slane %v2367_v27, 4  ;;  %v2372_v40 = vrot.slane %v2370_v7, 5  ;;  %v2336_v47 = vld [vmem:[#allocation2 + $0x80] sm:$0xf]  ;;  %v2401_v45 = vor.u32 %v2400_v11, %v2397_v15 }
 0x175   : > { %5786 = vmatmul.mubr.bf16.gmra.mrb[28].mxu1 %v5117_v53  ;;  %1034 = vst [vmem:[#allocation2 + $0x8c] sm:$0x1] %v1033_v52  ;;  %v2327_v35 = vld [vmem:[#allocation2 + $0x5c] sm:$0x1]  ;;  %v2383_v44 = vrot.slane %v2381_v19, 4  ;;  %v2386_v25 = vrot.slane %v2384_v14, 5  ;;  %v2415_v42 = vor.u32 %v2414_v21, %v2411_v18 }
 0x176   : > { %5818 = vmatpush3.bf16.msra.mxu1 %v6201_v58  ;;  %5829 = vmatprep.mubr.bf16.mxu1 %v5170_v2  ;;  %v2329_v38 = vld [vmem:[#allocation2 + $0x64] sm:$0x1]  ;;  %v2404_v39 = vshll.u32 %v2331_v5, 16  ;;  %v2418_v46 = vshll.u32 %v2333_v30, 16  ;;  %v2774_v36 = vld [vmem:[#allocation2 + $0x50] sm:$0xf]  ;;  %v2373_v62 = vor.u32 %v2372_v40, %v2369_v37 }
 0x177   : > { %5819 = vmatprep.subr.bf16.mxu1 %v6205_v6  ;;  %5942 = vmatpush3.bf16.msra.mxu0 %v6238_v59  ;;  %v2423_v48 = vshrl.u32 %v2334_v12, 16  ;;  %v2426_v3 = vshll.u32 %v2334_v12, 16  ;;  %v2437_v49 = vshrl.u32 %v2336_v47, 16  ;;  %v2440_v56 = vshll.u32 %v2336_v47, 16  ;;  %v2776_v54 = vld [vmem:[#allocation2 + $0x58] sm:$0xf] }
 0x178   : > { %5943 = vmatprep.subr.bf16.mxu0 %v6240_v17  ;;  %v6213_v57 = vld [vmem:[%s7782_s3 + $0xf0] sm:$0xff]   ;;  %v2376_v58 = vshll.u32 %v2327_v35, 16  ;;  %v2387_v16 = vor.u32 %v2386_v25, %v2383_v44  ;;  %v2390_v63 = vshll.u32 %v2329_v38, 16  ;;  %v2402_v51 = vrot.slane %v2401_v45, 4  ;;  %v6250_v4 = vld [vmem:[%s7782_s3 + $0x140] sm:$0xff]   ;;  %v6215_v2 = vld [vmem:[%s7782_s3 + $0xf8] sm:$0xff]  }
 0x179   : > { %v2406_v61 = vrot.slane %v2404_v39, 5  ;;  %v2416_v59 = vrot.slane %v2415_v42, 4  ;;  %v2420_v0 = vrot.slane %v2418_v46, 5  ;;  %v2791_v53 = vshrl.u32 %v2774_v36, 16  ;;  %v6249_v41 = vld [vmem:[#allocation2 + $0xa8] ss:$8 sps:$4 sm:$0xff]  }
 0x17a   : > { %5820 = vmatpush3.bf16.msra.mxu1 %v6205_v6  ;;  %v2794_v6 = vshll.u32 %v2774_v36, 16  ;;  %v2805_v10 = vshrl.u32 %v2776_v54, 16  ;;  %v2425_v32 = vrot.slane %v2423_v48, 4  ;;  %v2428_v1 = vrot.slane %v2426_v3, 5  ;;  %v2335_v13 = vld [vmem:[#allocation2 + $0x7c] sm:$0x1] }
 0x17b   : > { %5821 = vmatprep.subr.bf16.mxu1 %v6207_v22  ;;  %5944 = vmatpush3.bf16.msra.mxu0 %v6240_v17  ;;  %v2808_v17 = vshll.u32 %v2776_v54, 16  ;;  %v2439_v8 = vrot.slane %v2437_v49, 4  ;;  %v2442_v43 = vrot.slane %v2440_v56, 5  ;;  %v2374_v27 = vrot.slane %v2373_v62, 4  ;;  %v6252_v18 = vld [vmem:[%s7782_s3 + $0x148] sm:$0xff]   ;;  %v6217_v35 = vld [vmem:[%s7782_s3 + $0x2c0] sm:$0xff]  }
 0x17c   : > { %5945 = vmatprep.subr.bf16.mxu0 %v6244_v34  ;;  %v2388_v7 = vrot.slane %v2387_v16, 4  ;;  %v2378_v19 = vrot.slane %v2376_v58, 5  ;;  %v2392_v14 = vrot.slane %v2390_v63, 5  ;;  %v2407_v15 = vsel %vm6712_vm10, %v2402_v51, %v2406_v61  ;;  %v6259_v21 = vld [vmem:[#allocation2 + $0xb8] ss:$8 sps:$4 sm:$0xff]   ;;  %v6254_v45 = vld [vmem:[%s7782_s3 + $0x150] sm:$0xff]  }
 0x17d   : > { %v2421_v11 = vsel %vm6712_vm10, %v2416_v59, %v2420_v0  ;;  %v2807_v5 = vrot.slane %v2805_v10, 4  ;;  %v2810_v30 = vrot.slane %v2808_v17, 5  ;;  %v2429_v12 = vor.u32 %v2428_v1, %v2425_v32  ;;  %v2775_v47 = vld [vmem:[#allocation2 + $0x54] sm:$0x1]  ;;  %v2778_v62 = vld [vmem:[#allocation2 + $0x60] sm:$0xf] }
 0x17e   : > { %5822 = vmatpush3.bf16.msra.mxu1 %v6207_v22  ;;  %v2337_v22 = vld [vmem:[#allocation2 + $0x84] sm:$0x1]  ;;  %v2432_v52 = vshll.u32 %v2335_v13, 16  ;;  %v2443_v37 = vor.u32 %v2442_v43, %v2439_v8  ;;  %v2379_v44 = vsel %vm6712_vm10, %v2374_v27, %v2378_v19  ;;  %v2393_v25 = vsel %vm6712_vm10, %v2388_v7, %v2392_v14  ;;  %v6256_v58 = vld [vmem:[%s7782_s3 + $0x158] sm:$0xff]   ;;  %v1074_v59 = vld [vmem:[#allocation2 + $0xd0] sm:$0x1] }
 0x17f   : > { %5823 = vmatprep.subr.bf16.mxu1 %v6211_v28  ;;  %5946 = vmatpush3.bf16.msra.mxu0 %v6244_v34  ;;  %v2793_v34 = vrot.slane %v2791_v53, 4  ;;  %v2446_v40 = vshll.u32 %v2337_v22, 16  ;;  %v5172_v38 = vcombine.low %v2407_v15, %v2421_v11  ;;  %v2800_v42 = vshll.u32 %v2775_v47, 16  ;;  %v2780_v53 = vld [vmem:[#allocation2 + $0x68] sm:$0xf]  ;;  %v6258_v10 = vld [vmem:[%s7782_s3 + $0x160] sm:$0xff]  }
 0x180   : > { %5947 = vmatprep.subr.bf16.mxu0 %v6247_v55  ;;  %v2811_v46 = vor.u32 %v2810_v30, %v2807_v5  ;;  %v2430_v48 = vrot.slane %v2429_v12, 4  ;;  %v2434_v3 = vrot.slane %v2432_v52, 5  ;;  %v2444_v49 = vrot.slane %v2443_v37, 4  ;;  %v2782_v7 = vld [vmem:[#allocation2 + $0x70] sm:$0xf]  ;;  %v6225_v13 = vld [vmem:[%s7782_s3 + $0x2d8] sm:$0xff]  }
 0x181   : > { %v2448_v56 = vrot.slane %v2446_v40, 5  ;;  %v5171_v54 = vcombine.low %v2379_v44, %v2393_v25  ;;  %v2802_v63 = vrot.slane %v2800_v42, 5  ;;  %v1075_v17 = vsel %vm6517_vm4, 0, %v1074_v59  ;;  %v2784_v19 = vld [vmem:[#allocation2 + $0x78] sm:$0xf]  ;;  %v6261_v14 = vld [vmem:[%s7782_s3 + $0x168] sm:$0xff]  }
 0x182   : > { %5824 = vmatpush3.bf16.msra.mxu1 %v6211_v28  ;;  %v2796_v28 = vrot.slane %v2794_v6, 5  ;;  %v2812_v51 = vrot.slane %v2811_v46, 4  ;;  %v2435_v0 = vsel %vm6712_vm10, %v2430_v48, %v2434_v3  ;;  %v2819_v6 = vshrl.u32 %v2778_v62, 16  ;;  %1076 = vst [vmem:[#allocation2 + $0xd0] sm:$0x1] %v1075_v17  ;;  %v6227_v15 = vld [vmem:[%s7782_s3 + $0x2e0] sm:$0xff]  }
 0x183   : > { %5825 = vmatprep.subr.bf16.mxu1 %v6213_v57  ;;  %5948 = vmatpush3.bf16.msra.mxu0 %v6247_v55  ;;  %v2777_v55 = vld [vmem:[#allocation2 + $0x5c] sm:$0x1]  ;;  %v2822_v43 = vshll.u32 %v2778_v62, 16  ;;  %v2836_v27 = vshll.u32 %v2780_v53, 16  ;;  %v2779_v11 = vld [vmem:[#allocation2 + $0x64] sm:$0x1] }
 0x184   : > { %5981 = vmatprep.subr.bf16.mxu0 %v6250_v4  ;;  %v2797_v39 = vor.u32 %v2796_v28, %v2793_v34  ;;  %v2814_v36 = vshll.u32 %v2777_v55, 16  ;;  %v2847_v34 = vshrl.u32 %v2782_v7, 16  ;;  %v2850_v28 = vshll.u32 %v2782_v7, 16  ;;  %v6264_v12 = vld [vmem:[%s7782_s3 + $0x170] sm:$0xff]   ;;  %v2781_v52 = vld [vmem:[#allocation2 + $0x6c] sm:$0x1] }
 0x185   : > { %v2838_v30 = vrot.slane %v2836_v27, 5  ;;  %v2783_v37 = vld [vmem:[#allocation2 + $0x74] sm:$0x1]  ;;  %v2861_v40 = vshrl.u32 %v2784_v19, 16  ;;  %v2864_v47 = vshll.u32 %v2784_v19, 16  ;;  %v2828_v25 = vshll.u32 %v2779_v11, 16 }
 0x186   : > { %5826 = vmatpush3.bf16.msra.mxu1 %v6213_v57  ;;  %5950 = vmatmul.mubr.bf16.vlgmr.msra.gmra.mrb[88].mxu0 %v6249_v41  ;;  %v6219_v57 = vld [vmem:[%s7782_s3 + $0x2c8] sm:$0xff]   ;;  %v2798_v16 = vrot.slane %v2797_v39, 4  ;;  %v2816_v61 = vrot.slane %v2814_v36, 5  ;;  %v2833_v41 = vshrl.u32 %v2780_v53, 16  ;;  %v2842_v42 = vshll.u32 %v2781_v52, 16  ;;  %v6266_v62 = vld [vmem:[%s7782_s3 + $0x178] sm:$0xff]  }
 0x187   : > { %5827 = vmatprep.subr.bf16.mxu1 %v6215_v2  ;;  %5982 = vmatpush3.bf16.msra.mxu0 %v6250_v4  ;;  %v2449_v4 = vsel %vm6712_vm10, %v2444_v49, %v2448_v56  ;;  %v2856_v46 = vshll.u32 %v2783_v37, 16  ;;  %v2786_v36 = vld [vmem:[#allocation2 + $0x80] sm:$0xf]  ;;  %v6231_v48 = vld [vmem:[%s7782_s3 + $0x2e8] sm:$0xff]   ;;  %v3226_v49 = vld [vmem:[#allocation2 + $0x90] sm:$0xf] }
 0x188   : > { %5983 = vmatprep.subr.bf16.mxu0 %v6252_v18  ;;  %5953 = vmatprep.mubr.bf16.mxu0 %v6259_v21  ;;  %v5173_v32 = vcombine.low %v2435_v0, %v2449_v4  ;;  %v2803_v1 = vsel %vm6712_vm10, %v2798_v16, %v2802_v63  ;;  %v2817_v8 = vsel %vm6712_vm10, %v2812_v51, %v2816_v61  ;;  %v2824_v21 = vrot.slane %v2822_v43, 5  ;;  %v2788_v3 = vld [vmem:[#allocation2 + $0x88] sm:$0xf]  ;;  %v2785_v63 = vld [vmem:[#allocation2 + $0x7c] sm:$0x1]  ;;  %v6233_v59 = vld [vmem:[%s7782_s3 + $0x2f0] sm:$0xff]  }
 0x189   : > { %v5226_v22 = vcombine.low %v2803_v1, %v2817_v8  ;;  %v2835_v5 = vrot.slane %v2833_v41, 4  ;;  %v6263_v55 = vld [vmem:[#allocation2 + $0xc8] ss:$8 sps:$4 sm:$0xff]   ;;  %v2863_v56 = vrot.slane %v2861_v40, 4  ;;  %v7275_v16 = vrot.slane %v2828_v25, 5  ;;  %v6269_v7 = vld [vmem:[%s7782_s3 + $0x340] sm:$0xff]  }
 0x18a   : > { %5828 = vmatpush3.bf16.msra.mxu1 %v6215_v2  ;;  %v6222_v2 = vld [vmem:[%s7782_s3 + $0x2d0] sm:$0xff]   ;;  %v2875_v61 = vshrl.u32 %v2786_v36, 16  ;;  %v7282_v4 = vrot.slane %v2842_v42, 5  ;;  %v2878_v53 = vshll.u32 %v2786_v36, 16  ;;  %v2870_v43 = vshll.u32 %v2785_v63, 16 }
 0x18b   : > { %5861 = vmatprep.subr.bf16.mxu1 %v6217_v35  ;;  %5984 = vmatpush3.bf16.msra.mxu0 %v6252_v18  ;;  %v2821_v18 = vrot.slane %v2819_v6, 4  ;;  %v2839_v39 = vor.u32 %v2838_v30, %v2835_v5  ;;  %v3243_v6 = vshrl.u32 %v3226_v49, 16  ;;  %v1046_v1 = vld [vmem:[#allocation2 + $0xd4] sm:$0x1]  ;;  %v2889_v41 = vshrl.u32 %v2788_v3, 16 }
 0x18c   : > { %5985 = vmatprep.subr.bf16.mxu0 %v6254_v45  ;;  %v2892_v27 = vshll.u32 %v2788_v3, 16  ;;  %v2877_v19 = vrot.slane %v2875_v61, 4  ;;  %v3227_v11 = vld [vmem:[#allocation2 + $0x94] sm:$0x1]  ;;  %v1214_v5 = vld [vmem:[#allocation2 + $0xe4] sm:$0x1] }
 0x18d   : > { %5830 = vmatmul.mubr.bf16.vlgmr.msra.gmra.mrb[32].mxu1 %v5171_v54  ;;  %v2825_v44 = vor.u32 %v2824_v21, %v2821_v18  ;;  %v2866_v54 = vrot.slane %v2864_v47, 5  ;;  %v7280_v0 = vrot.slane %v2839_v39, 4  ;;  %v3229_v18 = vld [vmem:[#allocation2 + $0x9c] sm:$0x1]  ;;  %v6272_v21 = vld [vmem:[%s7782_s3 + $0x348] sm:$0xff]   ;;  %v1215_v39 = vsel %vm6517_vm4, 0, %v1214_v5 }
 0x18e   : > { %5833 = vmatprep.mubr.bf16.mxu1 %v5172_v38  ;;  %5862 = vmatpush3.bf16.msra.mxu1 %v6217_v35  ;;  %v6268_v35 = vld [vmem:[#allocation2 + $0xd8] ss:$8 sps:$4 sm:$0xff]   ;;  %v2849_v38 = vrot.slane %v2847_v34, 4  ;;  %v1047_v34 = vsel %vm6517_vm4, 0, %v1046_v1  ;;  %v2787_v30 = vld [vmem:[#allocation2 + $0x84] sm:$0x1] }
 0x18f   : > { %5863 = vmatprep.subr.bf16.mxu1 %v6219_v57  ;;  %5986 = vmatpush3.bf16.msra.mxu0 %v6254_v45  ;;  %v2852_v45 = vrot.slane %v2850_v28, 5  ;;  %v2867_v8 = vor.u32 %v2866_v54, %v2863_v56  ;;  %v1211_v28 = vld [vmem:[#allocation2 + $0xdc] sm:$0x1]  ;;  %1048 = vst [vmem:[#allocation2 + $0xd4] sm:$0x1] %v1047_v34  ;;  %v2845_v36 = vsel %vm6712_vm10, %v7280_v0, %v7282_v4  ;;  %v2884_v3 = vshll.u32 %v2787_v30, 16 }
 0x190   : > { %5987 = vmatprep.subr.bf16.mxu0 %v6256_v58  ;;  %5954 = vmatmul.mubr.bf16.gmra.mrb[92].mxu0 %v6263_v55  ;;  %v2872_v55 = vrot.slane %v2870_v43, 5  ;;  %v6282_v25 = vld [vmem:[#allocation2 + $0xf8] ss:$8 sps:$4 sm:$0xff]   ;;  %v1217_v42 = vld [vmem:[#allocation2 + $0xec] sm:$0x1] }
 0x191   : > { %5997 = vmatprep.mubr.bf16.mxu0 %v6268_v35  ;;  %v2853_v51 = vor.u32 %v2852_v45, %v2849_v38  ;;  %v2868_v47 = vrot.slane %v2867_v8, 4  ;;  %v2891_v35 = vrot.slane %v2889_v41, 4  ;;  %v2789_v38 = vld [vmem:[#allocation2 + $0x8c] sm:$0x1]  ;;  %v1212_v45 = vsel %vm6517_vm4, 0, %v1211_v28  ;;  %v6237_v56 = vld [vmem:[%s7782_s3 + $0x180] sm:$0xff]  }
 0x192   : > { %5864 = vmatpush3.bf16.msra.mxu1 %v6219_v57  ;;  %v3228_v57 = vld [vmem:[#allocation2 + $0x98] sm:$0xf]  ;;  %1213 = vst [vmem:[#allocation2 + $0xdc] sm:$0x1] %v1212_v45  ;;  %1216 = vst [vmem:[#allocation2 + $0xe4] sm:$0x1] %v1215_v39 }
 0x193   : > { %5865 = vmatprep.subr.bf16.mxu1 %v6222_v2  ;;  %5988 = vmatpush3.bf16.msra.mxu0 %v6256_v58  ;;  %v7273_v58 = vrot.slane %v2825_v44, 4  ;;  %v3257_v17 = vshrl.u32 %v3228_v57, 16  ;;  %v2894_v44 = vrot.slane %v2892_v27, 5  ;;  %v2898_v63 = vshll.u32 %v2789_v38, 16  ;;  %v6276_v43 = vld [vmem:[%s7782_s3 + $0x358] sm:$0xff]   ;;  %v6278_v5 = vld [vmem:[%s7782_s3 + $0x360] sm:$0xff]  }
 0x194   : > { %5989 = vmatprep.subr.bf16.mxu0 %v6258_v10  ;;  %v1218_v61 = vsel %vm6517_vm4, 0, %v1217_v42  ;;  %v2873_v0 = vsel %vm6712_vm10, %v2868_v47, %v2872_v55  ;;  %v6245_v47 = vld [vmem:[%s7782_s3 + $0x198] sm:$0xff]   ;;  %v3234_v55 = vld [vmem:[#allocation2 + $0xb0] sm:$0xf]  ;;  %v3232_v38 = vld [vmem:[#allocation2 + $0xa8] sm:$0xf] }
 0x195   : > { %5834 = vmatmul.mubr.bf16.gmra.mrb[36].mxu1 %v5173_v32  ;;  %v3260_v32 = vshll.u32 %v3228_v57, 16  ;;  %v3259_v37 = vrot.slane %v3257_v17, 4  ;;  %v3252_v57 = vshll.u32 %v3227_v11, 16  ;;  %1219 = vst [vmem:[#allocation2 + $0xec] sm:$0x1] %v1218_v61  ;;  %v6239_v17 = vld [vmem:[%s7782_s3 + $0x188] sm:$0xff]  }
 0x196   : > { %5866 = vmatpush3.bf16.msra.mxu1 %v6222_v2  ;;  %5877 = vmatprep.mubr.bf16.mxu1 %v5226_v22  ;;  %v7284_v2 = vrot.slane %v2856_v46, 5  ;;  %v7292_v22 = vrot.slane %v2853_v51, 4  ;;  %v2831_v46 = vsel %vm6712_vm10, %v7273_v58, %v7275_v16  ;;  %v3266_v58 = vshll.u32 %v3229_v18, 16  ;;  %v6274_v51 = vld [vmem:[%s7782_s3 + $0x350] sm:$0xff]   ;;  %v6248_v42 = vld [vmem:[%s7782_s3 + $0x1a0] sm:$0xff]  }
 0x197   : > { %5867 = vmatprep.subr.bf16.mxu1 %v6225_v13  ;;  %5990 = vmatpush3.bf16.msra.mxu0 %v6258_v10  ;;  %v3246_v10 = vshll.u32 %v3226_v49, 16  ;;  %v3262_v40 = vrot.slane %v3260_v32, 5  ;;  %v1220_v49 = vld [vmem:[#allocation2 + $0xf4] sm:$0x1]  ;;  %v2895_v16 = vor.u32 %v2894_v44, %v2891_v35  ;;  %v3254_v1 = vrot.slane %v3252_v57, 5  ;;  %v6280_v44 = vld [vmem:[%s7782_s3 + $0x368] sm:$0xff]  }
 0x198   : > { %5991 = vmatprep.subr.bf16.mxu0 %v6261_v14  ;;  %v1221_v4 = vsel %vm6517_vm4, 0, %v1220_v49  ;;  %v3268_v8 = vrot.slane %v3266_v58, 5  ;;  %v3236_v35 = vld [vmem:[#allocation2 + $0xb8] sm:$0xf]  ;;  %v3285_v57 = vshrl.u32 %v3232_v38, 16  ;;  %v6284_v58 = vld [vmem:[%s7782_s3 + $0x370] sm:$0xff]  }
 0x199   : > { %v3248_v52 = vrot.slane %v3246_v10, 5  ;;  %v2886_v10 = vrot.slane %v2884_v3, 5  ;;  %1222 = vst [vmem:[#allocation2 + $0xf4] sm:$0x1] %v1221_v4  ;;  %v2896_v27 = vrot.slane %v2895_v16, 4  ;;  %v3313_v3 = vshrl.u32 %v3236_v35, 16 }
 0x19a   : > { %5868 = vmatpush3.bf16.msra.mxu1 %v6225_v13  ;;  %v6235_v13 = vld [vmem:[%s7782_s3 + $0x2f8] sm:$0xff]   ;;  %v3316_v49 = vshll.u32 %v3236_v35, 16  ;;  %v6251_v16 = vld [vmem:[%s7782_s3 + $0x1a8] sm:$0xff]  }
 0x19b   : > { %5869 = vmatprep.subr.bf16.mxu1 %v6227_v15  ;;  %5992 = vmatpush3.bf16.msra.mxu0 %v6261_v14  ;;  %v6271_v14 = vld [vmem:[#allocation2 + $0xe8] ss:$8 sps:$4 sm:$0xff]   ;;  %v3237_v61 = vld [vmem:[#allocation2 + $0xbc] sm:$0x1] }
 0x19c   : > { %5993 = vmatprep.subr.bf16.mxu0 %v6264_v12 }
 0x19e   : > { %5870 = vmatpush3.bf16.msra.mxu1 %v6227_v15  ;;  %v2880_v15 = vrot.slane %v2878_v53, 5  ;;  %v5227_v53 = vcombine.low %v2831_v46, %v2845_v36  ;;  %v3231_v46 = vld [vmem:[#allocation2 + $0xa4] sm:$0x1]  ;;  %v3299_v36 = vshrl.u32 %v3234_v55, 16 }
 0x19f   : > { %5871 = vmatprep.subr.bf16.mxu1 %v6231_v48  ;;  %5994 = vmatpush3.bf16.msra.mxu0 %v6264_v12  ;;  %v3245_v12 = vrot.slane %v3243_v6, 4 }
 0x1a0   : > { %5995 = vmatprep.subr.bf16.mxu0 %v6266_v62 }
 0x1a1   : > { %v3249_v54 = vor.u32 %v3248_v52, %v3245_v12  ;;  %v1229_v52 = vld [vmem:[#allocation2 + $0x10c] sm:$0x1] }
 0x1a2   : > { %5872 = vmatpush3.bf16.msra.mxu1 %v6231_v48  ;;  %v2881_v48 = vor.u32 %v2880_v15, %v2877_v19  ;;  %v6286_v19 = vld [vmem:[#allocation2 + $0xe0] ss:$8 sps:$4 sm:$0xff]   ;;  %v6242_v15 = vld [vmem:[%s7782_s3 + $0x190] sm:$0xff]   ;;  %v1230_v45 = vsel %vm6517_vm4, 0, %v1229_v52  ;;  %v6255_v52 = vld [vmem:[%s7782_s3 + $0x1b8] sm:$0xff]  }
 0x1a3   : > { %5873 = vmatprep.subr.bf16.mxu1 %v6233_v59  ;;  %5996 = vmatpush3.bf16.msra.mxu0 %v6266_v62  ;;  %v3263_v62 = vor.u32 %v3262_v40, %v3259_v37  ;;  %v3250_v32 = vrot.slane %v3249_v54, 4  ;;  %v1232_v37 = vld [vmem:[#allocation2 + $0x114] sm:$0x1]  ;;  %1231 = vst [vmem:[#allocation2 + $0x10c] sm:$0x1] %v1230_v45 }
 0x1a4   : > { %6029 = vmatprep.subr.bf16.mxu0 %v6269_v7  ;;  %v2882_v6 = vrot.slane %v2881_v48, 4  ;;  %v1233_v39 = vsel %vm6517_vm4, 0, %v1232_v37  ;;  %v3302_v48 = vshll.u32 %v3234_v55, 16  ;;  %v3241_v37 = vld [vmem:[#allocation2 + $0xcc] sm:$0x1] }
 0x1a5   : > { %v3255_v11 = vsel %vm6712_vm10, %v3250_v32, %v3254_v1  ;;  %1234 = vst [vmem:[#allocation2 + $0x114] sm:$0x1] %v1233_v39  ;;  %v3287_v1 = vrot.slane %v3285_v57, 4  ;;  %v6289_v39 = vld [vmem:[#allocation2 + $0xf0] ss:$8 sps:$4 sm:$0xff]  }
 0x1a6   : > { %5874 = vmatpush3.bf16.msra.mxu1 %v6233_v59  ;;  %5998 = vmatmul.mubr.bf16.vlgmr.msra.gmra.mrb[96].mxu0 %v6271_v14  ;;  %v2859_v59 = vsel %vm6712_vm10, %v7292_v22, %v7284_v2  ;;  %v3264_v2 = vrot.slane %v3263_v62, 4  ;;  %v1223_v22 = vld [vmem:[#allocation2 + $0xfc] sm:$0x1]  ;;  %v1226_v14 = vld [vmem:[#allocation2 + $0x104] sm:$0x1]  ;;  %v2887_v34 = vsel %vm6712_vm10, %v2882_v6, %v2886_v10  ;;  %v3288_v62 = vshll.u32 %v3232_v38, 16 }
 0x1a7   : > { %5875 = vmatprep.subr.bf16.mxu1 %v6235_v13  ;;  %6030 = vmatpush3.bf16.msra.mxu0 %v6269_v7  ;;  %v5228_v41 = vcombine.low %v2859_v59, %v2873_v0  ;;  %v2900_v7 = vrot.slane %v2898_v63, 5  ;;  %v1227_v30 = vsel %vm6517_vm4, 0, %v1226_v14  ;;  %v3280_v63 = vshll.u32 %v3231_v46, 16  ;;  %v3238_v59 = vld [vmem:[#allocation2 + $0xc0] sm:$0xf]  ;;  %v6253_v14 = vld [vmem:[%s7782_s3 + $0x1b0] sm:$0xff]  }
 0x1a8   : > { %6031 = vmatprep.subr.bf16.mxu0 %v6272_v21  ;;  %6001 = vmatprep.mubr.bf16.mxu0 %v6282_v25  ;;  %v3269_v18 = vsel %vm6712_vm10, %v3264_v2, %v3268_v8  ;;  %1228 = vst [vmem:[#allocation2 + $0x104] sm:$0x1] %v1227_v30  ;;  %v3230_v25 = vld [vmem:[#allocation2 + $0xa0] sm:$0xf]  ;;  %v3301_v0 = vrot.slane %v3299_v36, 4  ;;  %v3304_v4 = vrot.slane %v3302_v48, 5 }
 0x1a9   : > { %v2901_v28 = vsel %vm6712_vm10, %v2896_v27, %v2900_v7  ;;  %v5282_v12 = vcombine.low %v3255_v11, %v3269_v18  ;;  %v3274_v54 = vshll.u32 %v3230_v25, 16  ;;  %v3318_v6 = vrot.slane %v3316_v49, 5  ;;  %v3240_v10 = vld [vmem:[#allocation2 + $0xc8] sm:$0xf]  ;;  %v6287_v8 = vld [vmem:[%s7782_s3 + $0x378] sm:$0xff]  }
 0x1aa   : > { %5876 = vmatpush3.bf16.msra.mxu1 %v6235_v13  ;;  %v6283_v13 = vld [vmem:[#allocation2 + $0x108] ss:$8 sps:$4 sm:$0xff]   ;;  %v5229_v40 = vcombine.low %v2887_v34, %v2901_v28  ;;  %v3290_v2 = vrot.slane %v3288_v62, 5  ;;  %v3327_v27 = vshrl.u32 %v3238_v59, 16  ;;  %v3330_v7 = vshll.u32 %v3238_v59, 16 }
 0x1ab   : > { %5909 = vmatprep.subr.bf16.mxu1 %v6237_v56  ;;  %6032 = vmatpush3.bf16.msra.mxu0 %v6272_v21  ;;  %v1224_v21 = vsel %vm6517_vm4, 0, %v1223_v22  ;;  %v3276_v32 = vrot.slane %v3274_v54, 5  ;;  %v3344_v22 = vshll.u32 %v3240_v10, 16  ;;  %v3282_v28 = vrot.slane %v3280_v63, 5  ;;  %v3680_v62 = vld [vmem:[#allocation2 + $0x9c] sm:$0x1] }
 0x1ac   : > { %6033 = vmatprep.subr.bf16.mxu0 %v6274_v51  ;;  %1225 = vst [vmem:[#allocation2 + $0xfc] sm:$0x1] %v1224_v21  ;;  %v3322_v21 = vshll.u32 %v3237_v61, 16 }
 0x1ad   : > { %5878 = vmatmul.mubr.bf16.vlgmr.msra.gmra.mrb[40].mxu1 %v5227_v53  ;;  %v3315_v53 = vrot.slane %v3313_v3, 4  ;;  %v3346_v45 = vrot.slane %v3344_v22, 5  ;;  %v6295_v3 = vld [vmem:[#allocation2 + $0x100] ss:$8 sps:$4 sm:$0xff]  }
 0x1ae   : > { %5881 = vmatprep.mubr.bf16.mxu1 %v5228_v41  ;;  %5910 = vmatpush3.bf16.msra.mxu1 %v6237_v56  ;;  %v3271_v56 = vshrl.u32 %v3230_v25, 16  ;;  %v3679_v41 = vld [vmem:[#allocation2 + $0x98] sm:$0xf]  ;;  %v3332_v25 = vrot.slane %v3330_v7, 5  ;;  %v3324_v48 = vrot.slane %v3322_v21, 5 }
 0x1af   : > { %5911 = vmatprep.subr.bf16.mxu1 %v6239_v17  ;;  %6034 = vmatpush3.bf16.msra.mxu0 %v6274_v51  ;;  %v3235_v51 = vld [vmem:[#allocation2 + $0xb4] sm:$0x1]  ;;  %v3319_v18 = vor.u32 %v3318_v6, %v3315_v53  ;;  %v1207_v53 = vld [vmem:[#allocation2 + $0x11c] sm:$0x1]  ;;  %v6257_v6 = vld [vmem:[%s7782_s3 + $0x380] sm:$0xff]  }
 0x1b0   : > { %6035 = vmatprep.subr.bf16.mxu0 %v6276_v43  ;;  %6002 = vmatmul.mubr.bf16.gmra.mrb[100].mxu0 %v6283_v13  ;;  %v3341_v13 = vshrl.u32 %v3240_v10, 16  ;;  %v3308_v11 = vshll.u32 %v3235_v51, 16  ;;  %v1208_v7 = vsel %vm6517_vm4, 0, %v1207_v53 }
 0x1b1   : > { %6045 = vmatprep.mubr.bf16.mxu0 %v6286_v19  ;;  %v3681_v19 = vld [vmem:[#allocation2 + $0xa0] sm:$0xf]  ;;  %v3320_v36 = vrot.slane %v3319_v18, 4  ;;  %1209 = vst [vmem:[#allocation2 + $0x11c] sm:$0x1] %v1208_v7 }
 0x1b2   : > { %5912 = vmatpush3.bf16.msra.mxu1 %v6239_v17  ;;  %v3273_v17 = vrot.slane %v3271_v56, 4  ;;  %v3710_v55 = vshrl.u32 %v3681_v19, 16  ;;  %v3713_v35 = vshll.u32 %v3681_v19, 16  ;;  %v3343_v38 = vrot.slane %v3341_v13, 4  ;;  %v6297_v18 = vld [vmem:[#allocation2 + $0x110] ss:$8 sps:$4 sm:$0xff]  }
 0x1b3   : > { %5913 = vmatprep.subr.bf16.mxu1 %v6242_v15  ;;  %6036 = vmatpush3.bf16.msra.mxu0 %v6276_v43  ;;  %v3233_v43 = vld [vmem:[#allocation2 + $0xac] sm:$0x1]  ;;  %v3310_v46 = vrot.slane %v3308_v11, 5 }
 0x1b4   : > { %6037 = vmatprep.subr.bf16.mxu0 %v6278_v5  ;;  %v3277_v34 = vor.u32 %v3276_v32, %v3273_v17  ;;  %v3294_v30 = vshll.u32 %v3233_v43, 16  ;;  %v3715_v51 = vrot.slane %v3713_v35, 5  ;;  %v3347_v59 = vor.u32 %v3346_v45, %v3343_v38  ;;  %v6260_v11 = vld [vmem:[%s7782_s3 + $0x388] sm:$0xff]   ;;  %v6265_v38 = vld [vmem:[%s7782_s3 + $0x398] sm:$0xff]  }
 0x1b5   : > { %5882 = vmatmul.mubr.bf16.gmra.mrb[44].mxu1 %v5229_v40  ;;  %v3696_v40 = vshrl.u32 %v3679_v41, 16  ;;  %v3325_v17 = vsel %vm6712_vm10, %v3320_v36, %v3324_v48 }
 0x1b6   : > { %5914 = vmatpush3.bf16.msra.mxu1 %v6242_v15  ;;  %5925 = vmatprep.mubr.bf16.mxu1 %v5282_v12  ;;  %v3305_v15 = vor.u32 %v3304_v4, %v3301_v0  ;;  %v3239_v12 = vld [vmem:[#allocation2 + $0xc4] sm:$0x1]  ;;  %v3278_v49 = vrot.slane %v3277_v34, 4  ;;  %v3296_v54 = vrot.slane %v3294_v30, 5  ;;  %v3350_v0 = vshll.u32 %v3241_v37, 16 }
 0x1b7   : > { %5915 = vmatprep.subr.bf16.mxu1 %v6245_v47  ;;  %6038 = vmatpush3.bf16.msra.mxu0 %v6278_v5  ;;  %v3291_v5 = vor.u32 %v3290_v2, %v3287_v1  ;;  %v3336_v57 = vshll.u32 %v3239_v12, 16  ;;  %v3682_v4 = vld [vmem:[#allocation2 + $0xa4] sm:$0x1]  ;;  %v3348_v19 = vrot.slane %v3347_v59, 4  ;;  %v3683_v37 = vld [vmem:[#allocation2 + $0xa8] sm:$0xf] }
 0x1b8   : > { %6039 = vmatprep.subr.bf16.mxu0 %v6280_v44  ;;  %v3283_v32 = vsel %vm6712_vm10, %v3278_v49, %v3282_v28  ;;  %v1235_v35 = vld [vmem:[#allocation2 + $0x11c] sm:$0x1]  ;;  %v3724_v45 = vshrl.u32 %v3683_v37, 16  ;;  %v3689_v49 = vld [vmem:[#allocation2 + $0xc0] sm:$0xf] }
 0x1b9   : > { %v3292_v56 = vrot.slane %v3291_v5, 4  ;;  %v3338_v2 = vrot.slane %v3336_v57, 5  ;;  %v7417_v57 = vld [vmem:[%s7783_s4] ss:$0 sm:$0xff]  ;;  %v3766_v59 = vshrl.u32 %v3689_v49, 16 }
 0x1ba   : > { %5916 = vmatpush3.bf16.msra.mxu1 %v6245_v47  ;;  %v3699_v47 = vshll.u32 %v3679_v41, 16  ;;  %v719_v53 = vadd.f32 %v7417_v57, %v7058_v24  ;;  %v4133_v24 = vld [vmem:[#allocation2 + $0xe0] sm:$0xf] }
 0x1bb   : > { %5917 = vmatprep.subr.bf16.mxu1 %v6248_v42  ;;  %6040 = vmatpush3.bf16.msra.mxu0 %v6280_v44  ;;  %v3329_v44 = vrot.slane %v3327_v27, 4  ;;  %v3297_v1 = vsel %vm6712_vm10, %v3292_v56, %v3296_v54  ;;  %v3719_v27 = vshll.u32 %v3682_v4, 16  ;;  %v3686_v56 = vld [vmem:[#allocation2 + $0xb4] sm:$0x1]  ;;  %v3726_v54 = vrot.slane %v3724_v45, 4 }
 0x1bc   : > { %6041 = vmatprep.subr.bf16.mxu0 %v6284_v58  ;;  %v3701_v63 = vrot.slane %v3699_v47, 5  ;;  %v3747_v4 = vshll.u32 %v3686_v56, 16 }
 0x1bd   : > { %v3333_v61 = vor.u32 %v3332_v25, %v3329_v44  ;;  %v3721_v5 = vrot.slane %v3719_v27, 5  ;;  %v3685_v44 = vld [vmem:[#allocation2 + $0xb0] sm:$0xf]  ;;  %v1236_v25 = vsel %vm6517_vm4, 0, %v1235_v35 }
 0x1be   : > { %5918 = vmatpush3.bf16.msra.mxu1 %v6248_v42  ;;  %v3306_v42 = vrot.slane %v3305_v15, 4  ;;  %v5283_v15 = vcombine.low %v3283_v32, %v3297_v1  ;;  %1237 = vst [vmem:[#allocation2 + $0x11c] sm:$0x1] %v1236_v25  ;;  %v3738_v36 = vshrl.u32 %v3685_v44, 16  ;;  %v3741_v48 = vshll.u32 %v3685_v44, 16 }
 0x1bf   : > { %5919 = vmatprep.subr.bf16.mxu1 %v6251_v16  ;;  %6042 = vmatpush3.bf16.msra.mxu0 %v6284_v58  ;;  %v3698_v58 = vrot.slane %v3696_v40, 4  ;;  %v3334_v22 = vrot.slane %v3333_v61, 4  ;;  %v3691_v32 = vld [vmem:[#allocation2 + $0xc8] sm:$0xf]  ;;  %v4131_v1 = vld [vmem:[#allocation2 + $0xd8] sm:$0xf] }
 0x1c0   : > { %6043 = vmatprep.subr.bf16.mxu0 %v6287_v8  ;;  %v3311_v10 = vsel %vm6712_vm10, %v3306_v42, %v3310_v46  ;;  %v3727_v42 = vshll.u32 %v3683_v37, 16  ;;  %v3684_v46 = vld [vmem:[#allocation2 + $0xac] sm:$0x1]  ;;  %v3743_v61 = vrot.slane %v3741_v48, 5 }
 0x1c1   : > { %v3702_v43 = vor.u32 %v3701_v63, %v3698_v58  ;;  %v5284_v13 = vcombine.low %v3311_v10, %v3325_v17  ;;  %v3339_v30 = vsel %vm6712_vm10, %v3334_v22, %v3338_v2  ;;  %v3733_v58 = vshll.u32 %v3684_v46, 16 }
 0x1c2   : > { %5920 = vmatpush3.bf16.msra.mxu1 %v6251_v16  ;;  %v3712_v16 = vrot.slane %v3710_v55, 4  ;;  %v717_v10 = vadd.f32 %v7417_v57, %v7001_v29  ;;  %v720_v17 = vadd.f32 %v7417_v57, %v7073_v31  ;;  %v718_v2 = vadd.f32 %v7417_v57, %v7014_v9  ;;  %v6273_v9 = vld [vmem:[%s7782_s3 + $0x3b0] sm:$0xff]  }
 0x1c3   : > { %5921 = vmatprep.subr.bf16.mxu1 %v6253_v14  ;;  %6044 = vmatpush3.bf16.msra.mxu0 %v6287_v8  ;;  %v3705_v8 = vshll.u32 %v3680_v62, 16  ;;  %v3703_v21 = vrot.slane %v3702_v43, 4  ;;  %v3729_v62 = vrot.slane %v3727_v42, 5  ;;  %v3688_v43 = vld [vmem:[#allocation2 + $0xbc] sm:$0x1]  ;;  %v7430_v7 = vrot.slane %v3733_v58, 5 }
 0x1c4   : > { %v3716_v41 = vor.u32 %v3715_v51, %v3712_v16  ;;  %v3740_v51 = vrot.slane %v3738_v36, 4  ;;  %v3768_v22 = vrot.slane %v3766_v59, 4  ;;  %v3749_v29 = vrot.slane %v3747_v4, 5 }
 0x1c5   : > { %v3707_v34 = vrot.slane %v3705_v8, 5  ;;  %v3730_v8 = vor.u32 %v3729_v62, %v3726_v54  ;;  %v3780_v31 = vshrl.u32 %v3691_v32, 16 }
 0x1c6   : > { %5922 = vmatpush3.bf16.msra.mxu1 %v6253_v14  ;;  %6046 = vmatmul.mubr.bf16.vlgmr.msra.gmra.mrb[104].mxu0 %v6289_v39  ;;  %v3352_v14 = vrot.slane %v3350_v0, 5  ;;  %v3717_v28 = vrot.slane %v3716_v41, 4  ;;  %v3769_v0 = vshll.u32 %v3689_v49, 16  ;;  %v3692_v49 = vld [vmem:[#allocation2 + $0xcc] sm:$0x1] }
 0x1c7   : > { %5923 = vmatprep.subr.bf16.mxu1 %v6255_v52  ;;  %6049 = vmatprep.mubr.bf16.mxu0 %v6295_v3  ;;  %v3708_v47 = vsel %vm6712_vm10, %v3703_v21, %v3707_v34  ;;  %v3687_v3 = vld [vmem:[#allocation2 + $0xb8] sm:$0xf]  ;;  %v3761_v21 = vshll.u32 %v3688_v43, 16  ;;  %v4151_v34 = vshll.u32 %v4131_v1, 16  ;;  %v3782_v42 = vrot.slane %v3780_v31, 4 }
 0x1c8   : > { %v3353_v12 = vsel %vm6712_vm10, %v3348_v19, %v3352_v14  ;;  %v3722_v55 = vsel %vm6712_vm10, %v3717_v28, %v3721_v5  ;;  %v3752_v63 = vshrl.u32 %v3687_v3, 16  ;;  %v3755_v16 = vshll.u32 %v3687_v3, 16  ;;  %v3693_v14 = vld [vmem:[#allocation2 + $0xd0] sm:$0xf] }
 0x1c9   : > { %v5285_v40 = vcombine.low %v3339_v30, %v3353_v12  ;;  %v5338_v39 = vcombine.low %v3708_v47, %v3722_v55  ;;  %v3771_v19 = vrot.slane %v3769_v0, 5  ;;  %v4162_v28 = vshrl.u32 %v4133_v24, 16 }
 0x1ca   : > { %5924 = vmatpush3.bf16.msra.mxu1 %v6255_v52  ;;  %v6262_v52 = vld [vmem:[%s7782_s3 + $0x390] sm:$0xff]   ;;  %v3754_v41 = vrot.slane %v3752_v63, 4  ;;  %v3757_v27 = vrot.slane %v3755_v16, 5  ;;  %v4165_v5 = vshll.u32 %v4133_v24, 16  ;;  %v3731_v12 = vrot.slane %v3730_v8, 4 }
 0x1cb   : > { %5957 = vmatprep.subr.bf16.mxu1 %v6257_v6  ;;  %v3794_v37 = vshrl.u32 %v3693_v14, 16  ;;  %v3772_v44 = vor.u32 %v3771_v19, %v3768_v22  ;;  %v4164_v56 = vrot.slane %v4162_v28, 4  ;;  %v4132_v16 = vld [vmem:[#allocation2 + $0xdc] sm:$0x1]  ;;  %v3763_v59 = vrot.slane %v3761_v21, 5 }
 0x1cc   : > { %v4167_v54 = vrot.slane %v4165_v5, 5  ;;  %v4135_v28 = vld [vmem:[#allocation2 + $0xe8] sm:$0xf]  ;;  %v723_v5 = vadd.f32 %v7417_v57, %v7154_v26 }
 0x1cd   : > { %5926 = vmatmul.mubr.bf16.vlgmr.msra.gmra.mrb[48].mxu1 %v5283_v15  ;;  %v3690_v15 = vld [vmem:[#allocation2 + $0xc4] sm:$0x1]  ;;  %v3796_v58 = vrot.slane %v3794_v37, 4  ;;  %v3773_v0 = vrot.slane %v3772_v44, 4 }
 0x1ce   : > { %5958 = vmatpush3.bf16.msra.mxu1 %v6257_v6  ;;  %5929 = vmatprep.mubr.bf16.mxu1 %v5284_v13  ;;  %v6270_v6 = vld [vmem:[%s7782_s3 + $0x3a8] sm:$0xff]   ;;  %v3744_v13 = vor.u32 %v3743_v61, %v3740_v51  ;;  %v3775_v25 = vshll.u32 %v3690_v15, 16  ;;  %v4134_v51 = vld [vmem:[#allocation2 + $0xe4] sm:$0x1]  ;;  %v4168_v8 = vor.u32 %v4167_v54, %v4164_v56 }
 0x1cf   : > { %5959 = vmatprep.subr.bf16.mxu1 %v6260_v11  ;;  %6050 = vmatmul.mubr.bf16.gmra.mrb[108].mxu0 %v6297_v18  ;;  %v4148_v18 = vshrl.u32 %v4131_v1, 16  ;;  %v4171_v43 = vshll.u32 %v4134_v51, 16 }
 0x1d0   : > { %v3745_v35 = vrot.slane %v3744_v13, 4  ;;  %v3777_v4 = vrot.slane %v3775_v25, 5  ;;  %v4169_v31 = vrot.slane %v4168_v8, 4 }
 0x1d1   : > { %v4150_v36 = vrot.slane %v4148_v18, 4 }
 0x1d2   : > { %5960 = vmatpush3.bf16.msra.mxu1 %v6260_v11  ;;  %v3783_v11 = vshll.u32 %v3691_v32, 16  ;;  %v6277_v32 = vld [vmem:[%s7782_s3 + $0x1c0] sm:$0xff]  }
 0x1d3   : > { %5961 = vmatprep.subr.bf16.mxu1 %v6262_v52 }
 0x1d4   : > { %v3785_v46 = vrot.slane %v3783_v11, 5  ;;  %v4173_v11 = vrot.slane %v4171_v43, 5  ;;  %v4145_v43 = vld [vmem:[#allocation2 + $0x110] sm:$0xf] }
 0x1d5   : > { %5930 = vmatmul.mubr.bf16.gmra.mrb[52].mxu1 %v5285_v40  ;;  %v3797_v40 = vshll.u32 %v3693_v14, 16  ;;  %v6279_v14 = vld [vmem:[%s7782_s3 + $0x1c8] sm:$0xff]  }
 0x1d6   : > { %5962 = vmatpush3.bf16.msra.mxu1 %v6262_v52  ;;  %5973 = vmatprep.mubr.bf16.mxu1 %v5338_v39  ;;  %v3758_v52 = vor.u32 %v3757_v27, %v3754_v41  ;;  %v6275_v39 = vld [vmem:[%s7782_s3 + $0x3b8] sm:$0xff]   ;;  %v3786_v41 = vor.u32 %v3785_v46, %v3782_v42  ;;  %v4179_v42 = vshll.u32 %v4135_v28, 16 }
 0x1d7   : > { %5963 = vmatprep.subr.bf16.mxu1 %v6265_v38  ;;  %v3799_v63 = vrot.slane %v3797_v40, 5  ;;  %v721_v40 = vadd.f32 %v7417_v57, %v7108_v33  ;;  %v722_v33 = vadd.f32 %v7417_v57, %v7118_v50  ;;  %v4136_v50 = vld [vmem:[#allocation2 + $0xec] sm:$0x1] }
 0x1d8   : > { %v3759_v61 = vrot.slane %v3758_v52, 4  ;;  %v4174_v52 = vsel %vm6712_vm10, %v4169_v31, %v4173_v11  ;;  %v4185_v8 = vshll.u32 %v4136_v50, 16 }
 0x1d9   : > { %v3800_v27 = vor.u32 %v3799_v63, %v3796_v58 }
 0x1da   : > { %5964 = vmatpush3.bf16.msra.mxu1 %v6265_v38  ;;  %v3764_v13 = vsel %vm6712_vm10, %v3759_v61, %v3763_v59  ;;  %v4181_v59 = vrot.slane %v4179_v42, 5 }
 0x1db   : > { %5965 = vmatprep.subr.bf16.mxu1 %v6267_v23  ;;  %v3801_v21 = vrot.slane %v3800_v27, 4 }
 0x1de   : > { %5966 = vmatpush3.bf16.msra.mxu1 %v6267_v23  ;;  %v4153_v23 = vrot.slane %v4151_v34, 5 }
 0x1df   : > { %5967 = vmatprep.subr.bf16.mxu1 %v6270_v6 }
 0x1e0   : > { %v5711_v30 = vpop.f32.mrb[0].mxu1  ;;  %v4154_v1 = vor.u32 %v4153_v23, %v4150_v36 }
 0x1e1   : > { %v7435_v47 = vadd.f32 %v5711_v30, %v719_v53  ;;  %v1376_v55 = vpop.f32.mrb[1].mxu1  ;;  %v3694_v53 = vld [vmem:[#allocation2 + $0xd4] sm:$0x1] }
 0x1e2   : > { %v7437_v38 = vadd.f32 %v1376_v55, %v717_v10  ;;  %5968 = vmatpush3.bf16.msra.mxu1 %v6270_v6  ;;  %v5712_v45 = vpop.f32.mrb[2].mxu1  ;;  %v3736_v6 = vsel %vm6712_vm10, %v3731_v12, %v7430_v7  ;;  %v3750_v10 = vsel %vm6712_vm10, %v3745_v35, %v3749_v29  ;;  %v3803_v24 = vshll.u32 %v3694_v53, 16  ;;  %v6281_v30 = vld [vmem:[%s7782_s3 + $0x1d0] sm:$0xff]  }
 0x1e3   : > { %v7442_v48 = vadd.f32 %v5712_v45, %v720_v17  ;;  %v1379_v3 = vpop.f32.mrb[3].mxu1  ;;  %5969 = vmatprep.subr.bf16.mxu1 %v6273_v9  ;;  %v3789_v17 = vshll.u32 %v3692_v49, 16  ;;  %v3778_v7 = vsel %vm6712_vm10, %v3773_v0, %v3777_v4  ;;  %v5339_v22 = vcombine.low %v3736_v6, %v3750_v10  ;;  %v4137_v35 = vld [vmem:[#allocation2 + $0xf0] sm:$0xf]  ;;  %v4139_v49 = vld [vmem:[#allocation2 + $0xf8] sm:$0xf] }
 0x1e4   : > { %v7444_v62 = vadd.f32 %v1379_v3, %v718_v2  ;;  %v4157_v2 = vshll.u32 %v4132_v16, 16  ;;  %v4155_v29 = vrot.slane %v4154_v1, 4  ;;  %v5340_v18 = vcombine.low %v3764_v13, %v3778_v7  ;;  %v4141_v16 = vld [vmem:[#allocation2 + $0x100] sm:$0xf]  ;;  %v4143_v1 = vld [vmem:[#allocation2 + $0x108] sm:$0xf] }
 0x1e5   : > { %v3791_v19 = vrot.slane %v3789_v17, 5  ;;  %v3805_v34 = vrot.slane %v3803_v24, 5  ;;  %v724_v45 = vadd.f32 %v7417_v57, %v7165_v20  ;;  %v6285_v20 = vld [vmem:[%s7782_s3 + $0x1d8] sm:$0xff]   ;;  %v4190_v58 = vshrl.u32 %v4137_v35, 16  ;;  %v6288_v6 = vld [vmem:[%s7782_s3 + $0x1e0] sm:$0xff]  }
 0x1e6   : > { %5970 = vmatpush3.bf16.msra.mxu1 %v6273_v9  ;;  %v4159_v15 = vrot.slane %v4157_v2, 5  ;;  %v3787_v9 = vrot.slane %v3786_v41, 4  ;;  %v4193_v63 = vshll.u32 %v4137_v35, 16  ;;  %v4204_v57 = vshrl.u32 %v4139_v49, 16 }
 0x1e7   : > { %5971 = vmatprep.subr.bf16.mxu1 %v6275_v39  ;;  %v3806_v26 = vsel %vm6712_vm10, %v3801_v21, %v3805_v34  ;;  %v4207_v0 = vshll.u32 %v4139_v49, 16  ;;  %v4218_v4 = vshrl.u32 %v4141_v16, 16  ;;  %v4221_v53 = vshll.u32 %v4141_v16, 16 }
 0x1e8   : > { %v4160_v12 = vsel %vm6712_vm10, %v4155_v29, %v4159_v15  ;;  %v3792_v55 = vsel %vm6712_vm10, %v3787_v9, %v3791_v19  ;;  %v4192_v10 = vrot.slane %v4190_v58, 4  ;;  %v4195_v17 = vrot.slane %v4193_v63, 5  ;;  %v6290_v19 = vld [vmem:[%s7782_s3 + $0x1e8] sm:$0xff]   ;;  %v4140_v15 = vld [vmem:[#allocation2 + $0xfc] sm:$0x1] }
 0x1e9   : > { %v5394_v3 = vcombine.low %v4160_v12, %v4174_v52  ;;  %v5341_v54 = vcombine.low %v3792_v55, %v3806_v26  ;;  %v4206_v27 = vrot.slane %v4204_v57, 4  ;;  %v4209_v24 = vrot.slane %v4207_v0, 5  ;;  %v4586_v55 = vld [vmem:[#allocation2 + $0xe8] sm:$0xf]  ;;  %v6291_v26 = vld [vmem:[%s7782_s3 + $0x1f0] sm:$0xff]  }
 0x1ea   : > { %5972 = vmatpush3.bf16.msra.mxu1 %v6275_v39  ;;  %v4176_v39 = vshrl.u32 %v4135_v28, 16  ;;  %v4220_v13 = vrot.slane %v4218_v4, 4  ;;  %v4223_v7 = vrot.slane %v4221_v53, 5  ;;  %v4232_v31 = vshrl.u32 %v4143_v1, 16 }
 0x1eb   : > { %6005 = vmatprep.subr.bf16.mxu1 %v6277_v32  ;;  %v4235_v9 = vshll.u32 %v4143_v1, 16  ;;  %v4246_v21 = vshrl.u32 %v4145_v43, 16  ;;  %v4187_v12 = vrot.slane %v4185_v8, 5  ;;  %v4210_v52 = vor.u32 %v4209_v24, %v4206_v27 }
 0x1ec   : > { %v4178_v61 = vrot.slane %v4176_v39, 4  ;;  %v4234_v39 = vrot.slane %v4232_v31, 4  ;;  %v4615_v58 = vshrl.u32 %v4586_v55, 16  ;;  %v4618_v63 = vshll.u32 %v4586_v55, 16 }
 0x1ed   : > { %5974 = vmatmul.mubr.bf16.vlgmr.msra.gmra.mrb[56].mxu1 %v5339_v22  ;;  %v4211_v50 = vrot.slane %v4210_v52, 4 }
 0x1ee   : > { %5977 = vmatprep.mubr.bf16.mxu1 %v5340_v18  ;;  %6006 = vmatpush3.bf16.msra.mxu1 %v6277_v32  ;;  %v4138_v32 = vld [vmem:[#allocation2 + $0xf4] sm:$0x1]  ;;  %v4182_v2 = vor.u32 %v4181_v59, %v4178_v61  ;;  %v4142_v18 = vld [vmem:[#allocation2 + $0x104] sm:$0x1]  ;;  %v6292_v59 = vld [vmem:[%s7782_s3 + $0x1f8] sm:$0xff]   ;;  %v4617_v27 = vrot.slane %v4615_v58, 4 }
 0x1ef   : > { %6007 = vmatprep.subr.bf16.mxu1 %v6279_v14  ;;  %v5715_v37 = vpop.f32.mrb[4].mxu1  ;;  %v4199_v29 = vshll.u32 %v4138_v32, 16  ;;  %v4620_v24 = vrot.slane %v4618_v63, 5 }
 0x1f0   : > { %v7476_v44 = vadd.f32 %v5715_v37, %v723_v5  ;;  %v1392_v25 = vpop.f32.mrb[5].mxu1  ;;  %v4183_v28 = vrot.slane %v4182_v2, 4  ;;  %v4249_v5 = vshll.u32 %v4145_v43, 16  ;;  %v4213_v37 = vshll.u32 %v4140_v15, 16 }
 0x1f1   : > { %v7480_v46 = vadd.f32 %v1392_v25, %v721_v40  ;;  %v5716_v36 = vpop.f32.mrb[6].mxu1  ;;  %v4224_v40 = vor.u32 %v4223_v7, %v4220_v13  ;;  %v4201_v25 = vrot.slane %v4199_v29, 5 }
 0x1f2   : > { %6008 = vmatpush3.bf16.msra.mxu1 %v6279_v14  ;;  %v7484_v23 = vadd.f32 %v5716_v36, %v724_v45  ;;  %v1395_v56 = vpop.f32.mrb[7].mxu1  ;;  %v4196_v14 = vor.u32 %v4195_v17, %v4192_v10  ;;  %v4227_v45 = vshll.u32 %v4142_v18, 16  ;;  %v4237_v36 = vrot.slane %v4235_v9, 5  ;;  %v4146_v10 = vld [vmem:[#allocation2 + $0x114] sm:$0x1] }
 0x1f3   : > { %6009 = vmatprep.subr.bf16.mxu1 %v6281_v30  ;;  %v7489_v51 = vadd.f32 %v1395_v56, %v722_v33  ;;  %v4248_v33 = vrot.slane %v4246_v21, 4  ;;  %v4215_v57 = vrot.slane %v4213_v37, 5  ;;  %v4225_v0 = vrot.slane %v4224_v40, 4 }
 0x1f4   : > { %v4197_v35 = vrot.slane %v4196_v14, 4  ;;  %v4188_v53 = vsel %vm6712_vm10, %v4183_v28, %v4187_v12  ;;  %v4238_v32 = vor.u32 %v4237_v36, %v4234_v39  ;;  %v4255_v7 = vshll.u32 %v4146_v10, 16  ;;  %v4594_v10 = vld [vmem:[#allocation2 + $0x108] sm:$0xf] }
 0x1f5   : > { %5978 = vmatmul.mubr.bf16.gmra.mrb[60].mxu1 %v5341_v54  ;;  %v4216_v14 = vsel %vm6712_vm10, %v4211_v50, %v4215_v57  ;;  %v4621_v12 = vor.u32 %v4620_v24, %v4617_v27  ;;  %v4588_v50 = vld [vmem:[#allocation2 + $0xf0] sm:$0xf]  ;;  %v6298_v57 = vld [vmem:[%s7782_s3 + $0x3d8] sm:$0xff]   ;;  %v4671_v27 = vshrl.u32 %v4594_v10, 16  ;;  %v4674_v24 = vshll.u32 %v4594_v10, 16 }
 0x1f6   : > { %6010 = vmatpush3.bf16.msra.mxu1 %v6281_v30  ;;  %6021 = vmatprep.mubr.bf16.mxu1 %v5394_v3  ;;  %v4584_v30 = vld [vmem:[#allocation2 + $0xe0] sm:$0xf]  ;;  %v4202_v8 = vsel %vm6712_vm10, %v4197_v35, %v4201_v25  ;;  %v4239_v18 = vrot.slane %v4238_v32, 4  ;;  %v4257_v35 = vrot.slane %v4255_v7, 5 }
 0x1f7   : > { %6011 = vmatprep.subr.bf16.mxu1 %v6285_v20  ;;  %v7494_v41 = vpop.f32.mrb[64].mxu0  ;;  %v4601_v3 = vshrl.u32 %v4584_v30, 16  ;;  %v4604_v49 = vshll.u32 %v4584_v30, 16  ;;  %v5395_v31 = vcombine.low %v4188_v53, %v4202_v8 }
 0x1f8   : > { %v7496_v22 = vpop.f32.mrb[65].mxu0 }
 0x1f9   : > { %v7501_v11 = vpop.f32.mrb[66].mxu0  ;;  %v4603_v1 = vrot.slane %v4601_v3, 4  ;;  %v4606_v2 = vrot.slane %v4604_v49, 5  ;;  %v4622_v3 = vrot.slane %v4621_v12, 4  ;;  %v4595_v12 = vld [vmem:[#allocation2 + $0x10c] sm:$0x1] }
 0x1fa   : > { %6012 = vmatpush3.bf16.msra.mxu1 %v6285_v20  ;;  %v7503_v34 = vpop.f32.mrb[67].mxu0  ;;  %v4251_v20 = vrot.slane %v4249_v5, 5 }
 0x1fb   : > { %6013 = vmatprep.subr.bf16.mxu1 %v6288_v6  ;;  %v4607_v9 = vor.u32 %v4606_v2, %v4603_v1 }
 0x1fc   : > { %v4252_v43 = vor.u32 %v4251_v20, %v4248_v33 }
 0x1fd   : > { %v4608_v36 = vrot.slane %v4607_v9, 4  ;;  %v6300_v9 = vld [vmem:[%s7782_s3 + $0x3e8] sm:$0xff]  }
 0x1fe   : > { %6014 = vmatpush3.bf16.msra.mxu1 %v6288_v6  ;;  %v4229_v6 = vrot.slane %v4227_v45, 5  ;;  %v4253_v30 = vrot.slane %v4252_v43, 4  ;;  %v6299_v43 = vld [vmem:[%s7782_s3 + $0x3e0] sm:$0xff]  }
 0x1ff   : > { %6015 = vmatprep.subr.bf16.mxu1 %v6290_v19 }
 0x200   : > { %v5735_v42 = vpop.f32.mrb[8].mxu1  ;;  %v4230_v29 = vsel %vm6712_vm10, %v4225_v0, %v4229_v6  ;;  %v4258_v20 = vsel %vm6712_vm10, %v4253_v30, %v4257_v35  ;;  %v4590_v0 = vld [vmem:[#allocation2 + $0xf8] sm:$0xf]  ;;  %v4629_v6 = vshrl.u32 %v4588_v50, 16 }
 0x201   : > { %v7509_v56 = vadd.f32 %v5735_v42, %v7435_v47  ;;  %v1661_v54 = vpop.f32.mrb[9].mxu1  ;;  %v5396_v55 = vcombine.low %v4216_v14, %v4230_v29  ;;  %v4643_v32 = vshrl.u32 %v4590_v0, 16  ;;  %v4646_v1 = vshll.u32 %v4590_v0, 16 }
 0x202   : > { %v7512_v16 = vadd.f32 %v1661_v54, %v7437_v38  ;;  %v5736_v61 = vpop.f32.mrb[10].mxu1  ;;  %6016 = vmatpush3.bf16.msra.mxu1 %v6290_v19  ;;  %v4144_v38 = vld [vmem:[#allocation2 + $0x10c] sm:$0x1]  ;;  %v4631_v7 = vrot.slane %v4629_v6, 4 }
 0x203   : > { %v7518_v4 = vadd.f32 %v5736_v61, %v7442_v48  ;;  %v1664_v47 = vpop.f32.mrb[11].mxu1  ;;  %6017 = vmatprep.subr.bf16.mxu1 %v6291_v26  ;;  %v4585_v48 = vld [vmem:[#allocation2 + $0xe4] sm:$0x1]  ;;  %v4241_v13 = vshll.u32 %v4144_v38, 16  ;;  %v4587_v19 = vld [vmem:[#allocation2 + $0xec] sm:$0x1] }
 0x204   : > { %v7523_v17 = vadd.f32 %v1664_v47, %v7444_v62  ;;  %v6293_v62 = vld [vmem:[%s7782_s3 + $0x3c0] sm:$0xff]   ;;  %v4610_v21 = vshll.u32 %v4585_v48, 16  ;;  %v4624_v52 = vshll.u32 %v4587_v19, 16  ;;  %v4632_v38 = vshll.u32 %v4588_v50, 16  ;;  %v4589_v48 = vld [vmem:[#allocation2 + $0xf4] sm:$0x1] }
 0x205   : > { %v4592_v47 = vld [vmem:[#allocation2 + $0x100] sm:$0xf]  ;;  %v4645_v14 = vrot.slane %v4643_v32, 4  ;;  %v4648_v29 = vrot.slane %v4646_v1, 5  ;;  %v4638_v35 = vshll.u32 %v4589_v48, 16 }
 0x206   : > { %6018 = vmatpush3.bf16.msra.mxu1 %v6291_v26  ;;  %v4243_v26 = vrot.slane %v4241_v13, 5  ;;  %v4612_v33 = vrot.slane %v4610_v21, 5  ;;  %v4626_v49 = vrot.slane %v4624_v52, 5  ;;  %v4657_v2 = vshrl.u32 %v4592_v47, 16  ;;  %v4591_v13 = vld [vmem:[#allocation2 + $0xfc] sm:$0x1] }
 0x207   : > { %6019 = vmatprep.subr.bf16.mxu1 %v6292_v59  ;;  %v7546_v39 = vpop.f32.mrb[68].mxu0  ;;  %v4660_v8 = vshll.u32 %v4592_v47, 16  ;;  %v4634_v19 = vrot.slane %v4632_v38, 5  ;;  %v4593_v21 = vld [vmem:[#allocation2 + $0x104] sm:$0x1]  ;;  %v4673_v52 = vrot.slane %v4671_v27, 4 }
 0x208   : > { %v5739_v15 = vpop.f32.mrb[12].mxu1  ;;  %v4244_v54 = vsel %vm6712_vm10, %v4239_v18, %v4243_v26  ;;  %v4613_v61 = vsel %vm6712_vm10, %v4608_v36, %v4612_v33  ;;  %v4649_v36 = vor.u32 %v4648_v29, %v4645_v14 }
 0x209   : > { %v7535_v28 = vadd.f32 %v5739_v15, %v7476_v44  ;;  %v1677_v5 = vpop.f32.mrb[13].mxu1  ;;  %v6294_v44 = vld [vmem:[%s7782_s3 + $0x3c8] sm:$0xff]   ;;  %v5397_v63 = vcombine.low %v4244_v54, %v4258_v20  ;;  %v4659_v15 = vrot.slane %v4657_v2, 4  ;;  %v4635_v26 = vor.u32 %v4634_v19, %v4631_v7  ;;  %v4597_v19 = vld [vmem:[#allocation2 + $0x114] sm:$0x1] }
 0x20a   : > { %v7538_v37 = vadd.f32 %v1677_v5, %v7480_v46  ;;  %v5740_v40 = vpop.f32.mrb[14].mxu1  ;;  %6020 = vmatpush3.bf16.msra.mxu1 %v6292_v59  ;;  %v7551_v46 = vpop.f32.mrb[69].mxu0  ;;  %v4627_v59 = vsel %vm6712_vm10, %v4622_v3, %v4626_v49  ;;  %v4596_v5 = vld [vmem:[#allocation2 + $0x110] sm:$0xf]  ;;  %v4666_v3 = vshll.u32 %v4593_v21, 16  ;;  %v4680_v54 = vshll.u32 %v4595_v12, 16 }
 0x20b   : > { %v7541_v25 = vadd.f32 %v5740_v40, %v7484_v23  ;;  %v1680_v45 = vpop.f32.mrb[15].mxu1  ;;  %6053 = vmatprep.subr.bf16.mxu1 %v6293_v62  ;;  %v7553_v23 = vpop.f32.mrb[70].mxu0  ;;  %v5450_v53 = vcombine.low %v4613_v61, %v4627_v59  ;;  %v4676_v40 = vrot.slane %v4674_v24, 5  ;;  %v6301_v49 = vld [vmem:[%s7782_s3 + $0x3f0] sm:$0xff]   ;;  %v4685_v20 = vshrl.u32 %v4596_v5, 16 }
 0x20c   : > { %v7549_v42 = vadd.f32 %v1680_v45, %v7489_v51  ;;  %v7559_v58 = vpop.f32.mrb[71].mxu0  ;;  %v6296_v51 = vld [vmem:[%s7782_s3 + $0x3d0] sm:$0xff]   ;;  %v4652_v45 = vshll.u32 %v4591_v13, 16  ;;  %v4636_v47 = vrot.slane %v4635_v26, 4  ;;  %v4650_v32 = vrot.slane %v4649_v36, 4 }
 0x20d   : > { %6022 = vmatmul.mubr.bf16.vlgmr.msra.gmra.mrb[64].mxu1 %v5395_v31  ;;  %v4662_v31 = vrot.slane %v4660_v8, 5  ;;  %v4677_v61 = vor.u32 %v4676_v40, %v4673_v52  ;;  %v4668_v2 = vrot.slane %v4666_v3, 5  ;;  %v4682_v48 = vrot.slane %v4680_v54, 5 }
 0x20e   : > { %6054 = vmatpush3.bf16.msra.mxu1 %v6293_v62  ;;  %6025 = vmatprep.mubr.bf16.mxu1 %v5396_v55  ;;  %v4654_v6 = vrot.slane %v4652_v45, 5  ;;  %v4687_v27 = vrot.slane %v4685_v20, 4  ;;  %v4694_v12 = vshll.u32 %v4597_v19, 16 }
 0x20f   : > { %6055 = vmatprep.subr.bf16.mxu1 %v6294_v44  ;;  %v4663_v33 = vor.u32 %v4662_v31, %v4659_v15  ;;  %v4678_v7 = vrot.slane %v4677_v61, 4 }
 0x211   : > { %v4664_v1 = vrot.slane %v4663_v33, 4  ;;  %v4683_v40 = vsel %vm6712_vm10, %v4678_v7, %v4682_v48 }
 0x212   : > { %6056 = vmatpush3.bf16.msra.mxu1 %v6294_v44  ;;  %v4598_v44 = vld [vmem:[#allocation2 + $0x118] sm:$0xf] }
 0x213   : > { %6057 = vmatprep.subr.bf16.mxu1 %v6296_v51  ;;  %v4699_v59 = vshrl.u32 %v4598_v44, 16  ;;  %v4702_v50 = vshll.u32 %v4598_v44, 16 }
 0x215   : > { %6026 = vmatmul.mubr.bf16.gmra.mrb[68].mxu1 %v5397_v63  ;;  %v4701_v14 = vrot.slane %v4699_v59, 4  ;;  %v4704_v29 = vrot.slane %v4702_v50, 5 }
 0x216   : > { %6058 = vmatpush3.bf16.msra.mxu1 %v6296_v51  ;;  %6069 = vmatprep.mubr.bf16.mxu1 %v5450_v53  ;;  %v4688_v51 = vshll.u32 %v4596_v5, 16  ;;  %v4640_v53 = vrot.slane %v4638_v35, 5  ;;  %v4655_v5 = vsel %vm6712_vm10, %v4650_v32, %v4654_v6 }
 0x217   : > { %6059 = vmatprep.subr.bf16.mxu1 %v6298_v57  ;;  %v7574_v62 = vpop.f32.mrb[72].mxu0  ;;  %v4705_v35 = vor.u32 %v4704_v29, %v4701_v14 }
 0x218   : > { %v7576_v18 = vpop.f32.mrb[73].mxu0  ;;  %v4690_v24 = vrot.slane %v4688_v51, 5  ;;  %v4641_v21 = vsel %vm6712_vm10, %v4636_v47, %v4640_v53 }
 0x219   : > { %v7581_v30 = vpop.f32.mrb[74].mxu0  ;;  %v5451_v20 = vcombine.low %v4641_v21, %v4655_v5  ;;  %v4706_v50 = vrot.slane %v4705_v35, 4 }
 0x21a   : > { %6060 = vmatpush3.bf16.msra.mxu1 %v6298_v57  ;;  %v7583_v55 = vpop.f32.mrb[75].mxu0  ;;  %v4691_v26 = vor.u32 %v4690_v24, %v4687_v27 }
 0x21b   : > { %6061 = vmatprep.subr.bf16.mxu1 %v6299_v43 }
 0x21c   : > { %v4692_v59 = vrot.slane %v4691_v26, 4 }
 0x21e   : > { %6062 = vmatpush3.bf16.msra.mxu1 %v6299_v43 }
 0x21f   : > { %6063 = vmatprep.subr.bf16.mxu1 %v6300_v9 }
 0x220   : > { %v5759_v63 = vpop.f32.mrb[16].mxu1 }
 0x221   : > { %v7589_v57 = vadd.f32 %v5759_v63, %v7509_v56  ;;  %v1831_v0 = vpop.f32.mrb[17].mxu1  ;;  %v6302_v56 = vld [vmem:[%s7782_s3 + $0x3f8] sm:$0xff]   ;;  %v4696_v63 = vrot.slane %v4694_v12, 5 }
 0x222   : > { %v1862_v38 = vadd.f32 %v1831_v0, %v7512_v16  ;;  %v5760_v10 = vpop.f32.mrb[18].mxu1  ;;  %6064 = vmatpush3.bf16.msra.mxu1 %v6300_v9 }
 0x223   : > { %v1865_v8 = vadd.f32 %v5760_v10, %v7518_v4  ;;  %v1834_v43 = vpop.f32.mrb[19].mxu1  ;;  %6065 = vmatprep.subr.bf16.mxu1 %v6301_v49  ;;  %v7596_v13 = vpop.f32.mrb[76].mxu0  ;;  %v4599_v4 = vld [vmem:[#allocation2 + $0x11c] sm:$0x1] }
 0x224   : > { %v1863_v16 = vadd.f32 %v1834_v43, %v7523_v17  ;;  %v7599_v15 = vpop.f32.mrb[77].mxu0  ;;  %v4669_v17 = vsel %vm6712_vm10, %v4664_v1, %v4668_v2  ;;  %v4708_v45 = vshll.u32 %v4599_v4, 16 }
 0x225   : > { %v7601_v31 = vpop.f32.mrb[78].mxu0  ;;  %v5452_v51 = vcombine.low %v4669_v17, %v4683_v40 }
 0x226   : > { %6066 = vmatpush3.bf16.msra.mxu1 %v6301_v49  ;;  %v7603_v9 = vpop.f32.mrb[79].mxu0  ;;  %v4710_v0 = vrot.slane %v4708_v45, 5 }
 0x227   : > { %6067 = vmatprep.subr.bf16.mxu1 %v6302_v56 }
 0x228   : > { %v5763_v52 = vpop.f32.mrb[20].mxu1 }
 0x229   : > { %v1868_v44 = vadd.f32 %v5763_v52, %v7535_v28  ;;  %v1847_v36 = vpop.f32.mrb[21].mxu1  ;;  %v4697_v28 = vsel %vm6712_vm10, %v4692_v59, %v4696_v63 }
 0x22a   : > { %v1866_v33 = vadd.f32 %v1847_v36, %v7538_v37  ;;  %v5764_v3 = vpop.f32.mrb[22].mxu1  ;;  %6068 = vmatpush3.bf16.msra.mxu1 %v6302_v56  ;;  %v4711_v37 = vsel %vm6712_vm10, %v4706_v50, %v4710_v0 }
 0x22b   : > { %v1869_v49 = vadd.f32 %v5764_v3, %v7541_v25  ;;  %v1850_v54 = vpop.f32.mrb[23].mxu1  ;;  %v5453_v47 = vcombine.low %v4697_v28, %v4711_v37 }
 0x22c   : > { %v1867_v61 = vadd.f32 %v1850_v54, %v7549_v42 }
 0x22d   : > { %6070 = vmatmul.mubr.bf16.vlgmr.msra.gmra.mrb[72].mxu1 %v5451_v20 }
 0x22e   : > { %6073 = vmatprep.mubr.bf16.mxu1 %v5452_v51 }
 0x235   : > { %6074 = vmatmul.mubr.bf16.gmra.mrb[76].mxu1 %v5453_v47 }
 0x238   : > { %v7621_v25 = vpop.f32.mrb[80].mxu0 }
 0x239   : > { %v7623_v53 = vpop.f32.mrb[81].mxu0 }
 0x23a   : > { %v7625_v6 = vpop.f32.mrb[82].mxu0 }
 0x23b   : > { %v7627_v42 = vpop.f32.mrb[83].mxu0 }
 0x240   : > { %v5783_v10 = vpop.f32.mrb[24].mxu1  ;;  %v7631_v27 = vpop.f32.mrb[84].mxu0 }
 0x241   : > { %v2146_v32 = vadd.f32 %v5783_v10, %v7589_v57  ;;  %v2113_v1 = vpop.f32.mrb[25].mxu1  ;;  %v7634_v19 = vpop.f32.mrb[85].mxu0 }
 0x242   : > { %v2144_v2 = vadd.f32 %v2113_v1, %v1862_v38  ;;  %v5784_v43 = vpop.f32.mrb[26].mxu1  ;;  %v7637_v29 = vpop.f32.mrb[86].mxu0 }
 0x243   : > { %v2147_v56 = vadd.f32 %v5784_v43, %v1865_v8  ;;  %v2316_v60 = vadd.f32 %v7494_v41, %v2146_v32  ;;  %v2116_v48 = vpop.f32.mrb[27].mxu1  ;;  %v7640_v4 = vpop.f32.mrb[87].mxu0 }
 0x244   : > { %v2145_v24 = vadd.f32 %v2116_v48, %v1863_v16  ;;  %v2314_v7 = vadd.f32 %v7496_v22, %v2144_v2 }
 0x245   : > { %v2317_v14 = vadd.f32 %v7501_v11, %v2147_v56 }
 0x246   : > { %v2315_v57 = vadd.f32 %v7503_v34, %v2145_v24 }
 0x248   : > { %v5787_v38 = vpop.f32.mrb[28].mxu1 }
 0x249   : > { %v2150_v8 = vadd.f32 %v5787_v38, %v1868_v44  ;;  %v2129_v21 = vpop.f32.mrb[29].mxu1 }
 0x24a   : > { %v2148_v41 = vadd.f32 %v2129_v21, %v1866_v33  ;;  %v5788_v5 = vpop.f32.mrb[30].mxu1 }
 0x24b   : > { %v2151_v17 = vadd.f32 %v5788_v5, %v1869_v49  ;;  %v2320_v16 = vadd.f32 %v7546_v39, %v2150_v8  ;;  %v2132_v12 = vpop.f32.mrb[31].mxu1 }
 0x24c   : > { %v2149_v22 = vadd.f32 %v2132_v12, %v1867_v61  ;;  %v2318_v52 = vadd.f32 %v7551_v46, %v2148_v41 }
 0x24d   : > { %v2321_v11 = vadd.f32 %v7553_v23, %v2151_v17 }
 0x24e   : > { %v2319_v40 = vadd.f32 %v7559_v58, %v2149_v22 }
 0x259   : > { %v7646_v26 = vpop.f32.mrb[88].mxu0 }
 0x25a   : > { %v7648_v34 = vpop.f32.mrb[89].mxu0 }
 0x25b   : > { %v7650_v35 = vpop.f32.mrb[90].mxu0 }
 0x25c   : > { %v7652_v45 = vpop.f32.mrb[91].mxu0 }
 0x260   : > { %v5831_v44 = vpop.f32.mrb[32].mxu1 }
 0x261   : > { %v2598_v36 = vadd.f32 %v5831_v44, %v2316_v60  ;;  %v2565_v33 = vpop.f32.mrb[33].mxu1 }
 0x262   : > { %v2596_v39 = vadd.f32 %v2565_v33, %v2314_v7  ;;  %v5832_v3 = vpop.f32.mrb[34].mxu1 }
 0x263   : > { %v2599_v49 = vadd.f32 %v5832_v3, %v2317_v14  ;;  %v2568_v54 = vpop.f32.mrb[35].mxu1  ;;  %v2768_v46 = vadd.f32 %v7574_v62, %v2598_v36  ;;  %v5955_v1 = vpop.f32.mrb[92].mxu0 }
 0x264   : > { %v2597_v23 = vadd.f32 %v2568_v54, %v2315_v57  ;;  %v2766_v58 = vadd.f32 %v7576_v18, %v2596_v39 }
 0x265   : > { %v2769_v20 = vadd.f32 %v7581_v30, %v2599_v49  ;;  %v7662_v30 = vpop.f32.mrb[93].mxu0 }
 0x266   : > { %v2767_v51 = vadd.f32 %v7583_v55, %v2597_v23  ;;  %v7664_v55 = vpop.f32.mrb[94].mxu0 }
 0x267   : > { %v7666_v2 = vpop.f32.mrb[95].mxu0 }
 0x268   : > { %v5835_v63 = vpop.f32.mrb[36].mxu1 }
 0x269   : > { %v2602_v61 = vadd.f32 %v5835_v63, %v2320_v16  ;;  %v2581_v59 = vpop.f32.mrb[37].mxu1 }
 0x26a   : > { %v2600_v50 = vadd.f32 %v2581_v59, %v2318_v52  ;;  %v5836_v0 = vpop.f32.mrb[38].mxu1 }
 0x26b   : > { %v2603_v28 = vadd.f32 %v5836_v0, %v2321_v11  ;;  %v2772_v37 = vadd.f32 %v7596_v13, %v2602_v61  ;;  %v2584_v47 = vpop.f32.mrb[39].mxu1 }
 0x26c   : > { %v2601_v10 = vadd.f32 %v2584_v47, %v2319_v40  ;;  %v2770_v32 = vadd.f32 %v7599_v15, %v2600_v50 }
 0x26d   : > { %v2773_v62 = vadd.f32 %v7601_v31, %v2603_v28 }
 0x26e   : > { %v2771_v18 = vadd.f32 %v7603_v9, %v2601_v10 }
 0x279   : > { %v7668_v43 = vpop.f32.mrb[96].mxu0 }
 0x27a   : > { %v7670_v56 = vpop.f32.mrb[97].mxu0 }
 0x27b   : > { %v7672_v13 = vpop.f32.mrb[98].mxu0 }
 0x27c   : > { %v7674_v60 = vpop.f32.mrb[99].mxu0 }
 0x280   : > { %v5879_v15 = vpop.f32.mrb[40].mxu1 }
 0x281   : > { %v3050_v48 = vadd.f32 %v5879_v15, %v2768_v46  ;;  %v3017_v31 = vpop.f32.mrb[41].mxu1 }
 0x282   : > { %v3048_v24 = vadd.f32 %v3017_v31, %v2766_v58  ;;  %v5880_v7 = vpop.f32.mrb[42].mxu1 }
 0x283   : > { %v3051_v9 = vadd.f32 %v5880_v7, %v2769_v20  ;;  %v3220_v14 = vadd.f32 %v7621_v25, %v3050_v48  ;;  %v3020_v57 = vpop.f32.mrb[43].mxu1  ;;  %v7677_v38 = vpop.f32.mrb[100].mxu0 }
 0x284   : > { %v3049_v8 = vadd.f32 %v3020_v57, %v2767_v51  ;;  %v3218_v21 = vadd.f32 %v7623_v53, %v3048_v24  ;;  %v7680_v41 = vpop.f32.mrb[101].mxu0 }
 0x285   : > { %v3221_v5 = vadd.f32 %v7625_v6, %v3051_v9  ;;  %v7683_v17 = vpop.f32.mrb[102].mxu0 }
 0x286   : > { %v3219_v16 = vadd.f32 %v7627_v42, %v3049_v8  ;;  %v7686_v12 = vpop.f32.mrb[103].mxu0 }
 0x288   : > { %v5883_v22 = vpop.f32.mrb[44].mxu1 }
 0x289   : > { %v3054_v52 = vadd.f32 %v5883_v22, %v2772_v37  ;;  %v3033_v11 = vpop.f32.mrb[45].mxu1 }
 0x28a   : > { %v3052_v25 = vadd.f32 %v3033_v11, %v2770_v32  ;;  %v5884_v40 = vpop.f32.mrb[46].mxu1 }
 0x28b   : > { %v3055_v44 = vadd.f32 %v5884_v40, %v2773_v62  ;;  %v3224_v36 = vadd.f32 %v7631_v27, %v3054_v52  ;;  %v3036_v33 = vpop.f32.mrb[47].mxu1 }
 0x28c   : > { %v3053_v53 = vadd.f32 %v3036_v33, %v2771_v18  ;;  %v3222_v39 = vadd.f32 %v7634_v19, %v3052_v25 }
 0x28d   : > { %v3225_v6 = vadd.f32 %v7637_v29, %v3055_v44 }
 0x28e   : > { %v3223_v3 = vadd.f32 %v7640_v4, %v3053_v53 }
 0x299   : > { %v7692_v49 = vpop.f32.mrb[104].mxu0 }
 0x29a   : > { %v7694_v42 = vpop.f32.mrb[105].mxu0 }
 0x29b   : > { %v7696_v54 = vpop.f32.mrb[106].mxu0 }
 0x29c   : > { %v7698_v46 = vpop.f32.mrb[107].mxu0 }
 0x2a0   : > { %v5927_v23 = vpop.f32.mrb[48].mxu1 }
 0x2a1   : > { %v3502_v58 = vadd.f32 %v5927_v23, %v3220_v14  ;;  %v3469_v20 = vpop.f32.mrb[49].mxu1 }
 0x2a2   : > { %v3500_v27 = vadd.f32 %v3469_v20, %v3218_v21  ;;  %v5928_v51 = vpop.f32.mrb[50].mxu1  ;;  %v7700_v63 = vpop.f32.mrb[108].mxu0 }
 0x2a3   : > { %v3503_v19 = vadd.f32 %v5928_v51, %v3221_v5  ;;  %v3472_v61 = vpop.f32.mrb[51].mxu1  ;;  %v3673_v29 = vadd.f32 %v7646_v26, %v3502_v58  ;;  %v7703_v4 = vpop.f32.mrb[109].mxu0 }
 0x2a4   : > { %v3501_v59 = vadd.f32 %v3472_v61, %v3219_v16  ;;  %v3671_v50 = vadd.f32 %v7648_v34, %v3500_v27  ;;  %v6052_v0 = vpop.f32.mrb[110].mxu0 }
 0x2a5   : > { %v3674_v28 = vadd.f32 %v7650_v35, %v3503_v19  ;;  %v4564_v37 = vpop.f32.mrb[111].mxu0 }
 0x2a6   : > { %v3672_v47 = vadd.f32 %v7652_v45, %v3501_v59 }
 0x2a8   : > { %v5931_v10 = vpop.f32.mrb[52].mxu1 }
 0x2a9   : > { %v3506_v32 = vadd.f32 %v5931_v10, %v3224_v36  ;;  %v3485_v62 = vpop.f32.mrb[53].mxu1 }
 0x2aa   : > { %v3504_v18 = vadd.f32 %v3485_v62, %v3222_v39  ;;  %v5932_v15 = vpop.f32.mrb[54].mxu1 }
 0x2ab   : > { %v3677_v48 = vadd.f32 %v5955_v1, %v3506_v32  ;;  %v3507_v31 = vadd.f32 %v5932_v15, %v3225_v6  ;;  %v3488_v24 = vpop.f32.mrb[55].mxu1 }
 0x2ac   : > { %v3675_v26 = vadd.f32 %v7662_v30, %v3504_v18  ;;  %v3505_v7 = vadd.f32 %v3488_v24, %v3223_v3 }
 0x2ad   : > { %v3678_v9 = vadd.f32 %v7664_v55, %v3507_v31 }
 0x2ae   : > { %v3676_v34 = vadd.f32 %v7666_v2, %v3505_v7 }
 0x2c0   : > { %v5975_v14 = vpop.f32.mrb[56].mxu1 }
 0x2c1   : > { %v3955_v35 = vadd.f32 %v5975_v14, %v3673_v29  ;;  %v3922_v57 = vpop.f32.mrb[57].mxu1 }
 0x2c2   : > { %v3953_v8 = vadd.f32 %v3922_v57, %v3671_v50  ;;  %v5976_v45 = vpop.f32.mrb[58].mxu1 }
 0x2c3   : > { %v3956_v21 = vadd.f32 %v5976_v45, %v3674_v28  ;;  %v4125_v5 = vadd.f32 %v7668_v43, %v3955_v35  ;;  %v3925_v16 = vpop.f32.mrb[59].mxu1 }
 0x2c4   : > { %v3954_v22 = vadd.f32 %v3925_v16, %v3672_v47  ;;  %v4123_v1 = vadd.f32 %v7670_v56, %v3953_v8 }
 0x2c5   : > { %v4126_v52 = vadd.f32 %v7672_v13, %v3956_v21 }
 0x2c6   : > { %v4124_v30 = vadd.f32 %v7674_v60, %v3954_v22 }
 0x2c8   : > { %v5979_v11 = vpop.f32.mrb[60].mxu1 }
 0x2c9   : > { %v3959_v55 = vadd.f32 %v5979_v11, %v3677_v48  ;;  %v3938_v25 = vpop.f32.mrb[61].mxu1 }
 0x2ca   : > { %v3957_v2 = vadd.f32 %v3938_v25, %v3675_v26  ;;  %v5980_v40 = vpop.f32.mrb[62].mxu1 }
 0x2cb   : > { %v3960_v44 = vadd.f32 %v5980_v40, %v3678_v9  ;;  %v4129_v36 = vadd.f32 %v7677_v38, %v3959_v55  ;;  %v3941_v33 = vpop.f32.mrb[63].mxu1 }
 0x2cc   : > { %v3958_v53 = vadd.f32 %v3941_v33, %v3676_v34  ;;  %v4127_v43 = vadd.f32 %v7680_v41, %v3957_v2 }
 0x2cd   : > { %v4130_v39 = vadd.f32 %v7683_v17, %v3960_v44 }
 0x2ce   : > { %v4128_v56 = vadd.f32 %v7686_v12, %v3958_v53 }
 0x2e0   : > { %v6023_v6 = vpop.f32.mrb[64].mxu1 }
 0x2e1   : > { %v4407_v13 = vadd.f32 %v6023_v6, %v4125_v5  ;;  %v4374_v3 = vpop.f32.mrb[65].mxu1 }
 0x2e2   : > { %v4405_v60 = vadd.f32 %v4374_v3, %v4123_v1  ;;  %v6024_v23 = vpop.f32.mrb[66].mxu1 }
 0x2e3   : > { %v4408_v58 = vadd.f32 %v6024_v23, %v4126_v52  ;;  %v4377_v20 = vpop.f32.mrb[67].mxu1  ;;  %v4578_v27 = vadd.f32 %v7692_v49, %v4407_v13 }
 0x2e4   : > { %v4406_v51 = vadd.f32 %v4377_v20, %v4124_v30  ;;  %v4576_v38 = vadd.f32 %v7694_v42, %v4405_v60 }
 0x2e5   : > { %v4579_v41 = vadd.f32 %v7696_v54, %v4408_v58 }
 0x2e6   : > { %v4577_v17 = vadd.f32 %v7698_v46, %v4406_v51 }
 0x2e8   : > { %v6027_v19 = vpop.f32.mrb[68].mxu1 }
 0x2e9   : > { %v4411_v12 = vadd.f32 %v6027_v19, %v4129_v36  ;;  %v4390_v61 = vpop.f32.mrb[69].mxu1 }
 0x2ea   : > { %v4409_v29 = vadd.f32 %v4390_v61, %v4127_v43  ;;  %v6028_v59 = vpop.f32.mrb[70].mxu1 }
 0x2eb   : > { %v4412_v50 = vadd.f32 %v6028_v59, %v4130_v39  ;;  %v4582_v28 = vadd.f32 %v7700_v63, %v4411_v12  ;;  %v4393_v47 = vpop.f32.mrb[71].mxu1 }
 0x2ec   : > { %v4410_v10 = vadd.f32 %v4393_v47, %v4128_v56  ;;  %v4580_v49 = vadd.f32 %v7703_v4, %v4409_v29 }
 0x2ed   : > { %v4583_v32 = vadd.f32 %v6052_v0, %v4412_v50 }
 0x2ee   : > { %v4581_v62 = vadd.f32 %v4564_v37, %v4410_v10 }
 0x300   : > { %v6071_v42 = vpop.f32.mrb[72].mxu1 }
 0x301   : > { %v4860_v54 = vadd.f32 %v6071_v42, %v4578_v27  ;;  %v4827_v46 = vpop.f32.mrb[73].mxu1 }
 0x302   : > { %v4858_v18 = vadd.f32 %v4827_v46, %v4576_v38  ;;  %v6072_v15 = vpop.f32.mrb[74].mxu1 }
 0x303   : > { %4868 = vst [vmem:[%s217_s12 + $0x10] sm:$0xff] %v4860_v54  ;;  %v4861_v48 = vadd.f32 %v6072_v15, %v4579_v41  ;;  %v4830_v31 = vpop.f32.mrb[75].mxu1 }
 0x304   : > { %4866 = vst [vmem:[%s217_s12] sm:$0xff] %v4858_v18  ;;  %v4859_v63 = vadd.f32 %v4830_v31, %v4577_v17 }
 0x305   : > { %4869 = vst [vmem:[%s217_s12 + $0x18] sm:$0xff] %v4861_v48 }
 0x306   : > { %4867 = vst [vmem:[%s217_s12 + $0x8] sm:$0xff] %v4859_v63 }
 0x308   : > { %v6075_v4 = vpop.f32.mrb[76].mxu1 }
 0x309   : > { %v4864_v0 = vadd.f32 %v6075_v4, %v4582_v28  ;;  %v4843_v37 = vpop.f32.mrb[77].mxu1 }
 0x30a   : > { %v4862_v24 = vadd.f32 %v4843_v37, %v4580_v49  ;;  %v6076_v26 = vpop.f32.mrb[78].mxu1 }
 0x30b   : > { %4872 = vst [vmem:[%s217_s12 + $0x30] sm:$0xff] %v4864_v0  ;;  %v4865_v7 = vadd.f32 %v6076_v26, %v4583_v32  ;;  %v4846_v9 = vpop.f32.mrb[79].mxu1 }
 0x30c   : > { %4870 = vst [vmem:[%s217_s12 + $0x20] sm:$0xff] %v4862_v24  ;;  %v4863_v34 = vadd.f32 %v4846_v9, %v4581_v62 }
 0x30d   : > { %4873 = vst [vmem:[%s217_s12 + $0x38] sm:$0xff] %v4865_v7 }
 0x30e   : > { %4871 = vst [vmem:[%s217_s12 + $0x28] sm:$0xff] %v4863_v34 }
 0x30f   : > { %6317 = shalt.err (!%p6314_p3)
}
 0x310   : > { %s6318_s7 = scalar_lea.hbm %s7732_s17, 1024  ;;  %s6322_s10 = scalar_lea.hbm %s7784_s5, 4096 }
 0x311   : > { %p6319_p4 = scmp.ne.s32.totalorder %s7732_s17, %s6318_s7  ;;  %p6323_p9 = scmp.lt.u32.totalorder %s7732_s17, %s7784_s5 }
 0x312   : > { %p6324_p10 = scmp.lt.u32.totalorder %s6322_s10, %s6318_s7  ;;  %p6326_p12 = scmp.lt.u32.totalorder %s6318_s7, %s7732_s17 }
 0x313   : > { %p6320_p7 = pnand %p6319_p4, %p6440_p5 }
 0x314   : > { %p6325_p11 = por %p6324_p10, %p6323_p9 }
 0x315   : > { %p6321_p8 = pneg %p6320_p7 }
 0x316   : > { %p6327_p13 = por %p6326_p12, %p6325_p11 }
 0x318   : > { %p6328_p0 = pnand %p6327_p13, %p6321_p8 }
 0x31a   : > { %6331 = shalt.err (!%p6328_p0)
}
 0x31b   : > { %s6370_s12 = smov 128   ;;  %s6371_s13 = smov 8  }
 0x31c   : > { %6077 = dma.vmem_to_hbm [thread:$0]  (%p6440_p5), %s7734_s14, 1024, %s7732_s17, %s7738_s22, %s6370_s12, %s6370_s12, %s6371_s13  }
 0x31d PF: > { %p6083_p1 = scmp.ge.s32.totalorder %s6366_s21, 2  ;;  %s4903_s15 = sand.u32 1, %s6354_s18  }
 0x31e   : > { %s4904_s16 = scalar_lea.sflag [#allocation4], %s4903_s15 }
 0x31f   : > { %p6080_p2 = pnand %p6083_p1, %p6444_p6 }
 0x321   : > { %6349 = dma.done.wait (!%p6080_p2), %s4904_s16, 1024  }
 0x322   : > { %6351 = vsyncadd (!%p6080_p2), %s4904_s16, 4294966272  ;;  %p15_p3 = scmp.ge.s32.totalorder %s6427_s24, 6   ;;  %s7793_s18 = smov %s6358_s19 }
 0x323   : > { %s7794_s19 = smov %s6362_s20  ;;  %s7795_s20 = smov %s6438_s27 }
 0x324   : > { %s7796_s21 = smov %s6427_s24  ;;  %17 = sbr.rel (!%p15_p3) target bundleno = 3 (0x3), region = 99 }
 0x32b   :  { %4909 = vsyncpa [#allocation4], 1 }
 0x32c   :  { %4911 = vsyncpa [#allocation4 + $0x1], 1 }

</bundles_post_ra>
